<compile_context>
chip_gen: v7x
topology: tpu7x:2x2x1
jax: 0.10.0
libtpu: 0.0.40
codegen_flags: <defaults>
</compile_context>

<pallas_src>
import functools

import jax
import jax.numpy as jnp
from jax.experimental import pallas as pl
from jax.experimental.pallas import tpu as pltpu


# -----------------------------------------------------------------------------
# Fused kernel: backbone (K-tiled) + region-attention head + losses.
# grid = (K // tk,): step 0 additionally computes the crop features into VMEM;
# the last step applies ReLU and runs the region head + loss reduction.
# -----------------------------------------------------------------------------
def fused_trainer_kernel(x_ref, wf_ref, crops_ref, wc_ref, wh_ref, lab_ref,
                         loss_ref, logit_ref, worg_ref, wmax_ref,
                         feat_acc, cf_ref,
                         *, G, R, omega, k_ra):
    kstep = pl.program_id(0)
    nk = pl.num_programs(0)

    # ---- step 0: init accumulator + crop-encoder matmul (hoisted out of the
    # pipeline drain so it overlaps the K-streamed backbone DMAs) -------------
    @pl.when(kstep == 0)
    def _():
        feat_acc[...] = jnp.zeros_like(feat_acc)
        cf_ref[...] = jnp.dot(crops_ref[...], wc_ref[...],
                              preferred_element_type=jnp.float32)

    # ---- every step: accumulate one K-slab of  features = x @ w_feat --------
    feat_acc[...] += jnp.dot(x_ref[...], wf_ref[...],
                             preferred_element_type=jnp.float32)

    # ---- last step: region-attention head + losses (crop features resident) -
    @pl.when(kstep == nk - 1)
    def _():
        feats = jnp.maximum(feat_acc[...], 0.0)               # (B, D) f32
        B, D = feats.shape
        GB = G * B
        N = GB * R

        cf = cf_ref[...]                                      # (N, D) f32, region-major rows
        # features tiled across groups: row gb = g*B + b -> feats[b]
        feats_t = jnp.concatenate([feats] * G, axis=0)        # (GB, D)

        # region scores via VPU row-dot, lane-packed into a (GB, R) tile
        cf_r = [cf[r * GB:(r + 1) * GB, :] for r in range(R)]
        s = jnp.concatenate(
            [jnp.sum(c * feats_t, axis=-1, keepdims=True) for c in cf_r],
            axis=-1)                                          # (GB, R)

        # softmax over the region (lane) axis; EUP reciprocal for the divide
        m = jnp.max(s, axis=-1, keepdims=True)                # (GB, 1)
        e = jnp.exp(s - m)                                    # (GB, R)
        den = jnp.sum(e, axis=-1, keepdims=True)              # (GB, 1)
        w = e * pl.reciprocal(den, approx=True)               # (GB, R) attention weights
        wmax = jnp.max(w, axis=-1, keepdims=True)             # (GB, 1)

        # single store per output (was R+1 masked width-1 column stores)
        worg_ref[...] = w
        wmax_ref[...] = jnp.broadcast_to(wmax, (GB, R))

        # attention pooling: pooled[gb] = sum_r w[gb, r] * cf[r*GB + gb]
        pooled = w[:, 0:1] * cf_r[0]
        for r in range(1, R):
            pooled = pooled + w[:, r:r + 1] * cf_r[r]         # (GB, D)

        # sum group contributions, head projection as a VPU lane reduce
        psum = pooled[0:B, :]
        for g in range(1, G):
            psum = psum + pooled[g * B:(g + 1) * B, :]
        # group contributions are averaged (same synthetic contract as before)
        logit = jnp.sum(psum * wh_ref[...], axis=-1,
                        keepdims=True) * (1.0 / G)            # (B, 1)
        logit_ref[...] = logit

        # exact BCE-with-logits (stable form), f32
        y = lab_ref[...]                                      # (B, 1)
        bce_t = (jnp.maximum(logit, 0.0) - logit * y
                 + jnp.log(1.0 + jnp.exp(-jnp.abs(logit))))
        bce = jnp.sum(bce_t, axis=0, keepdims=True) * (1.0 / B)        # (1, 1)

        # RA-style loss: mean(k / (|w_max - w_org| + k)) on the lane-packed tile
        # TODO(synk): get_loss(k) is defined outside this module; this keeps the
        # same (weights_max, weights_org) -> scalar contract.
        ra_t = k_ra / (jnp.abs(wmax - w) + k_ra)              # (GB, R)
        ra = jnp.sum(jnp.sum(ra_t, axis=-1, keepdims=True),
                     axis=0, keepdims=True) * (1.0 / N)       # (1, 1)

        loss_ref[...] = omega * ra + bce


# -----------------------------------------------------------------------------
# Wrapper (glue): parameter setup, layout plumbing, tiling policy, pallas_call.
# -----------------------------------------------------------------------------
def init_params(key, img_dim, crop_dim, hidden):
    # TODO(synk): real backbone is build_model(opt.arch) (CLIP-like); replaced by a
    # deterministic linear/attention model with the same output contract.
    k1, k2, k3 = jax.random.split(key, 3)
    return {
        "w_feat": 0.02 * jax.random.normal(k1, (img_dim, hidden), jnp.float32),
        "w_crop": 0.02 * jax.random.normal(k2, (crop_dim, hidden), jnp.float32),
        "w_head": 0.02 * jax.random.normal(k3, (1, hidden), jnp.float32),
    }


def _vmem_budget_bytes():
    """Generation-aware VMEM budget (v5e/v6e: 128 MiB, v7x: 64 MiB)."""
    cap = 64 << 20
    try:
        cap = int(getattr(pltpu.get_tpu_info(), "vmem_capacity_bytes", cap))
    except Exception:
        pass
    return max(32 << 20, min(cap * 3 // 4, 96 << 20))


def _pick_k_tile(k_dim, n_rows, d, budget_bytes):
    """Largest K tile whose double-buffered bf16 x / w_feat slabs fit ~half the budget."""
    bytes_per_col = 2 * 2 * (n_rows + d)          # bf16, double-buffered x & w_feat columns
    hw_cap = 8192 if budget_bytes >= (64 << 20) else 4096   # smaller tiles on v7x
    tk_cap = max(128, min(budget_bytes // (2 * bytes_per_col), hw_cap))
    if k_dim <= tk_cap:
        return k_dim                              # single step, full-extent block
    for quantum in (512, 128):                    # prefer 512-multiples (MXU cadence, v5e)
        t = (tk_cap // quantum) * quantum
        while t >= quantum:
            if k_dim % t == 0:
                return t
            t -= quantum
    return k_dim


def trainer_forward(params, x, crops, label, *, omega=0.5, k=0.2):
    """Mirrors Trainer.forward(): get_features -> model.forward -> losses."""
    B = x.shape[0]
    G, R = crops.shape[0], crops.shape[1]
    Cimg = x.shape[1] * x.shape[2] * x.shape[3]
    Cc = crops.shape[-3] * crops.shape[-2] * crops.shape[-1]
    D = params["w_feat"].shape[1]
    GB = G * B
    N = R * GB

    # MXU inputs in bf16 (f32 accumulation inside the kernel); layout plumbing
    # (flatten NCHW, fold G/R/B into rows, region-major) done here in XLA.
    x_flat = x.reshape(B, Cimg).astype(jnp.bfloat16)
    w_feat = params["w_feat"].astype(jnp.bfloat16)
    w_crop = params["w_crop"].astype(jnp.bfloat16)
    crops_flat = jnp.transpose(crops, (1, 0, 2, 3, 4, 5)).reshape(N, Cc)
    crops_flat = crops_flat.astype(jnp.bfloat16)              # row = r*(G*B) + g*B + b
    label_col = label.reshape(B, 1).astype(jnp.float32)
    w_head = params["w_head"].astype(jnp.float32)             # (1, D)

    budget = _vmem_budget_bytes()
    tk = _pick_k_tile(Cimg, B, D, budget)
    nk = Cimg // tk

    kernel = functools.partial(fused_trainer_kernel,
                               G=G, R=R, omega=float(omega), k_ra=float(k))

    out_shape = (
        jax.ShapeDtypeStruct((1, 1), jnp.float32),            # loss
        jax.ShapeDtypeStruct((B, 1), jnp.float32),            # logits
        jax.ShapeDtypeStruct((GB, R), jnp.float32),           # w_org (lane-packed)
        jax.ShapeDtypeStruct((GB, R), jnp.float32),           # w_max (lane-packed)
    )
    out_specs = (
        pl.BlockSpec((1, 1), lambda kk: (0, 0)),
        pl.BlockSpec((B, 1), lambda kk: (0, 0)),
        pl.BlockSpec((GB, R), lambda kk: (0, 0)),
        pl.BlockSpec((GB, R), lambda kk: (0, 0)),
    )
    scratch = [
        pltpu.VMEM((B, D), jnp.float32),                      # backbone feature accumulator
        pltpu.VMEM((N, D), jnp.float32),                      # crop features (written at step 0)
    ]
    cparams = pltpu.CompilerParams(
        dimension_semantics=("arbitrary",),                   # K is a reduction axis
        vmem_limit_bytes=int(budget))

    def _in_specs(single_buffer_invariants):
        def inv(shape):
            if single_buffer_invariants:
                # grid-invariant operands: double-buffering is pure VMEM waste
                return pl.BlockSpec(shape, lambda kk: (0, 0),
                                    pipeline_mode=pl.Buffered(1))
            return pl.BlockSpec(shape, lambda kk: (0, 0))
        return [
            pl.BlockSpec((B, tk), lambda kk: (0, kk)),        # x        (K-streamed)
            pl.BlockSpec((tk, D), lambda kk: (kk, 0)),        # w_feat   (K-streamed)
            inv((N, Cc)),                                     # crops    (grid-invariant)
            inv((Cc, D)),                                     # w_crop   (grid-invariant)
            inv((1, D)),                                      # w_head   (grid-invariant)
            inv((B, 1)),                                      # label    (grid-invariant)
        ]

    outs = None
    for single_buf in (True, False):
        try:
            outs = pl.pallas_call(
                kernel,
                grid=(nk,),
                in_specs=_in_specs(single_buf),
                out_specs=out_specs,
                out_shape=out_shape,
                scratch_shapes=scratch,
                compiler_params=cparams,
            )(x_flat, w_feat, crops_flat, w_crop, w_head, label_col)
            break
        except Exception:
            # pl.Buffered(1) (single-buffered invariant operands) unsupported on this
            # jax/mosaic version -> fall back to default double-buffering.
            if not single_buf:
                raise
    loss, logits, w_org, w_max = outs

    output = logits.reshape(-1)                               # self.output.view(-1)
    # (GB, R) with row gb = g*B + b  ->  (G, R, B) "per group / region / batch"
    w_org_out = w_org.reshape(G, B, R).transpose(0, 2, 1)
    w_max_out = w_max.reshape(G, B, R).transpose(0, 2, 1)
    return loss[0, 0], output, w_max_out, w_org_out


# TODO(synk): optimizer (AdamW/SGD), backward(), checkpoint save/load and
# learning-rate adjustment have no Pallas equivalent here (training-loop glue).


if __name__ == "__main__":
    key = jax.random.PRNGKey(0)
    k_img, k_crop, k_lab, k_prm = jax.random.split(key, 4)

    B, C, H, W = 2, 3, 64, 64        # self.input (NCHW); K = C*H*W = 12288 -> multi-step stream
    G, R, Hc, Wc = 2, 4, 8, 8        # self.crops: G groups x R crops per sample
    D = 128                          # hidden feature dim

    x = jax.random.normal(k_img, (B, C, H, W), jnp.float32)
    crops = jax.random.normal(k_crop, (G, R, B, C, Hc, Wc), jnp.float32)
    label = (jax.random.uniform(k_lab, (B,)) > 0.5).astype(jnp.float32)

    params = init_params(k_prm, C * H * W, C * Hc * Wc, D)

    loss, output, w_max, w_org = trainer_forward(
        params, x, crops, label, omega=0.5, k=0.2)
    jax.block_until_ready((loss, output, w_max, w_org))

    assert output.shape == (B,)
    assert loss.shape == ()
    assert w_max.shape == (G, R, B) and w_org.shape == (G, R, B)
    print("KERNEL_OK")
</pallas_src>

<mosaic_0001>
module attributes {stable_mosaic.version = 11 : i64} {
  func.func @fused_trainer_kernel(%arg0: i32, %arg1: memref<2x4096xbf16, #tpu.memory_space<vmem>>, %arg2: memref<4096x128xbf16, #tpu.memory_space<vmem>>, %arg3: memref<16x192xbf16, #tpu.memory_space<vmem>>, %arg4: memref<192x128xbf16, #tpu.memory_space<vmem>>, %arg5: memref<1x128xf32, #tpu.memory_space<vmem>>, %arg6: memref<2x1xf32, #tpu.memory_space<vmem>>, %arg7: memref<1x1xf32, #tpu.memory_space<vmem>>, %arg8: memref<2x1xf32, #tpu.memory_space<vmem>>, %arg9: memref<4x4xf32, #tpu.memory_space<vmem>>, %arg10: memref<4x4xf32, #tpu.memory_space<vmem>>, %arg11: memref<2x128xf32, #tpu.memory_space<vmem>>, %arg12: memref<16x128xf32, #tpu.memory_space<vmem>>) attributes {dimension_semantics = [#tpu.dimension_semantics<arbitrary>], iteration_bounds = array<i64: 3>, scalar_prefetch = 0 : i64, scratch_operands = 2 : i64, tpu.core_type = #tpu.core_type<tc>, window_params = [{transform_indices = @transform_0, window_bounds = array<i64: 2, 4096>}, {transform_indices = @transform_1, window_bounds = array<i64: 4096, 128>}, {pipeline_mode = #tpu.pipeline_mode<synchronous>, transform_indices = @transform_2, window_bounds = array<i64: 16, 192>}, {pipeline_mode = #tpu.pipeline_mode<synchronous>, transform_indices = @transform_3, window_bounds = array<i64: 192, 128>}, {pipeline_mode = #tpu.pipeline_mode<synchronous>, transform_indices = @transform_4, window_bounds = array<i64: 1, 128>}, {pipeline_mode = #tpu.pipeline_mode<synchronous>, transform_indices = @transform_5, window_bounds = array<i64: 2, 1>}, {pipeline_mode = #tpu.pipeline_mode<synchronous>, transform_indices = @transform_6, window_bounds = array<i64: 1, 1>}, {pipeline_mode = #tpu.pipeline_mode<synchronous>, transform_indices = @transform_7, window_bounds = array<i64: 2, 1>}, {pipeline_mode = #tpu.pipeline_mode<synchronous>, transform_indices = @transform_8, window_bounds = array<i64: 4, 4>}, {pipeline_mode = #tpu.pipeline_mode<synchronous>, transform_indices = @transform_9, window_bounds = array<i64: 4, 4>}]} {
    %c0_i32 = arith.constant 0 : i32
    %0 = arith.cmpi eq, %arg0, %c0_i32 : i32
    %1 = arith.extui %0 : i1 to i32
    %c0_i32_0 = arith.constant 0 : i32
    %2 = arith.cmpi ne, %1, %c0_i32_0 : i32
    scf.if %2 {
      %cst_9 = arith.constant 0.000000e+00 : f32
      %12 = vector.broadcast %cst_9 : f32 to vector<2x128xf32>
      %c0_10 = arith.constant 0 : index
      %c0_11 = arith.constant 0 : index
      %13 = vector.load %arg11[%c0_10, %c0_11] : memref<2x128xf32, #tpu.memory_space<vmem>>, vector<2x128xf32>
      tpu.vector_store %arg11[%c0_10, %c0_11], %12 {strides = array<i32>} : memref<2x128xf32, #tpu.memory_space<vmem>>, vector<2x128xf32>,
      %c0_12 = arith.constant 0 : index
      %c0_13 = arith.constant 0 : index
      %14 = vector.load %arg3[%c0_12, %c0_13] : memref<16x192xbf16, #tpu.memory_space<vmem>>, vector<16x192xbf16>
      %c0_14 = arith.constant 0 : index
      %c0_15 = arith.constant 0 : index
      %15 = vector.load %arg4[%c0_14, %c0_15] : memref<192x128xbf16, #tpu.memory_space<vmem>>, vector<192x128xbf16>
      %cst_16 = arith.constant dense<0.000000e+00> : vector<16x128xf32>
      %16 = tpu.matmul %14, %15, %cst_16 {dimension_numbers = #tpu.dot_dimension_numbers<[1], [0], [0], [1], [0, 0, 1, 1], [], []>} : vector<16x192xbf16>, vector<192x128xbf16>, vector<16x128xf32> -> vector<16x128xf32>
      %c0_17 = arith.constant 0 : index
      %c0_18 = arith.constant 0 : index
      %17 = vector.load %arg12[%c0_17, %c0_18] : memref<16x128xf32, #tpu.memory_space<vmem>>, vector<16x128xf32>
      tpu.vector_store %arg12[%c0_17, %c0_18], %16 {strides = array<i32>} : memref<16x128xf32, #tpu.memory_space<vmem>>, vector<16x128xf32>,
    } else {
    }
    %c0 = arith.constant 0 : index
    %c0_1 = arith.constant 0 : index
    %3 = vector.load %arg11[%c0, %c0_1] : memref<2x128xf32, #tpu.memory_space<vmem>>, vector<2x128xf32>
    %c0_2 = arith.constant 0 : index
    %c0_3 = arith.constant 0 : index
    %4 = vector.load %arg1[%c0_2, %c0_3] : memref<2x4096xbf16, #tpu.memory_space<vmem>>, vector<2x4096xbf16>
    %c0_4 = arith.constant 0 : index
    %c0_5 = arith.constant 0 : index
    %5 = vector.load %arg2[%c0_4, %c0_5] : memref<4096x128xbf16, #tpu.memory_space<vmem>>, vector<4096x128xbf16>
    %cst = arith.constant dense<0.000000e+00> : vector<2x128xf32>
    %6 = tpu.matmul %4, %5, %cst {dimension_numbers = #tpu.dot_dimension_numbers<[1], [0], [0], [1], [0, 0, 1, 1], [], []>} : vector<2x4096xbf16>, vector<4096x128xbf16>, vector<2x128xf32> -> vector<2x128xf32>
    %7 = arith.addf %3, %6 : vector<2x128xf32>
    %c0_6 = arith.constant 0 : index
    %c0_7 = arith.constant 0 : index
    %8 = vector.load %arg11[%c0_6, %c0_7] : memref<2x128xf32, #tpu.memory_space<vmem>>, vector<2x128xf32>
    tpu.vector_store %arg11[%c0_6, %c0_7], %7 {strides = array<i32>} : memref<2x128xf32, #tpu.memory_space<vmem>>, vector<2x128xf32>,
    %c2_i32 = arith.constant 2 : i32
    %9 = arith.cmpi eq, %arg0, %c2_i32 : i32
    %10 = arith.extui %9 : i1 to i32
    %c0_i32_8 = arith.constant 0 : i32
    %11 = arith.cmpi ne, %10, %c0_i32_8 : i32
    scf.if %11 {
      %c0_9 = arith.constant 0 : index
      %c0_10 = arith.constant 0 : index
      %12 = vector.load %arg11[%c0_9, %c0_10] : memref<2x128xf32, #tpu.memory_space<vmem>>, vector<2x128xf32>
      %cst_11 = arith.constant 0.000000e+00 : f32
      %13 = vector.broadcast %cst_11 : f32 to vector<2x128xf32>
      %14 = arith.maximumf %12, %13 : vector<2x128xf32>
      %c0_12 = arith.constant 0 : index
      %c0_13 = arith.constant 0 : index
      %15 = vector.load %arg12[%c0_12, %c0_13] : memref<16x128xf32, #tpu.memory_space<vmem>>, vector<16x128xf32>
      %16 = tpu.concatenate %14, %14 in 0 : vector<2x128xf32>, vector<2x128xf32> -> vector<4x128xf32>
      %17 = vector.extract_strided_slice %15 {offsets = [0, 0], sizes = [4, 128], strides = [1, 1]} : vector<16x128xf32> to vector<4x128xf32>
      %18 = vector.extract_strided_slice %15 {offsets = [4, 0], sizes = [4, 128], strides = [1, 1]} : vector<16x128xf32> to vector<4x128xf32>
      %19 = vector.extract_strided_slice %15 {offsets = [8, 0], sizes = [4, 128], strides = [1, 1]} : vector<16x128xf32> to vector<4x128xf32>
      %20 = vector.extract_strided_slice %15 {offsets = [12, 0], sizes = [4, 128], strides = [1, 1]} : vector<16x128xf32> to vector<4x128xf32>
      %21 = arith.mulf %17, %16 : vector<4x128xf32>
      %cst_14 = arith.constant dense<0.000000e+00> : vector<4xf32>
      %22 = vector.multi_reduction <add>, %21, %cst_14 [1] : vector<4x128xf32> to vector<4xf32>
      %23 = vector.shape_cast %22 : vector<4xf32> to vector<4x1xf32>
      %24 = arith.mulf %18, %16 : vector<4x128xf32>
      %cst_15 = arith.constant dense<0.000000e+00> : vector<4xf32>
      %25 = vector.multi_reduction <add>, %24, %cst_15 [1] : vector<4x128xf32> to vector<4xf32>
      %26 = vector.shape_cast %25 : vector<4xf32> to vector<4x1xf32>
      %27 = arith.mulf %19, %16 : vector<4x128xf32>
      %cst_16 = arith.constant dense<0.000000e+00> : vector<4xf32>
      %28 = vector.multi_reduction <add>, %27, %cst_16 [1] : vector<4x128xf32> to vector<4xf32>
      %29 = vector.shape_cast %28 : vector<4xf32> to vector<4x1xf32>
      %30 = arith.mulf %20, %16 : vector<4x128xf32>
      %cst_17 = arith.constant dense<0.000000e+00> : vector<4xf32>
      %31 = vector.multi_reduction <add>, %30, %cst_17 [1] : vector<4x128xf32> to vector<4xf32>
      %32 = vector.shape_cast %31 : vector<4xf32> to vector<4x1xf32>
      %33 = tpu.concatenate %23, %26, %29, %32 in 1 : vector<4x1xf32>, vector<4x1xf32>, vector<4x1xf32>, vector<4x1xf32> -> vector<4x4xf32>
      %cst_18 = arith.constant dense<0xFF800000> : vector<4xf32>
      %34 = vector.multi_reduction <maximumf>, %33, %cst_18 [1] : vector<4x4xf32> to vector<4xf32>
      %35 = vector.shape_cast %34 : vector<4xf32> to vector<4x1xf32>
      %36 = vector.broadcast %35 : vector<4x1xf32> to vector<4x4xf32>
      %37 = arith.subf %33, %36 : vector<4x4xf32>
      %38 = math.exp %37 : vector<4x4xf32>
      %cst_19 = arith.constant dense<0.000000e+00> : vector<4xf32>
      %39 = vector.multi_reduction <add>, %38, %cst_19 [1] : vector<4x4xf32> to vector<4xf32>
      %40 = vector.shape_cast %39 : vector<4xf32> to vector<4x1xf32>
      %41 = tpu.reciprocal %40 {approx = true} : vector<4x1xf32> -> vector<4x1xf32>
      %42 = vector.broadcast %41 : vector<4x1xf32> to vector<4x4xf32>
      %43 = arith.mulf %38, %42 : vector<4x4xf32>
      %cst_20 = arith.constant dense<0xFF800000> : vector<4xf32>
      %44 = vector.multi_reduction <maximumf>, %43, %cst_20 [1] : vector<4x4xf32> to vector<4xf32>
      %45 = vector.shape_cast %44 : vector<4xf32> to vector<4x1xf32>
      %c0_21 = arith.constant 0 : index
      %c0_22 = arith.constant 0 : index
      %46 = vector.load %arg9[%c0_21, %c0_22] : memref<4x4xf32, #tpu.memory_space<vmem>>, vector<4x4xf32>
      tpu.vector_store %arg9[%c0_21, %c0_22], %43 {strides = array<i32>} : memref<4x4xf32, #tpu.memory_space<vmem>>, vector<4x4xf32>,
      %47 = vector.shape_cast %45 : vector<4x1xf32> to vector<4x1xf32>
      %48 = vector.broadcast %47 : vector<4x1xf32> to vector<4x4xf32>
      %c0_23 = arith.constant 0 : index
      %c0_24 = arith.constant 0 : index
      %49 = vector.load %arg10[%c0_23, %c0_24] : memref<4x4xf32, #tpu.memory_space<vmem>>, vector<4x4xf32>
      tpu.vector_store %arg10[%c0_23, %c0_24], %48 {strides = array<i32>} : memref<4x4xf32, #tpu.memory_space<vmem>>, vector<4x4xf32>,
      %50 = vector.extract_strided_slice %43 {offsets = [0, 0], sizes = [4, 1], strides = [1, 1]} : vector<4x4xf32> to vector<4x1xf32>
      %51 = vector.broadcast %50 : vector<4x1xf32> to vector<4x128xf32>
      %52 = arith.mulf %51, %17 : vector<4x128xf32>
      %53 = vector.extract_strided_slice %43 {offsets = [0, 1], sizes = [4, 1], strides = [1, 1]} : vector<4x4xf32> to vector<4x1xf32>
      %54 = vector.broadcast %53 : vector<4x1xf32> to vector<4x128xf32>
      %55 = arith.mulf %54, %18 : vector<4x128xf32>
      %56 = arith.addf %52, %55 : vector<4x128xf32>
      %57 = vector.extract_strided_slice %43 {offsets = [0, 2], sizes = [4, 1], strides = [1, 1]} : vector<4x4xf32> to vector<4x1xf32>
      %58 = vector.broadcast %57 : vector<4x1xf32> to vector<4x128xf32>
      %59 = arith.mulf %58, %19 : vector<4x128xf32>
      %60 = arith.addf %56, %59 : vector<4x128xf32>
      %61 = vector.extract_strided_slice %43 {offsets = [0, 3], sizes = [4, 1], strides = [1, 1]} : vector<4x4xf32> to vector<4x1xf32>
      %62 = vector.broadcast %61 : vector<4x1xf32> to vector<4x128xf32>
      %63 = arith.mulf %62, %20 : vector<4x128xf32>
      %64 = arith.addf %60, %63 : vector<4x128xf32>
      %65 = vector.extract_strided_slice %64 {offsets = [0, 0], sizes = [2, 128], strides = [1, 1]} : vector<4x128xf32> to vector<2x128xf32>
      %66 = vector.extract_strided_slice %64 {offsets = [2, 0], sizes = [2, 128], strides = [1, 1]} : vector<4x128xf32> to vector<2x128xf32>
      %67 = arith.addf %65, %66 : vector<2x128xf32>
      %c0_25 = arith.constant 0 : index
      %c0_26 = arith.constant 0 : index
      %68 = vector.load %arg5[%c0_25, %c0_26] : memref<1x128xf32, #tpu.memory_space<vmem>>, vector<1x128xf32>
      %69 = vector.broadcast %68 : vector<1x128xf32> to vector<2x128xf32>
      %70 = arith.mulf %67, %69 : vector<2x128xf32>
      %cst_27 = arith.constant dense<0.000000e+00> : vector<2xf32>
      %71 = vector.multi_reduction <add>, %70, %cst_27 [1] : vector<2x128xf32> to vector<2xf32>
      %72 = vector.shape_cast %71 : vector<2xf32> to vector<2x1xf32>
      %cst_28 = arith.constant 5.000000e-01 : f32
      %73 = vector.broadcast %cst_28 : f32 to vector<2x1xf32>
      %74 = arith.mulf %72, %73 : vector<2x1xf32>
      %c0_29 = arith.constant 0 : index
      %c0_30 = arith.constant 0 : index
      %75 = vector.load %arg8[%c0_29, %c0_30] : memref<2x1xf32, #tpu.memory_space<vmem>>, vector<2x1xf32>
      tpu.vector_store %arg8[%c0_29, %c0_30], %74 {strides = array<i32>} : memref<2x1xf32, #tpu.memory_space<vmem>>, vector<2x1xf32>,
      %c0_31 = arith.constant 0 : index
      %c0_32 = arith.constant 0 : index
      %76 = vector.load %arg6[%c0_31, %c0_32] : memref<2x1xf32, #tpu.memory_space<vmem>>, vector<2x1xf32>
      %cst_33 = arith.constant 0.000000e+00 : f32
      %77 = vector.broadcast %cst_33 : f32 to vector<2x1xf32>
      %78 = arith.maximumf %74, %77 : vector<2x1xf32>
      %79 = arith.mulf %74, %76 : vector<2x1xf32>
      %80 = arith.subf %78, %79 : vector<2x1xf32>
      %81 = math.absf %74 : vector<2x1xf32>
      %cst_34 = arith.constant 0.000000e+00 : f32
      %82 = vector.broadcast %cst_34 : f32 to vector<2x1xf32>
      %83 = arith.subf %82, %81 : vector<2x1xf32>
      %84 = math.exp %83 : vector<2x1xf32>
      %cst_35 = arith.constant 1.000000e+00 : f32
      %85 = vector.broadcast %cst_35 : f32 to vector<2x1xf32>
      %86 = arith.addf %85, %84 : vector<2x1xf32>
      %87 = math.log %86 : vector<2x1xf32>
      %88 = arith.addf %80, %87 : vector<2x1xf32>
      %cst_36 = arith.constant dense<0.000000e+00> : vector<1xf32>
      %89 = vector.multi_reduction <add>, %88, %cst_36 [0] : vector<2x1xf32> to vector<1xf32>
      %90 = vector.shape_cast %89 : vector<1xf32> to vector<1x1xf32>
      %cst_37 = arith.constant 5.000000e-01 : f32
      %91 = vector.broadcast %cst_37 : f32 to vector<1x1xf32>
      %92 = arith.mulf %90, %91 : vector<1x1xf32>
      %93 = vector.broadcast %45 : vector<4x1xf32> to vector<4x4xf32>
      %94 = arith.subf %93, %43 : vector<4x4xf32>
      %95 = math.absf %94 : vector<4x4xf32>
      %cst_38 = arith.constant 2.000000e-01 : f32
      %96 = vector.broadcast %cst_38 : f32 to vector<4x4xf32>
      %97 = arith.addf %95, %96 : vector<4x4xf32>
      %cst_39 = arith.constant 2.000000e-01 : f32
      %98 = vector.broadcast %cst_39 : f32 to vector<4x4xf32>
      %99 = arith.divf %98, %97 : vector<4x4xf32>
      %cst_40 = arith.constant dense<0.000000e+00> : vector<4xf32>
      %100 = vector.multi_reduction <add>, %99, %cst_40 [1] : vector<4x4xf32> to vector<4xf32>
      %101 = vector.shape_cast %100 : vector<4xf32> to vector<4x1xf32>
      %cst_41 = arith.constant dense<0.000000e+00> : vector<1xf32>
      %102 = vector.multi_reduction <add>, %101, %cst_41 [0] : vector<4x1xf32> to vector<1xf32>
      %103 = vector.shape_cast %102 : vector<1xf32> to vector<1x1xf32>
      %cst_42 = arith.constant 6.250000e-02 : f32
      %104 = vector.broadcast %cst_42 : f32 to vector<1x1xf32>
      %105 = arith.mulf %103, %104 : vector<1x1xf32>
      %cst_43 = arith.constant 5.000000e-01 : f32
      %106 = vector.broadcast %cst_43 : f32 to vector<1x1xf32>
      %107 = arith.mulf %106, %105 : vector<1x1xf32>
      %108 = arith.addf %107, %92 : vector<1x1xf32>
      %c0_44 = arith.constant 0 : index
      %c0_45 = arith.constant 0 : index
      %109 = vector.load %arg7[%c0_44, %c0_45] : memref<1x1xf32, #tpu.memory_space<vmem>>, vector<1x1xf32>
      tpu.vector_store %arg7[%c0_44, %c0_45], %108 {strides = array<i32>} : memref<1x1xf32, #tpu.memory_space<vmem>>, vector<1x1xf32>,
    } else {
    }
    return
  }
  func.func @transform_0(%arg0: i32) -> (i32, i32) {
    %c0_i32 = arith.constant 0 : i32
    %c0_i32_0 = arith.constant 0 : i32
    return %c0_i32, %arg0 : i32, i32
  }
  func.func @transform_1(%arg0: i32) -> (i32, i32) {
    %c0_i32 = arith.constant 0 : i32
    %c0_i32_0 = arith.constant 0 : i32
    return %arg0, %c0_i32 : i32, i32
  }
  func.func @transform_2(%arg0: i32) -> (i32, i32) {
    %c0_i32 = arith.constant 0 : i32
    %c0_i32_0 = arith.constant 0 : i32
    %c0_i32_1 = arith.constant 0 : i32
    return %c0_i32, %c0_i32_0 : i32, i32
  }
  func.func @transform_3(%arg0: i32) -> (i32, i32) {
    %c0_i32 = arith.constant 0 : i32
    %c0_i32_0 = arith.constant 0 : i32
    %c0_i32_1 = arith.constant 0 : i32
    return %c0_i32, %c0_i32_0 : i32, i32
  }
  func.func @transform_4(%arg0: i32) -> (i32, i32) {
    %c0_i32 = arith.constant 0 : i32
    %c0_i32_0 = arith.constant 0 : i32
    %c0_i32_1 = arith.constant 0 : i32
    return %c0_i32, %c0_i32_0 : i32, i32
  }
  func.func @transform_5(%arg0: i32) -> (i32, i32) {
    %c0_i32 = arith.constant 0 : i32
    %c0_i32_0 = arith.constant 0 : i32
    %c0_i32_1 = arith.constant 0 : i32
    return %c0_i32, %c0_i32_0 : i32, i32
  }
  func.func @transform_6(%arg0: i32) -> (i32, i32) {
    %c0_i32 = arith.constant 0 : i32
    %c0_i32_0 = arith.constant 0 : i32
    %c0_i32_1 = arith.constant 0 : i32
    return %c0_i32, %c0_i32_0 : i32, i32
  }
  func.func @transform_7(%arg0: i32) -> (i32, i32) {
    %c0_i32 = arith.constant 0 : i32
    %c0_i32_0 = arith.constant 0 : i32
    %c0_i32_1 = arith.constant 0 : i32
    return %c0_i32, %c0_i32_0 : i32, i32
  }
  func.func @transform_8(%arg0: i32) -> (i32, i32) {
    %c0_i32 = arith.constant 0 : i32
    %c0_i32_0 = arith.constant 0 : i32
    %c0_i32_1 = arith.constant 0 : i32
    return %c0_i32, %c0_i32_0 : i32, i32
  }
  func.func @transform_9(%arg0: i32) -> (i32, i32) {
    %c0_i32 = arith.constant 0 : i32
    %c0_i32_0 = arith.constant 0 : i32
    %c0_i32_1 = arith.constant 0 : i32
    return %c0_i32, %c0_i32_0 : i32, i32
  }
}

module attributes {stable_mosaic.version = 11 : i64} {
  func.func @fused_trainer_kernel(%arg0: i32, %arg1: memref<2x4096xbf16, #tpu.memory_space<vmem>>, %arg2: memref<4096x128xbf16, #tpu.memory_space<vmem>>, %arg3: memref<16x192xbf16, #tpu.memory_space<vmem>>, %arg4: memref<192x128xbf16, #tpu.memory_space<vmem>>, %arg5: memref<1x128xf32, #tpu.memory_space<vmem>>, %arg6: memref<2x1xf32, #tpu.memory_space<vmem>>, %arg7: memref<1x1xf32, #tpu.memory_space<vmem>>, %arg8: memref<2x1xf32, #tpu.memory_space<vmem>>, %arg9: memref<4x4xf32, #tpu.memory_space<vmem>>, %arg10: memref<4x4xf32, #tpu.memory_space<vmem>>, %arg11: memref<2x128xf32, #tpu.memory_space<vmem>>, %arg12: memref<16x128xf32, #tpu.memory_space<vmem>>) attributes {dimension_semantics = [#tpu.dimension_semantics<arbitrary>], iteration_bounds = array<i64: 3>, scalar_prefetch = 0 : i64, scratch_operands = 2 : i64, tpu.core_type = #tpu.core_type<tc>, window_params = [{transform_indices = @transform_0, window_bounds = array<i64: 2, 4096>}, {transform_indices = @transform_1, window_bounds = array<i64: 4096, 128>}, {pipeline_mode = #tpu.pipeline_mode<synchronous>, transform_indices = @transform_2, window_bounds = array<i64: 16, 192>}, {pipeline_mode = #tpu.pipeline_mode<synchronous>, transform_indices = @transform_3, window_bounds = array<i64: 192, 128>}, {pipeline_mode = #tpu.pipeline_mode<synchronous>, transform_indices = @transform_4, window_bounds = array<i64: 1, 128>}, {pipeline_mode = #tpu.pipeline_mode<synchronous>, transform_indices = @transform_5, window_bounds = array<i64: 2, 1>}, {pipeline_mode = #tpu.pipeline_mode<synchronous>, transform_indices = @transform_6, window_bounds = array<i64: 1, 1>}, {pipeline_mode = #tpu.pipeline_mode<synchronous>, transform_indices = @transform_7, window_bounds = array<i64: 2, 1>}, {pipeline_mode = #tpu.pipeline_mode<synchronous>, transform_indices = @transform_8, window_bounds = array<i64: 4, 4>}, {pipeline_mode = #tpu.pipeline_mode<synchronous>, transform_indices = @transform_9, window_bounds = array<i64: 4, 4>}]} {
    %c0_i32 = arith.constant 0 : i32
    %0 = arith.cmpi eq, %arg0, %c0_i32 : i32
    %1 = arith.extui %0 : i1 to i32
    %c0_i32_0 = arith.constant 0 : i32
    %2 = arith.cmpi ne, %1, %c0_i32_0 : i32
    scf.if %2 {
      %cst_9 = arith.constant 0.000000e+00 : f32
      %12 = vector.broadcast %cst_9 : f32 to vector<2x128xf32>
      %c0_10 = arith.constant 0 : index
      %c0_11 = arith.constant 0 : index
      %13 = vector.load %arg11[%c0_10, %c0_11] : memref<2x128xf32, #tpu.memory_space<vmem>>, vector<2x128xf32>
      tpu.vector_store %arg11[%c0_10, %c0_11], %12 {strides = array<i32>} : memref<2x128xf32, #tpu.memory_space<vmem>>, vector<2x128xf32>,
      %c0_12 = arith.constant 0 : index
      %c0_13 = arith.constant 0 : index
      %14 = vector.load %arg3[%c0_12, %c0_13] : memref<16x192xbf16, #tpu.memory_space<vmem>>, vector<16x192xbf16>
      %c0_14 = arith.constant 0 : index
      %c0_15 = arith.constant 0 : index
      %15 = vector.load %arg4[%c0_14, %c0_15] : memref<192x128xbf16, #tpu.memory_space<vmem>>, vector<192x128xbf16>
      %cst_16 = arith.constant dense<0.000000e+00> : vector<16x128xf32>
      %16 = tpu.matmul %14, %15, %cst_16 {dimension_numbers = #tpu.dot_dimension_numbers<[1], [0], [0], [1], [0, 0, 1, 1], [], []>} : vector<16x192xbf16>, vector<192x128xbf16>, vector<16x128xf32> -> vector<16x128xf32>
      %c0_17 = arith.constant 0 : index
      %c0_18 = arith.constant 0 : index
      %17 = vector.load %arg12[%c0_17, %c0_18] : memref<16x128xf32, #tpu.memory_space<vmem>>, vector<16x128xf32>
      tpu.vector_store %arg12[%c0_17, %c0_18], %16 {strides = array<i32>} : memref<16x128xf32, #tpu.memory_space<vmem>>, vector<16x128xf32>,
    } else {
    }
    %c0 = arith.constant 0 : index
    %c0_1 = arith.constant 0 : index
    %3 = vector.load %arg11[%c0, %c0_1] : memref<2x128xf32, #tpu.memory_space<vmem>>, vector<2x128xf32>
    %c0_2 = arith.constant 0 : index
    %c0_3 = arith.constant 0 : index
    %4 = vector.load %arg1[%c0_2, %c0_3] : memref<2x4096xbf16, #tpu.memory_space<vmem>>, vector<2x4096xbf16>
    %c0_4 = arith.constant 0 : index
    %c0_5 = arith.constant 0 : index
    %5 = vector.load %arg2[%c0_4, %c0_5] : memref<4096x128xbf16, #tpu.memory_space<vmem>>, vector<4096x128xbf16>
    %cst = arith.constant dense<0.000000e+00> : vector<2x128xf32>
    %6 = tpu.matmul %4, %5, %cst {dimension_numbers = #tpu.dot_dimension_numbers<[1], [0], [0], [1], [0, 0, 1, 1], [], []>} : vector<2x4096xbf16>, vector<4096x128xbf16>, vector<2x128xf32> -> vector<2x128xf32>
    %7 = arith.addf %3, %6 : vector<2x128xf32>
    %c0_6 = arith.constant 0 : index
    %c0_7 = arith.constant 0 : index
    %8 = vector.load %arg11[%c0_6, %c0_7] : memref<2x128xf32, #tpu.memory_space<vmem>>, vector<2x128xf32>
    tpu.vector_store %arg11[%c0_6, %c0_7], %7 {strides = array<i32>} : memref<2x128xf32, #tpu.memory_space<vmem>>, vector<2x128xf32>,
    %c2_i32 = arith.constant 2 : i32
    %9 = arith.cmpi eq, %arg0, %c2_i32 : i32
    %10 = arith.extui %9 : i1 to i32
    %c0_i32_8 = arith.constant 0 : i32
    %11 = arith.cmpi ne, %10, %c0_i32_8 : i32
    scf.if %11 {
      %c0_9 = arith.constant 0 : index
      %c0_10 = arith.constant 0 : index
      %12 = vector.load %arg11[%c0_9, %c0_10] : memref<2x128xf32, #tpu.memory_space<vmem>>, vector<2x128xf32>
      %cst_11 = arith.constant 0.000000e+00 : f32
      %13 = vector.broadcast %cst_11 : f32 to vector<2x128xf32>
      %14 = arith.maximumf %12, %13 : vector<2x128xf32>
      %c0_12 = arith.constant 0 : index
      %c0_13 = arith.constant 0 : index
      %15 = vector.load %arg12[%c0_12, %c0_13] : memref<16x128xf32, #tpu.memory_space<vmem>>, vector<16x128xf32>
      %16 = tpu.concatenate %14, %14 in 0 : vector<2x128xf32>, vector<2x128xf32> -> vector<4x128xf32>
      %17 = vector.extract_strided_slice %15 {offsets = [0, 0], sizes = [4, 128], strides = [1, 1]} : vector<16x128xf32> to vector<4x128xf32>
      %18 = vector.extract_strided_slice %15 {offsets = [4, 0], sizes = [4, 128], strides = [1, 1]} : vector<16x128xf32> to vector<4x128xf32>
      %19 = vector.extract_strided_slice %15 {offsets = [8, 0], sizes = [4, 128], strides = [1, 1]} : vector<16x128xf32> to vector<4x128xf32>
      %20 = vector.extract_strided_slice %15 {offsets = [12, 0], sizes = [4, 128], strides = [1, 1]} : vector<16x128xf32> to vector<4x128xf32>
      %21 = arith.mulf %17, %16 : vector<4x128xf32>
      %cst_14 = arith.constant dense<0.000000e+00> : vector<4xf32>
      %22 = vector.multi_reduction <add>, %21, %cst_14 [1] : vector<4x128xf32> to vector<4xf32>
      %23 = vector.shape_cast %22 : vector<4xf32> to vector<4x1xf32>
      %24 = arith.mulf %18, %16 : vector<4x128xf32>
      %cst_15 = arith.constant dense<0.000000e+00> : vector<4xf32>
      %25 = vector.multi_reduction <add>, %24, %cst_15 [1] : vector<4x128xf32> to vector<4xf32>
      %26 = vector.shape_cast %25 : vector<4xf32> to vector<4x1xf32>
      %27 = arith.mulf %19, %16 : vector<4x128xf32>
      %cst_16 = arith.constant dense<0.000000e+00> : vector<4xf32>
      %28 = vector.multi_reduction <add>, %27, %cst_16 [1] : vector<4x128xf32> to vector<4xf32>
      %29 = vector.shape_cast %28 : vector<4xf32> to vector<4x1xf32>
      %30 = arith.mulf %20, %16 : vector<4x128xf32>
      %cst_17 = arith.constant dense<0.000000e+00> : vector<4xf32>
      %31 = vector.multi_reduction <add>, %30, %cst_17 [1] : vector<4x128xf32> to vector<4xf32>
      %32 = vector.shape_cast %31 : vector<4xf32> to vector<4x1xf32>
      %33 = tpu.concatenate %23, %26, %29, %32 in 1 : vector<4x1xf32>, vector<4x1xf32>, vector<4x1xf32>, vector<4x1xf32> -> vector<4x4xf32>
      %cst_18 = arith.constant dense<0xFF800000> : vector<4xf32>
      %34 = vector.multi_reduction <maximumf>, %33, %cst_18 [1] : vector<4x4xf32> to vector<4xf32>
      %35 = vector.shape_cast %34 : vector<4xf32> to vector<4x1xf32>
      %36 = vector.broadcast %35 : vector<4x1xf32> to vector<4x4xf32>
      %37 = arith.subf %33, %36 : vector<4x4xf32>
      %38 = math.exp %37 : vector<4x4xf32>
      %cst_19 = arith.constant dense<0.000000e+00> : vector<4xf32>
      %39 = vector.multi_reduction <add>, %38, %cst_19 [1] : vector<4x4xf32> to vector<4xf32>
      %40 = vector.shape_cast %39 : vector<4xf32> to vector<4x1xf32>
      %41 = tpu.reciprocal %40 {approx = true} : vector<4x1xf32> -> vector<4x1xf32>
      %42 = vector.broadcast %41 : vector<4x1xf32> to vector<4x4xf32>
      %43 = arith.mulf %38, %42 : vector<4x4xf32>
      %cst_20 = arith.constant dense<0xFF800000> : vector<4xf32>
      %44 = vector.multi_reduction <maximumf>, %43, %cst_20 [1] : vector<4x4xf32> to vector<4xf32>
      %45 = vector.shape_cast %44 : vector<4xf32> to vector<4x1xf32>
      %c0_21 = arith.constant 0 : index
      %c0_22 = arith.constant 0 : index
      %46 = vector.load %arg9[%c0_21, %c0_22] : memref<4x4xf32, #tpu.memory_space<vmem>>, vector<4x4xf32>
      tpu.vector_store %arg9[%c0_21, %c0_22], %43 {strides = array<i32>} : memref<4x4xf32, #tpu.memory_space<vmem>>, vector<4x4xf32>,
      %47 = vector.shape_cast %45 : vector<4x1xf32> to vector<4x1xf32>
      %48 = vector.broadcast %47 : vector<4x1xf32> to vector<4x4xf32>
      %c0_23 = arith.constant 0 : index
      %c0_24 = arith.constant 0 : index
      %49 = vector.load %arg10[%c0_23, %c0_24] : memref<4x4xf32, #tpu.memory_space<vmem>>, vector<4x4xf32>
      tpu.vector_store %arg10[%c0_23, %c0_24], %48 {strides = array<i32>} : memref<4x4xf32, #tpu.memory_space<vmem>>, vector<4x4xf32>,
      %50 = vector.extract_strided_slice %43 {offsets = [0, 0], sizes = [4, 1], strides = [1, 1]} : vector<4x4xf32> to vector<4x1xf32>
      %51 = vector.broadcast %50 : vector<4x1xf32> to vector<4x128xf32>
      %52 = arith.mulf %51, %17 : vector<4x128xf32>
      %53 = vector.extract_strided_slice %43 {offsets = [0, 1], sizes = [4, 1], strides = [1, 1]} : vector<4x4xf32> to vector<4x1xf32>
      %54 = vector.broadcast %53 : vector<4x1xf32> to vector<4x128xf32>
      %55 = arith.mulf %54, %18 : vector<4x128xf32>
      %56 = arith.addf %52, %55 : vector<4x128xf32>
      %57 = vector.extract_strided_slice %43 {offsets = [0, 2], sizes = [4, 1], strides = [1, 1]} : vector<4x4xf32> to vector<4x1xf32>
      %58 = vector.broadcast %57 : vector<4x1xf32> to vector<4x128xf32>
      %59 = arith.mulf %58, %19 : vector<4x128xf32>
      %60 = arith.addf %56, %59 : vector<4x128xf32>
      %61 = vector.extract_strided_slice %43 {offsets = [0, 3], sizes = [4, 1], strides = [1, 1]} : vector<4x4xf32> to vector<4x1xf32>
      %62 = vector.broadcast %61 : vector<4x1xf32> to vector<4x128xf32>
      %63 = arith.mulf %62, %20 : vector<4x128xf32>
      %64 = arith.addf %60, %63 : vector<4x128xf32>
      %65 = vector.extract_strided_slice %64 {offsets = [0, 0], sizes = [2, 128], strides = [1, 1]} : vector<4x128xf32> to vector<2x128xf32>
      %66 = vector.extract_strided_slice %64 {offsets = [2, 0], sizes = [2, 128], strides = [1, 1]} : vector<4x128xf32> to vector<2x128xf32>
      %67 = arith.addf %65, %66 : vector<2x128xf32>
      %c0_25 = arith.constant 0 : index
      %c0_26 = arith.constant 0 : index
      %68 = vector.load %arg5[%c0_25, %c0_26] : memref<1x128xf32, #tpu.memory_space<vmem>>, vector<1x128xf32>
      %69 = vector.broadcast %68 : vector<1x128xf32> to vector<2x128xf32>
      %70 = arith.mulf %67, %69 : vector<2x128xf32>
      %cst_27 = arith.constant dense<0.000000e+00> : vector<2xf32>
      %71 = vector.multi_reduction <add>, %70, %cst_27 [1] : vector<2x128xf32> to vector<2xf32>
      %72 = vector.shape_cast %71 : vector<2xf32> to vector<2x1xf32>
      %cst_28 = arith.constant 5.000000e-01 : f32
      %73 = vector.broadcast %cst_28 : f32 to vector<2x1xf32>
      %74 = arith.mulf %72, %73 : vector<2x1xf32>
      %c0_29 = arith.constant 0 : index
      %c0_30 = arith.constant 0 : index
      %75 = vector.load %arg8[%c0_29, %c0_30] : memref<2x1xf32, #tpu.memory_space<vmem>>, vector<2x1xf32>
      tpu.vector_store %arg8[%c0_29, %c0_30], %74 {strides = array<i32>} : memref<2x1xf32, #tpu.memory_space<vmem>>, vector<2x1xf32>,
      %c0_31 = arith.constant 0 : index
      %c0_32 = arith.constant 0 : index
      %76 = vector.load %arg6[%c0_31, %c0_32] : memref<2x1xf32, #tpu.memory_space<vmem>>, vector<2x1xf32>
      %cst_33 = arith.constant 0.000000e+00 : f32
      %77 = vector.broadcast %cst_33 : f32 to vector<2x1xf32>
      %78 = arith.maximumf %74, %77 : vector<2x1xf32>
      %79 = arith.mulf %74, %76 : vector<2x1xf32>
      %80 = arith.subf %78, %79 : vector<2x1xf32>
      %81 = math.absf %74 : vector<2x1xf32>
      %cst_34 = arith.constant 0.000000e+00 : f32
      %82 = vector.broadcast %cst_34 : f32 to vector<2x1xf32>
      %83 = arith.subf %82, %81 : vector<2x1xf32>
      %84 = math.exp %83 : vector<2x1xf32>
      %cst_35 = arith.constant 1.000000e+00 : f32
      %85 = vector.broadcast %cst_35 : f32 to vector<2x1xf32>
      %86 = arith.addf %85, %84 : vector<2x1xf32>
      %87 = math.log %86 : vector<2x1xf32>
      %88 = arith.addf %80, %87 : vector<2x1xf32>
      %cst_36 = arith.constant dense<0.000000e+00> : vector<1xf32>
      %89 = vector.multi_reduction <add>, %88, %cst_36 [0] : vector<2x1xf32> to vector<1xf32>
      %90 = vector.shape_cast %89 : vector<1xf32> to vector<1x1xf32>
      %cst_37 = arith.constant 5.000000e-01 : f32
      %91 = vector.broadcast %cst_37 : f32 to vector<1x1xf32>
      %92 = arith.mulf %90, %91 : vector<1x1xf32>
      %93 = vector.broadcast %45 : vector<4x1xf32> to vector<4x4xf32>
      %94 = arith.subf %93, %43 : vector<4x4xf32>
      %95 = math.absf %94 : vector<4x4xf32>
      %cst_38 = arith.constant 2.000000e-01 : f32
      %96 = vector.broadcast %cst_38 : f32 to vector<4x4xf32>
      %97 = arith.addf %95, %96 : vector<4x4xf32>
      %cst_39 = arith.constant 2.000000e-01 : f32
      %98 = vector.broadcast %cst_39 : f32 to vector<4x4xf32>
      %99 = arith.divf %98, %97 : vector<4x4xf32>
      %cst_40 = arith.constant dense<0.000000e+00> : vector<4xf32>
      %100 = vector.multi_reduction <add>, %99, %cst_40 [1] : vector<4x4xf32> to vector<4xf32>
      %101 = vector.shape_cast %100 : vector<4xf32> to vector<4x1xf32>
      %cst_41 = arith.constant dense<0.000000e+00> : vector<1xf32>
      %102 = vector.multi_reduction <add>, %101, %cst_41 [0] : vector<4x1xf32> to vector<1xf32>
      %103 = vector.shape_cast %102 : vector<1xf32> to vector<1x1xf32>
      %cst_42 = arith.constant 6.250000e-02 : f32
      %104 = vector.broadcast %cst_42 : f32 to vector<1x1xf32>
      %105 = arith.mulf %103, %104 : vector<1x1xf32>
      %cst_43 = arith.constant 5.000000e-01 : f32
      %106 = vector.broadcast %cst_43 : f32 to vector<1x1xf32>
      %107 = arith.mulf %106, %105 : vector<1x1xf32>
      %108 = arith.addf %107, %92 : vector<1x1xf32>
      %c0_44 = arith.constant 0 : index
      %c0_45 = arith.constant 0 : index
      %109 = vector.load %arg7[%c0_44, %c0_45] : memref<1x1xf32, #tpu.memory_space<vmem>>, vector<1x1xf32>
      tpu.vector_store %arg7[%c0_44, %c0_45], %108 {strides = array<i32>} : memref<1x1xf32, #tpu.memory_space<vmem>>, vector<1x1xf32>,
    } else {
    }
    return
  }
  func.func @transform_0(%arg0: i32) -> (i32, i32) {
    %c0_i32 = arith.constant 0 : i32
    %c0_i32_0 = arith.constant 0 : i32
    return %c0_i32, %arg0 : i32, i32
  }
  func.func @transform_1(%arg0: i32) -> (i32, i32) {
    %c0_i32 = arith.constant 0 : i32
    %c0_i32_0 = arith.constant 0 : i32
    return %arg0, %c0_i32 : i32, i32
  }
  func.func @transform_2(%arg0: i32) -> (i32, i32) {
    %c0_i32 = arith.constant 0 : i32
    %c0_i32_0 = arith.constant 0 : i32
    %c0_i32_1 = arith.constant 0 : i32
    return %c0_i32, %c0_i32_0 : i32, i32
  }
  func.func @transform_3(%arg0: i32) -> (i32, i32) {
    %c0_i32 = arith.constant 0 : i32
    %c0_i32_0 = arith.constant 0 : i32
    %c0_i32_1 = arith.constant 0 : i32
    return %c0_i32, %c0_i32_0 : i32, i32
  }
  func.func @transform_4(%arg0: i32) -> (i32, i32) {
    %c0_i32 = arith.constant 0 : i32
    %c0_i32_0 = arith.constant 0 : i32
    %c0_i32_1 = arith.constant 0 : i32
    return %c0_i32, %c0_i32_0 : i32, i32
  }
  func.func @transform_5(%arg0: i32) -> (i32, i32) {
    %c0_i32 = arith.constant 0 : i32
    %c0_i32_0 = arith.constant 0 : i32
    %c0_i32_1 = arith.constant 0 : i32
    return %c0_i32, %c0_i32_0 : i32, i32
  }
  func.func @transform_6(%arg0: i32) -> (i32, i32) {
    %c0_i32 = arith.constant 0 : i32
    %c0_i32_0 = arith.constant 0 : i32
    %c0_i32_1 = arith.constant 0 : i32
    return %c0_i32, %c0_i32_0 : i32, i32
  }
  func.func @transform_7(%arg0: i32) -> (i32, i32) {
    %c0_i32 = arith.constant 0 : i32
    %c0_i32_0 = arith.constant 0 : i32
    %c0_i32_1 = arith.constant 0 : i32
    return %c0_i32, %c0_i32_0 : i32, i32
  }
  func.func @transform_8(%arg0: i32) -> (i32, i32) {
    %c0_i32 = arith.constant 0 : i32
    %c0_i32_0 = arith.constant 0 : i32
    %c0_i32_1 = arith.constant 0 : i32
    return %c0_i32, %c0_i32_0 : i32, i32
  }
  func.func @transform_9(%arg0: i32) -> (i32, i32) {
    %c0_i32 = arith.constant 0 : i32
    %c0_i32_0 = arith.constant 0 : i32
    %c0_i32_1 = arith.constant 0 : i32
    return %c0_i32, %c0_i32_0 : i32, i32
  }
}

</mosaic_0001>

<bundles_post_ra>
// kernel: tpu_custom_call.1
= control target key start
LH: loop header
LB: loop body
LE: loop exit
PB: predicated region body
PF: predicated region fallthrough
CT: control target
= control target key end

     0   :  { %s5858_s0 = inlined_call_operand.hbm [shape: bf16[2,12288], index: 0, kind: input, shape index: {}]   ;;  %s5859_s1 = inlined_call_operand.hbm [shape: bf16[12288,128], index: 1, kind: input, shape index: {}]   ;;  %s5860_s2 = inlined_call_operand.hbm [shape: bf16[16,192], index: 2, kind: input, shape index: {}]   ;;  %s5861_s3 = inlined_call_operand.hbm [shape: bf16[192,128], index: 3, kind: input, shape index: {}]   ;;  %s5862_s4 = inlined_call_operand.hbm [shape: f32[1,128], index: 4, kind: input, shape index: {}]   ;;  %s5863_s5 = inlined_call_operand.vmem [shape: f32[2,1], index: 5, kind: input, shape index: {}]   ;;  %s5864_s6 = inlined_call_operand.hbm [shape: f32[1,1], index: 6, kind: output, shape index: {0}]   ;;  %s5865_s7 = inlined_call_operand.vmem [shape: f32[2,1], index: 7, kind: output, shape index: {1}]   ;;  %s5866_s8 = inlined_call_operand.hbm [shape: f32[4,4], index: 8, kind: output, shape index: {2}]   ;;  %s5867_s9 = inlined_call_operand.hbm [shape: f32[4,4], index: 9, kind: output, shape index: {3}]  }
   0x1   :  { %5874 = sst [smem:[#allocation23_spill]] %s5860_s2 }
   0x2   :  { %5875 = sst [smem:[#allocation24_spill]] %s5867_s9 }
   0x3   :  { %15 = vsyncpa [#allocation5], 0 }
   0x4   :  { %17 = vsyncpa [#allocation5 + $0x1], 0 }
   0x5   :  { %18 = vsyncpa [#allocation8], 0 }
   0x6   :  { %20 = vsyncpa [#allocation8 + $0x1], 0 }
   0x7   :  { %21 = vsyncpa [#allocation11], 0 }
   0x8   :  { %22 = vsyncpa [#allocation6], 0 }
   0x9   :  { %23 = vsyncpa [#allocation15], 0  ;;  %s5206_s30 = smov 0   ;;  %s5208_s10 = smov 0  }
   0xa   :  { %s5210_s11 = smov 0   ;;  %s5212_s12 = smov 0  }
   0xb LB: > { %s5225_s13 = sadd.s32 4294967295, %s5135_s12   ;;  %p49_p0 = scmp.ne.s32.totalorder %s5127_s10, %s5123_s30  ;;  %s5135_s12 = sphi %s5212_s12, %s5895_s12   ;;  %s5131_s11 = sphi %s5210_s11, %s5894_s11   ;;  %s5127_s10 = sphi %s5208_s10, %s5893_s10   ;;  %s5123_s30 = sphi %s5206_s30, %s5892_s30  }
   0xc   : > { %p5868_p1 = scmp.eq.s32.totalorder %s5225_s13, 0  ;;  %p3809_p2 = scmp.ge.s32.totalorder %s5135_s12, 1 }
   0xd   : > { %p254_p3 = scmp.lt.s32.totalorder %s5135_s12, 4  ;;  %s5137_s16 = smov [#allocation9]  }
   0xe   : > { %p5234_p5 = por %p5868_p1, %p49_p0  ;;  %s266_s17 = sshll.u32 %s5137_s16, 4  ;;  %s267_s17 = int_to_ptr.vmem [resolvable:$true] %s266_s17 }
   0xf   : > { %p5238_p6 = pnand %p3809_p2, %p254_p3  ;;  %s5138_s19 = smov [#allocation10]  }
  0x10   : > { %s5876_s14 = scalar_select %p5234_p5, 1, 0 }
  0x11   : > { %s5877_s15 = scalar_select %p5238_p6, 1, 0 }
  0x12   : > { %p4490_p7 = pneg %p5238_p6  ;;  %s279_s20 = sshll.u32 %s5138_s19, 4  ;;  %s5250_s20 = int_to_ptr.vmem [resolvable:$true] %s279_s20 }
  0x13   : > { %s5879_s2 = sld [smem:[#allocation23_spill]] }
  0x14   : > { %p5246_p8 = pnand %p4490_p7, %p5868_p1 }
  0x16   : > { %p5260_p10 = pneg %p5246_p8 }
  0x19   : > { %s4859_s23 = scalar_lea.hbm %s5879_s2, 256 }
  0x1a   : > { %p4860_p9 = scmp.ne.s32.totalorder %s5879_s2, %s4859_s23  ;;  %p4866_p13 = scmp.lt.u32.totalorder %s4859_s23, %s5879_s2 }
  0x1c   : > { %p4862_p11 = pnand %p5260_p10, %p4860_p9 }
  0x1e   : > { %p4863_p12 = pneg %p4862_p11 }
  0x20   : > { %p4868_p0 = pnand %p4866_p13, %p4863_p12 }
  0x22   : > { %4871 = shalt.err (!%p4868_p0)
}
  0x23   : > { %s4872_s29 = scalar_lea.vmem %s267_s17, 256  ;;  %p4880_p4 = scmp.lt.s32.totalorder %s267_s17, %s267_s17 }
  0x24   : > { %p4873_p2 = scmp.ne.s32.totalorder %s267_s17, %s4872_s29  ;;  %p4881_p1 = scmp.lt.s32.totalorder %s4872_s29, %s4872_s29 }
  0x26   : > { %p4875_p3 = pnand %p4873_p2, %p5260_p10  ;;  %p4882_p5 = por %p4881_p1, %p4880_p4 }
  0x28   : > { %p4876_p7 = pneg %p4875_p3 }
  0x2a   : > { %p4883_p6 = pnand %p4882_p5, %p4876_p7 }
  0x2c   : > { %4886 = shalt.err (!%p4883_p6)
}
  0x2d   : > { %s5139_s30 = smov 128   ;;  %s5140_s16 = smov 8  }
  0x2e   : > { %4493 = dma.hbm_to_vmem [thread:$0]  (!%p5246_p8), %s5879_s2, 256, %s267_s17, [#allocation8], %s5139_s30, %s5139_s30, %s5140_s16  }
  0x2f   : > { %s4887_s24 = scalar_lea.hbm %s5861_s3, 1536 }
  0x30   : > { %p4888_p9 = scmp.ne.s32.totalorder %s5861_s3, %s4887_s24  ;;  %p4894_p5 = scmp.lt.u32.totalorder %s4887_s24, %s5861_s3 }
  0x32   : > { %p4890_p1 = pnand %p4888_p9, %p5260_p10 }
  0x34   : > { %p4891_p4 = pneg %p4890_p1 }
  0x36   : > { %p4896_p6 = pnand %p4894_p5, %p4891_p4 }
  0x38   : > { %4899 = shalt.err (!%p4896_p6)
}
  0x39   : > { %s4900_s17 = scalar_lea.vmem %s5250_s20, 1536  ;;  %p4908_p0 = scmp.lt.s32.totalorder %s5250_s20, %s5250_s20 }
  0x3a   : > { %p4901_p11 = scmp.ne.s32.totalorder %s5250_s20, %s4900_s17  ;;  %p4909_p2 = scmp.lt.s32.totalorder %s4900_s17, %s4900_s17 }
  0x3c   : > { %p4903_p12 = pnand %p4901_p11, %p5260_p10  ;;  %p4910_p3 = por %p4909_p2, %p4908_p0 }
  0x3e   : > { %p4904_p13 = pneg %p4903_p12 }
  0x40   : > { %p4911_p7 = pnand %p4910_p3, %p4904_p13 }
  0x42   : > { %4914 = shalt.err (!%p4911_p7)
}
  0x43   : > { %s5872_s30 = smov 64   ;;  %s5873_s16 = smov 4  }
  0x44   : > { %4496 = dma.hbm_to_vmem [thread:$0]  (!%p5246_p8), %s5861_s3, 1536, %s5250_s20, [#allocation11], %s5872_s30, %s5872_s30, %s5873_s16  }
  0x45   : > { %s5143_s22 = smov [#allocation12]   ;;  %s5303_s24 = sadd.s32 1, %s5135_s12  }
  0x46   : > { %s293_s23 = sshll.u32 %s5143_s22, 4  ;;  %s4915_s28 = scalar_lea.hbm %s5862_s4, 16  ;;  %s294_s23 = int_to_ptr.vmem [resolvable:$true] %s293_s23 }
  0x47   : > { %p4916_p9 = scmp.ne.s32.totalorder %s5862_s4, %s4915_s28  ;;  %p4922_p5 = scmp.lt.u32.totalorder %s4915_s28, %s5862_s4 }
  0x49   : > { %p4918_p1 = pnand %p4916_p9, %p5260_p10 }
  0x4b   : > { %p4919_p4 = pneg %p4918_p1 }
  0x4d   : > { %p4924_p6 = pnand %p4922_p5, %p4919_p4 }
  0x4f   : > { %4927 = shalt.err (!%p4924_p6)
}
  0x50   : > { %s4928_s20 = scalar_lea.vmem %s294_s23, 16  ;;  %s4935_s19 = scalar_lea.vmem %s294_s23, 32 }
  0x51   : > { %p4929_p11 = scmp.ne.s32.totalorder %s294_s23, %s4928_s20  ;;  %p4936_p0 = scmp.lt.s32.totalorder %s294_s23, %s294_s23 }
  0x52   : > { %p4937_p2 = scmp.lt.s32.totalorder %s4935_s19, %s4928_s20 }
  0x53   : > { %p4931_p12 = pnand %p4929_p11, %p5260_p10 }
  0x54   : > { %p4938_p3 = por %p4937_p2, %p4936_p0 }
  0x55   : > { %p4932_p13 = pneg %p4931_p12 }
  0x57   : > { %p4939_p7 = pnand %p4938_p3, %p4932_p13 }
  0x59   : > { %4942 = shalt.err (!%p4939_p7)
}
  0x5a   : > { %4499 = dma.hbm_to_vmem [thread:$0]  (!%p5246_p8), %s5862_s4, 16, %s294_s23, [#allocation11]  }
  0x5b   : > { %s33_s2 = ssub.s32 %s5135_s12, %s5303_s24  ;;  %s36_s9 = sadd.s32 1, %s5131_s11 }
  0x5c   : > { %p34_p10 = scmp.eq.s32.totalorder %s33_s2, 0  ;;  %p43_p9 = scmp.ne.s32.totalorder %s5131_s11, %s5127_s10 }
  0x5d   : > { %p44_p1 = scmp.eq.s32.totalorder %s5135_s12, 0  ;;  %p4510_p4 = scmp.lt.s32.totalorder %s5135_s12, 3 }
  0x5e   : > { %s5331_s18 = scalar_select %p34_p10, %s5131_s11, %s36_s9  }
  0x5f   : > { %p45_p5 = por %p44_p1, %p43_p9  ;;  %s5334_s26 = sand.u32 1, %s5131_s11  }
  0x60   : > { %s3814_s25 = sshll.u32 %s5334_s26, 5  ;;  %s4108_s27 = sshll.u32 %s5135_s12, 9 }
  0x61   : > { %s5341_s23 = scalar_lea.hbm %s5858_s0, %s4108_s27  ;;  %s311_s17 = scalar_lea.vmem [#allocation4], %s3814_s25 }
  0x62   : > { %s319_s20 = sshll.u32 %s311_s17, 4  ;;  %p5345_p8 = pnand %p4510_p4, %p45_p5  ;;  %s5343_s20 = int_to_ptr.vmem [resolvable:$true] %s319_s20 }
  0x63   : > { %s3817_s21 = sshll.u32 %s5334_s26, 11  ;;  %s326_s22 = sand.u32 1, %s5135_s12  }
  0x64   : > { %s308_s2 = scalar_lea.sflag [#allocation5], %s5334_s26  ;;  %s4943_s9 = scalar_lea.hbm %s5341_s23, 512 }
  0x65   : > { %p4944_p6 = scmp.ne.s32.totalorder %s5341_s23, %s4943_s9  ;;  %p4945_p11 = pneg %p5345_p8 }
  0x66   : > { %s4948_s28 = scalar_lea.hbm %s5858_s0, 1536  ;;  %p4949_p0 = scmp.lt.u32.totalorder %s5341_s23, %s5858_s0 }
  0x67   : > { %p4946_p12 = pnand %p4945_p11, %p4944_p6  ;;  %p4950_p2 = scmp.lt.u32.totalorder %s4948_s28, %s4943_s9 }
  0x68   : > { %p4952_p7 = scmp.lt.u32.totalorder %s4943_s9, %s5341_s23 }
  0x69   : > { %p4947_p13 = pneg %p4946_p12  ;;  %p4951_p3 = por %p4950_p2, %p4949_p0 }
  0x6b   : > { %p4953_p10 = por %p4952_p7, %p4951_p3 }
  0x6d   : > { %p4954_p9 = pnand %p4953_p10, %p4947_p13 }
  0x6f   : > { %4957 = shalt.err (!%p4954_p9)
}
  0x70   : > { %s4958_s30 = scalar_lea.vmem %s5343_s20, 512  ;;  %s5144_s25 = smov [#allocation4]  }
  0x71   : > { %p4959_p1 = scmp.ne.s32.totalorder %s5343_s20, %s4958_s30  ;;  %s4963_s27 = sshll.u32 %s5144_s25, 4  ;;  %s4964_s27 = int_to_ptr.vmem [resolvable:$false] %s4963_s27 }
  0x72   : > { %s4965_s29 = scalar_lea.vmem %s4964_s27, 1024  ;;  %p4966_p6 = scmp.lt.s32.totalorder %s5343_s20, %s4964_s27 }
  0x73   : > { %p4961_p4 = pnand %p4959_p1, %p4945_p11  ;;  %p4967_p12 = scmp.lt.s32.totalorder %s4965_s29, %s4958_s30 }
  0x75   : > { %p4962_p5 = pneg %p4961_p4  ;;  %p4968_p0 = por %p4967_p12, %p4966_p6 }
  0x77   : > { %p4969_p2 = pnand %p4968_p0, %p4962_p5 }
  0x79   : > { %4972 = shalt.err (!%p4969_p2)
}
  0x7a   : > { %4503 = dma.hbm_to_vmem [thread:$0]  (!%p5345_p8), %s5341_s23, 512, %s5343_s20, %s308_s2  }
  0x7b   : > { %s330_s9 = scalar_lea.vmem [#allocation7], %s3817_s21  ;;  %s4109_s17 = sshll.u32 %s5135_s12, 15 }
  0x7c   : > { %s337_s28 = sshll.u32 %s330_s9, 4  ;;  %s5385_s27 = scalar_lea.hbm %s5859_s1, %s4109_s17  ;;  %s5379_s28 = int_to_ptr.vmem [resolvable:$true] %s337_s28 }
  0x7d   : > { %s5389_s29 = scalar_lea.sflag [#allocation8], %s326_s22  ;;  %s4973_s16 = scalar_lea.hbm %s5385_s27, 32768 }
  0x7e   : > { %p4974_p13 = scmp.ne.s32.totalorder %s5385_s27, %s4973_s16  ;;  %s4978_s20 = scalar_lea.hbm %s5859_s1, 98304 }
  0x7f   : > { %p4979_p10 = scmp.lt.u32.totalorder %s5385_s27, %s5859_s1  ;;  %p4980_p9 = scmp.lt.u32.totalorder %s4978_s20, %s4973_s16 }
  0x80   : > { %p4976_p3 = pnand %p4974_p13, %p4945_p11  ;;  %p4982_p4 = scmp.lt.u32.totalorder %s4973_s16, %s5385_s27 }
  0x81   : > { %p4981_p1 = por %p4980_p9, %p4979_p10 }
  0x82   : > { %p4977_p7 = pneg %p4976_p3 }
  0x83   : > { %p4983_p5 = por %p4982_p4, %p4981_p1 }
  0x85   : > { %p4984_p6 = pnand %p4983_p5, %p4977_p7 }
  0x87   : > { %4987 = shalt.err (!%p4984_p6)
}
  0x88   : > { %s4988_s12 = scalar_lea.vmem %s5379_s28, 32768  ;;  %s5145_s22 = smov [#allocation7]  }
  0x89   : > { %p4989_p12 = scmp.ne.s32.totalorder %s5379_s28, %s4988_s12  ;;  %s4993_s9 = sshll.u32 %s5145_s22, 4  ;;  %s4994_s9 = int_to_ptr.vmem [resolvable:$false] %s4993_s9 }
  0x8a   : > { %s4995_s17 = scalar_lea.vmem %s4994_s9, 65536  ;;  %p4996_p13 = scmp.lt.s32.totalorder %s5379_s28, %s4994_s9 }
  0x8b   : > { %p4991_p0 = pnand %p4989_p12, %p4945_p11  ;;  %p4997_p3 = scmp.lt.s32.totalorder %s4995_s17, %s4988_s12 }
  0x8d   : > { %p4992_p2 = pneg %p4991_p0  ;;  %p4998_p10 = por %p4997_p3, %p4996_p13 }
  0x8f   : > { %p4999_p9 = pnand %p4998_p10, %p4992_p2 }
  0x91   : > { %5002 = shalt.err (!%p4999_p9)
}
  0x92   : > { %s5882_s16 = smov 4   ;;  %s5883_s25 = smov 64  }
  0x93   : > { %4506 = dma.hbm_to_vmem [thread:$0]  (!%p5345_p8), %s5385_s27, 32768, %s5379_s28, %s5389_s29, %s5883_s25, %s5883_s25, %s5882_s16  }
  0x94   : > { %p5884_p11 = scmp.ne.s32.totalorder %s5877_s15, 0 }
  0x95   : > { %s351_s30 = sand.u32 (!%p5884_p11), 1, %s5127_s10   ;;  %p5885_p7 = scmp.ne.s32.totalorder (!%p5884_p11), %s5876_s14, 0 }
  0x96   : > { %349 = sbr.rel (%p5884_p11) target bundleno = 1840 (0x730), region = 44  ;;  %s3821_s26 = sshll.u32 (!%p5884_p11), %s351_s30, 5 }
  0x97   : > { %s352_s23 = scalar_lea.sflag (!%p5884_p11), [#allocation5], %s351_s30  ;;  %s5421_s20 = scalar_lea.vmem (!%p5884_p11), [#allocation4], %s3821_s26 }
  0x9d   : > { %5098 = dma.done.wait (%p5885_p7), %s352_s23, 512  }
  0x9e   : > { %5100 = vsyncadd (%p5885_p7), %s352_s23, 4294966784  ;;  %s360_s19 = sand.u32 1, %s5225_s13   ;;  %s3822_s21 = sshll.u32 %s351_s30, 11 }
  0x9f   : > { %s361_s28 = scalar_lea.sflag [#allocation8], %s360_s19  ;;  %s5428_s27 = scalar_lea.vmem [#allocation7], %s3822_s21 }
  0xa0   : > { %5102 = dma.done.wait (%p5885_p7), %s361_s28, 32768  }
  0xa1   : > { %5104 = vsyncadd (%p5885_p7), %s361_s28, 4294934528  ;;  %p5886_p8 = scmp.eq.s32.totalorder %s5225_s13, 0 }
  0xa3   : > { %5106 = dma.done.wait (%p5886_p8), [#allocation8], 256   ;;  %p5887_p1 = pmov %p5886_p8 }
  0xa5   : > { %5108 = vsyncadd (%p5887_p1), [#allocation8], 4294967040  ;;  %p5888_p4 = pmov %p5887_p1 }
  0xa6   : > { %p5889_p5 = pmov %p5887_p1 }
  0xa7   : > { %5110 = dma.done.wait (%p5888_p4), [#allocation11], 1552  }
  0xa8   : > { %5112 = vsyncadd (%p5889_p5), [#allocation11], 4294965744  ;;  %p5890_p6 = scmp.ne.s32.totalorder %s5225_s13, 0 }
  0xa9   : > { %v5146_v0 = vmov (!%p5890_p6), 0.0   ;;  %v5147_v1 = vmov (!%p5890_p6), 0   ;;  %v4569_v2 = vld [vmem:[#allocation10] sm:$0xff] (!%p5890_p6)   ;;  %v4570_v3 = vld [vmem:[#allocation10 + $0x8] sm:$0xff] (!%p5890_p6)   ;;  %v4571_v4 = vld [vmem:[#allocation10 + $0x10] sm:$0xff] (!%p5890_p6)   ;;  %vm526_vm0 = vcmask (!%p5890_p6), 523264  }
  0xaa   : > { %417 = sbr.rel (%p5890_p6) target bundleno = 433 (0x1b1), region = 68  ;;  %418 = vst [vmem:[#allocation2] sm:$0x3] (!%p5890_p6), %v5146_v0  ;;  %530 = vmatprep.subr.bf16.mxu0 (!%p5890_p6), %v5147_v1  ;;  %v4572_v5 = vld [vmem:[#allocation10 + $0x18] sm:$0xff] (!%p5890_p6)   ;;  %v4573_v7 = vld [vmem:[#allocation10 + $0x20] sm:$0xff] (!%p5890_p6)   ;;  %v4574_v8 = vld [vmem:[#allocation10 + $0x28] sm:$0xff] (!%p5890_p6)  }
  0xab   : > { %531 = vmatpush1.bf16.msra.mxu0 (!%p5890_p6), %v4569_v2  ;;  %v4583_v6 = vld [vmem:[#allocation9 + $0x4] ss:$8 sps:$4 sm:$0xff] (!%p5890_p6)   ;;  %v4577_v11 = vld [vmem:[#allocation10 + $0x40] sm:$0xff] (!%p5890_p6)   ;;  %v4578_v12 = vld [vmem:[#allocation10 + $0x48] sm:$0xff] (!%p5890_p6)  }
  0xac   : > { %532 = vmatprep.subr.bf16.mxu0 (!%p5890_p6), %v5147_v1  ;;  %3841 = vmatprep.mubr.msk.bf16.mxu0 (!%p5890_p6), %vm526_vm0, %v4583_v6  ;;  %v4575_v9 = vld [vmem:[#allocation10 + $0x30] sm:$0xff] (!%p5890_p6)   ;;  %v4576_v10 = vld [vmem:[#allocation10 + $0x38] sm:$0xff] (!%p5890_p6)  }
  0xad   : > { %v4579_v13 = vld [vmem:[#allocation10 + $0x50] sm:$0xff] (!%p5890_p6)   ;;  %v4580_v14 = vld [vmem:[#allocation10 + $0x58] sm:$0xff] (!%p5890_p6)  }
  0xae   : > { %v4581_v15 = vld [vmem:[#allocation9] ss:$8 sps:$4 sm:$0xff] (!%p5890_p6)  }
  0xaf   : > { %533 = vmatpush1.bf16.msra.mxu0 (!%p5890_p6), %v4570_v3 }
  0xb0   : > { %534 = vmatprep.subr.bf16.mxu0 (!%p5890_p6), %v5147_v1 }
  0xb3   : > { %535 = vmatpush1.bf16.msra.mxu0 %v4571_v4 }
  0xb4   : > { %536 = vmatprep.subr.bf16.mxu0 %v5147_v1 }
  0xb7   : > { %537 = vmatpush1.bf16.msra.mxu0 %v4572_v5 }
  0xb8   : > { %538 = vmatprep.subr.bf16.mxu0 %v5147_v1 }
  0xbb   : > { %539 = vmatpush1.bf16.msra.mxu0 %v4573_v7 }
  0xbc   : > { %540 = vmatprep.subr.bf16.mxu0 %v5147_v1 }
  0xbf   : > { %541 = vmatpush1.bf16.msra.mxu0 %v4574_v8 }
  0xc0   : > { %542 = vmatprep.subr.bf16.mxu0 %v5147_v1 }
  0xc3   : > { %543 = vmatpush1.bf16.msra.mxu0 %v4575_v9 }
  0xc4   : > { %544 = vmatprep.subr.bf16.mxu0 %v5147_v1 }
  0xc7   : > { %545 = vmatpush1.bf16.msra.mxu0 %v4576_v10 }
  0xc8   : > { %546 = vmatprep.subr.bf16.mxu0 %v5147_v1 }
  0xcb   : > { %547 = vmatpush1.bf16.msra.mxu0 %v4577_v11 }
  0xcc   : > { %548 = vmatprep.subr.bf16.mxu0 %v5147_v1 }
  0xcf   : > { %549 = vmatpush1.bf16.msra.mxu0 %v4578_v12 }
  0xd0   : > { %550 = vmatprep.subr.bf16.mxu0 %v5147_v1 }
  0xd3   : > { %551 = vmatpush1.bf16.msra.mxu0 %v4579_v13 }
  0xd4   : > { %552 = vmatprep.subr.bf16.mxu0 %v5147_v1 }
  0xd7   : > { %553 = vmatpush1.bf16.msra.mxu0 %v4580_v14 }
  0xda   : > { %563 = vmatmul.mubr.bf16.vlgmr.msra.gmra.mrb[0].mxu0 %v4581_v15 }
 0x1ad   : > { %v564_v16 = vpop.f32.mrb[0].mxu0 }
 0x1ae   : > { %571 = vst [vmem:[#allocation3] sm:$0xff] %v564_v16  ;;  %v566_v17 = vpop.f32.mrb[1].mxu0 }
 0x1af   : > { %v567_v18 = vpop.f32.mrb[2].mxu0 }
 0x1b0   : > { %572 = vst [vmem:[#allocation3 + $0x8] sm:$0xff] %v567_v18  ;;  %v569_v19 = vpop.f32.mrb[3].mxu0 }
 0x1b1 PF: > { %v4584_v20 = vld [vmem:[%s5428_s27 + $0x40] sm:$0xff]   ;;  %v4588_v24 = vld [vmem:[%s5428_s27 + $0x48] sm:$0xff]   ;;  %v4592_v28 = vld [vmem:[%s5428_s27 + $0x50] sm:$0xff]   ;;  %v1098_v48 = vlaneseq  ;;  %v5148_v56 = vmov 1966171168   ;;  %p4098_p12 = scmp.ne.s32.totalorder %s5225_s13, 2 }
 0x1b2   : > { %v4585_v21 = vld [vmem:[%s5428_s27 + $0xc0] sm:$0xff]   ;;  %4110 = vmatprep.subr.bf16.mxu0 %v4584_v20  ;;  %v4589_v25 = vld [vmem:[%s5428_s27 + $0xc8] sm:$0xff]   ;;  %v4593_v29 = vld [vmem:[%s5428_s27 + $0xd0] sm:$0xff]   ;;  %v1096_v57 = vunpack.c.l.s4 %v5148_v56  ;;  %vm3511_vm1 = vcmask (!%p4098_p12), 1041408   ;;  %vm3522_vm2 = vcmask (!%p4098_p12), 1047556   ;;  %vm3514_vm3 = vcmask (!%p4098_p12), 1043456  }
 0x1b3   : > { %v4586_v22 = vld [vmem:[%s5428_s27] sm:$0xff]   ;;  %4132 = vmatprep.subr.bf16.mxu1 %v4585_v21  ;;  %v4590_v26 = vld [vmem:[%s5428_s27 + $0x8] sm:$0xff]   ;;  %v4594_v30 = vld [vmem:[%s5428_s27 + $0x10] sm:$0xff]   ;;  %v1099_v53 = vshrl.u32 %v1098_v48, 7  ;;  %vm3540_vm4 = vcmask (!%p4098_p12), 7168   ;;  %vm3542_vm5 = vcmask (!%p4098_p12), 15360  }
 0x1b4   : > { %v4587_v23 = vld [vmem:[%s5428_s27 + $0x80] sm:$0xff]   ;;  %4111 = vmatpush3.bf16.msra.mxu0 %v4586_v22  ;;  %v4591_v27 = vld [vmem:[%s5428_s27 + $0x88] sm:$0xff]   ;;  %v4595_v31 = vld [vmem:[%s5428_s27 + $0x90] sm:$0xff]   ;;  %v1097_v60 = vunpack.c.0.s8 %v1096_v57  ;;  %vm3544_vm6 = vcmask (!%p4098_p12), 23552   ;;  %vm3546_vm7 = vcmask (!%p4098_p12), 27648   ;;  %vm3609_vm8 = vcmask (!%p4098_p12), 1024  }
 0x1b5   : > { %4133 = vmatpush3.bf16.msra.mxu1 %v4587_v23  ;;  %4112 = vmatprep.subr.bf16.mxu0 %v4588_v24  ;;  %v4596_v32 = vld [vmem:[%s5428_s27 + $0x58] sm:$0xff]   ;;  %v4600_v36 = vld [vmem:[%s5428_s27 + $0x60] sm:$0xff]   ;;  %v4604_v40 = vld [vmem:[%s5428_s27 + $0x68] sm:$0xff]   ;;  %vm3649_vm9 = vcmask (!%p4098_p12), 0  }
 0x1b6   : > { %4134 = vmatprep.subr.bf16.mxu1 %v4589_v25  ;;  %v4597_v33 = vld [vmem:[%s5428_s27 + $0xd8] sm:$0xff]   ;;  %v4601_v37 = vld [vmem:[%s5428_s27 + $0xe0] sm:$0xff]   ;;  %v4605_v41 = vld [vmem:[%s5428_s27 + $0xe8] sm:$0xff]   ;;  %v5479_v61 = vsub.s32 %v1097_v60, %v1099_v53 }
 0x1b7   : > { %v4598_v34 = vld [vmem:[%s5428_s27 + $0x18] sm:$0xff]   ;;  %v4602_v38 = vld [vmem:[%s5428_s27 + $0x20] sm:$0xff]   ;;  %v4606_v42 = vld [vmem:[%s5428_s27 + $0x28] sm:$0xff]  }
 0x1b8   : > { %4113 = vmatpush3.bf16.msra.mxu0 %v4590_v26  ;;  %v4599_v35 = vld [vmem:[%s5428_s27 + $0x98] sm:$0xff]   ;;  %v4603_v39 = vld [vmem:[%s5428_s27 + $0xa0] sm:$0xff]   ;;  %v4607_v43 = vld [vmem:[%s5428_s27 + $0xa8] sm:$0xff]  }
 0x1b9   : > { %4135 = vmatpush3.bf16.msra.mxu1 %v4591_v27  ;;  %4114 = vmatprep.subr.bf16.mxu0 %v4592_v28  ;;  %v4608_v44 = vld [vmem:[%s5428_s27 + $0x70] sm:$0xff]   ;;  %v4612_v49 = vld [vmem:[%s5428_s27 + $0x78] sm:$0xff]   ;;  %v574_v54 = vld [vmem:[%s5421_s20] sm:$0xff] }
 0x1ba   : > { %4136 = vmatprep.subr.bf16.mxu1 %v4593_v29  ;;  %v4609_v45 = vld [vmem:[%s5428_s27 + $0xf0] sm:$0xff]   ;;  %v4613_v50 = vld [vmem:[%s5428_s27 + $0xf8] sm:$0xff]   ;;  %v4617_v55 = vld [vmem:[%s5428_s27 + $0x140] sm:$0xff]   ;;  %v1094_v59 = vcombine.high %v574_v54, %v574_v54  ;;  %v1101_v62 = vrot.slane %v574_v54, %v5479_v61 }
 0x1bb   : > { %v4610_v46 = vld [vmem:[%s5428_s27 + $0x30] sm:$0xff]   ;;  %v4614_v51 = vld [vmem:[%s5428_s27 + $0x38] sm:$0xff]   ;;  %v4618_v58 = vld [vmem:[%s5428_s27 + $0x1c0] sm:$0xff]  }
 0x1bc   : > { %4115 = vmatpush3.bf16.msra.mxu0 %v4594_v30  ;;  %v4611_v47 = vld [vmem:[%s5428_s27 + $0xb0] sm:$0xff]   ;;  %v4615_v52 = vld [vmem:[%s5428_s27 + $0xb8] sm:$0xff]   ;;  %v5483_v63 = vrot.slane %v1094_v59, %v5479_v61  ;;  %v1109_v0 = vcombine.high %v1101_v62, %v1101_v62  ;;  %v1117_v1 = vrot.slane %v1101_v62, %v5479_v61  ;;  %v4619_v3 = vld [vmem:[%s5428_s27 + $0x100] sm:$0xff]  }
 0x1bd   : > { %4137 = vmatpush3.bf16.msra.mxu1 %v4595_v31  ;;  %4116 = vmatprep.subr.bf16.mxu0 %v4596_v32  ;;  %v4620_v5 = vld [vmem:[%s5428_s27 + $0x180] sm:$0xff]   ;;  %v4621_v8 = vld [vmem:[%s5428_s27 + $0x148] sm:$0xff]   ;;  %v4625_v14 = vld [vmem:[%s5428_s27 + $0x150] sm:$0xff]  }
 0x1be   : > { %4138 = vmatprep.subr.bf16.mxu1 %v4597_v33  ;;  %v1110_v2 = vcombine.high %v5483_v63, %v5483_v63  ;;  %v1131_v4 = vrot.slane %v1109_v0, %v5479_v61  ;;  %v1139_v7 = vcombine.high %v1117_v1, %v1117_v1  ;;  %v4622_v10 = vld [vmem:[%s5428_s27 + $0x1c8] sm:$0xff]   ;;  %v4626_v15 = vld [vmem:[%s5428_s27 + $0x1d0] sm:$0xff]   ;;  %v4629_v18 = vld [vmem:[%s5428_s27 + $0x158] sm:$0xff]  }
 0x1bf   : > { %v4623_v11 = vld [vmem:[%s5428_s27 + $0x108] sm:$0xff]   ;;  %v4627_v16 = vld [vmem:[%s5428_s27 + $0x110] sm:$0xff]   ;;  %v4630_v19 = vld [vmem:[%s5428_s27 + $0x1d8] sm:$0xff]  }
 0x1c0   : > { %4117 = vmatpush3.bf16.msra.mxu0 %v4598_v34  ;;  %v1138_v6 = vrot.slane %v1110_v2, %v5479_v61  ;;  %2890 = vmatprep.mubr.bf16.mxu0 %v1131_v4  ;;  %v1141_v9 = vcombine.high %v1131_v4, %v1131_v4  ;;  %v4624_v13 = vld [vmem:[%s5428_s27 + $0x188] sm:$0xff]   ;;  %v4628_v17 = vld [vmem:[%s5428_s27 + $0x190] sm:$0xff]   ;;  %v4631_v20 = vld [vmem:[%s5428_s27 + $0x118] sm:$0xff]  }
 0x1c1   : > { %4139 = vmatpush3.bf16.msra.mxu1 %v4599_v35  ;;  %4118 = vmatprep.subr.bf16.mxu0 %v4600_v36  ;;  %v4632_v21 = vld [vmem:[%s5428_s27 + $0x198] sm:$0xff]   ;;  %v4633_v22 = vld [vmem:[%s5428_s27 + $0x160] sm:$0xff]   ;;  %v4637_v26 = vld [vmem:[%s5428_s27 + $0x168] sm:$0xff]  }
 0x1c2   : > { %4140 = vmatprep.subr.bf16.mxu1 %v4601_v37  ;;  %v1142_v12 = vcombine.high %v1138_v6, %v1138_v6  ;;  %2930 = vmatprep.mubr.bf16.mxu1 %v1141_v9  ;;  %v4634_v23 = vld [vmem:[%s5428_s27 + $0x1e0] sm:$0xff]   ;;  %v4638_v27 = vld [vmem:[%s5428_s27 + $0x1e8] sm:$0xff]   ;;  %v4641_v30 = vld [vmem:[%s5428_s27 + $0x170] sm:$0xff]  }
 0x1c3   : > { %v4635_v24 = vld [vmem:[%s5428_s27 + $0x120] sm:$0xff]   ;;  %v4639_v28 = vld [vmem:[%s5428_s27 + $0x128] sm:$0xff]   ;;  %v4642_v31 = vld [vmem:[%s5428_s27 + $0x1f0] sm:$0xff]  }
 0x1c4   : > { %4119 = vmatpush3.bf16.msra.mxu0 %v4602_v38  ;;  %v4636_v25 = vld [vmem:[%s5428_s27 + $0x1a0] sm:$0xff]   ;;  %v4640_v29 = vld [vmem:[%s5428_s27 + $0x1a8] sm:$0xff]   ;;  %v4643_v32 = vld [vmem:[%s5428_s27 + $0x130] sm:$0xff]   ;;  %v1124_v38 = vrot.slane %v5483_v63, %v5479_v61 }
 0x1c5   : > { %4141 = vmatpush3.bf16.msra.mxu1 %v4603_v39  ;;  %4120 = vmatprep.subr.bf16.mxu0 %v4604_v40  ;;  %v4644_v33 = vld [vmem:[%s5428_s27 + $0x1b0] sm:$0xff]   ;;  %v4645_v34 = vld [vmem:[%s5428_s27 + $0x178] sm:$0xff]   ;;  %v4649_v39 = vld [vmem:[%s5428_s27 + $0x240] sm:$0xff]  }
 0x1c6   : > { %4142 = vmatprep.subr.bf16.mxu1 %v4605_v41  ;;  %v4646_v35 = vld [vmem:[%s5428_s27 + $0x1f8] sm:$0xff]   ;;  %v4650_v40 = vld [vmem:[%s5428_s27 + $0x2c0] sm:$0xff]   ;;  %v4657_v48 = vld [vmem:[%s5428_s27 + $0x250] sm:$0xff]  }
 0x1c7   : > { %v4647_v36 = vld [vmem:[%s5428_s27 + $0x138] sm:$0xff]   ;;  %v4651_v41 = vld [vmem:[%s5428_s27 + $0x200] sm:$0xff]   ;;  %v4669_v60 = vld [vmem:[%s5428_s27 + $0x268] sm:$0xff]  }
 0x1c8   : > { %4121 = vmatpush3.bf16.msra.mxu0 %v4606_v42  ;;  %v4648_v37 = vld [vmem:[%s5428_s27 + $0x1b8] sm:$0xff]   ;;  %v4652_v42 = vld [vmem:[%s5428_s27 + $0x280] sm:$0xff]   ;;  %v4670_v62 = vld [vmem:[%s5428_s27 + $0x2e8] sm:$0xff]  }
 0x1c9   : > { %4143 = vmatpush3.bf16.msra.mxu1 %v4607_v43  ;;  %4122 = vmatprep.subr.bf16.mxu0 %v4608_v44  ;;  %v1140_v43 = vcombine.high %v1124_v38, %v1124_v38  ;;  %v4653_v44 = vld [vmem:[%s5428_s27 + $0x248] sm:$0xff]   ;;  %v4662_v53 = vld [vmem:[%s5428_s27 + $0x2d8] sm:$0xff]   ;;  %v4665_v56 = vld [vmem:[%s5428_s27 + $0x260] sm:$0xff]  }
 0x1ca   : > { %4144 = vmatprep.subr.bf16.mxu1 %v4609_v45  ;;  %v4654_v45 = vld [vmem:[%s5428_s27 + $0x2c8] sm:$0xff]   ;;  %v4663_v54 = vld [vmem:[%s5428_s27 + $0x218] sm:$0xff]   ;;  %v4666_v57 = vld [vmem:[%s5428_s27 + $0x2e0] sm:$0xff]  }
 0x1cb   : > { %v4668_v59 = vld [vmem:[%s5428_s27 + $0x2a0] sm:$0xff]   ;;  %v4671_v63 = vld [vmem:[%s5428_s27 + $0x228] sm:$0xff]  }
 0x1cc   : > { %4123 = vmatpush3.bf16.msra.mxu0 %v4610_v46  ;;  %v4655_v46 = vld [vmem:[%s5428_s27 + $0x208] sm:$0xff]  }
 0x1cd   : > { %4145 = vmatpush3.bf16.msra.mxu1 %v4611_v47  ;;  %4124 = vmatprep.subr.bf16.mxu0 %v4612_v49  ;;  %v4656_v47 = vld [vmem:[%s5428_s27 + $0x288] sm:$0xff]   ;;  %v4658_v49 = vld [vmem:[%s5428_s27 + $0x2d0] sm:$0xff]  }
 0x1ce   : > { %4146 = vmatprep.subr.bf16.mxu1 %v4613_v50  ;;  %v4659_v50 = vld [vmem:[%s5428_s27 + $0x210] sm:$0xff]   ;;  %v4672_v0 = vld [vmem:[%s5428_s27 + $0x2a8] sm:$0xff]  }
 0x1cf   : > { %v575_v2 = vld [vmem:[%s5421_s20 + $0x8] sm:$0xff] }
 0x1d0   : > { %4125 = vmatpush3.bf16.msra.mxu0 %v4614_v51  ;;  %v4660_v51 = vld [vmem:[%s5428_s27 + $0x290] sm:$0xff]   ;;  %v1150_v4 = vrot.slane %v575_v2, %v5479_v61 }
 0x1d1   : > { %4147 = vmatpush3.bf16.msra.mxu1 %v4615_v52  ;;  %4154 = vmatprep.subr.bf16.mxu0 %v4617_v55  ;;  %v4661_v52 = vld [vmem:[%s5428_s27 + $0x258] sm:$0xff]  }
 0x1d2   : > { %4176 = vmatprep.subr.bf16.mxu1 %v4618_v58  ;;  %v4664_v55 = vld [vmem:[%s5428_s27 + $0x298] sm:$0xff]   ;;  %v4667_v58 = vld [vmem:[%s5428_s27 + $0x220] sm:$0xff]  }
 0x1d3   : > { %2891 = vmatmul.mubr.bf16.vlgmr.msra.gmra.mrb[0].mxu0 %v1117_v1  ;;  %v4673_v1 = vld [vmem:[%s5428_s27 + $0x270] sm:$0xff]  }
 0x1d4   : > { %4155 = vmatpush3.bf16.msra.mxu0 %v4619_v3  ;;  %2931 = vmatmul.mubr.bf16.vlgmr.msra.gmra.mrb[0].mxu1 %v1139_v7  ;;  %v4674_v3 = vld [vmem:[%s5428_s27 + $0x2f0] sm:$0xff]  }
 0x1d5   : > { %4156 = vmatprep.subr.bf16.mxu0 %v4621_v8  ;;  %4177 = vmatpush3.bf16.msra.mxu1 %v4620_v5  ;;  %v1143_v5 = vcombine.high %v575_v2, %v575_v2  ;;  %v4676_v7 = vld [vmem:[%s5428_s27 + $0x2b0] sm:$0xff]   ;;  %v1158_v8 = vcombine.high %v1150_v4, %v1150_v4 }
 0x1d6   : > { %2970 = vmatprep.mubr.bf16.mxu0 %v1138_v6  ;;  %4178 = vmatprep.subr.bf16.mxu1 %v4622_v10  ;;  %v4675_v6 = vld [vmem:[%s5428_s27 + $0x230] sm:$0xff]   ;;  %v4677_v10 = vld [vmem:[%s5428_s27 + $0x278] sm:$0xff]  }
 0x1d7   : > { %3010 = vmatprep.mubr.bf16.mxu1 %v1142_v12  ;;  %v5553_v9 = vrot.slane %v1143_v5, %v5479_v61  ;;  %v1180_v12 = vrot.slane %v1158_v8, %v5479_v61  ;;  %v4724_v2 = vld [vmem:[%s5428_s27 + $0x410] sm:$0xff]   ;;  %v4727_v5 = vld [vmem:[%s5428_s27 + $0x4d8] sm:$0xff]   ;;  %v4730_v8 = vld [vmem:[%s5428_s27 + $0x460] sm:$0xff]  }
 0x1d8   : > { %4157 = vmatpush3.bf16.msra.mxu0 %v4623_v11  ;;  %v4678_v11 = vld [vmem:[%s5428_s27 + $0x2f8] sm:$0xff]  }
 0x1d9   : > { %4158 = vmatprep.subr.bf16.mxu0 %v4625_v14  ;;  %4179 = vmatpush3.bf16.msra.mxu1 %v4624_v13  ;;  %v1159_v13 = vcombine.high %v5553_v9, %v5553_v9  ;;  %v4679_v14 = vld [vmem:[%s5428_s27 + $0x238] sm:$0xff]  }
 0x1da   : > { %4180 = vmatprep.subr.bf16.mxu1 %v4626_v15  ;;  %v4680_v15 = vld [vmem:[%s5428_s27 + $0x2b8] sm:$0xff]  }
 0x1dc   : > { %4159 = vmatpush3.bf16.msra.mxu0 %v4627_v16  ;;  %v1190_v16 = vcombine.high %v1180_v12, %v1180_v12 }
 0x1dd   : > { %4160 = vmatprep.subr.bf16.mxu0 %v4629_v18  ;;  %4181 = vmatpush3.bf16.msra.mxu1 %v4628_v17  ;;  %v1166_v17 = vrot.slane %v1150_v4, %v5479_v61  ;;  %v4681_v18 = vld [vmem:[%s5428_s27 + $0x340] sm:$0xff]   ;;  %v4726_v4 = vld [vmem:[%s5428_s27 + $0x458] sm:$0xff]  }
 0x1de   : > { %4182 = vmatprep.subr.bf16.mxu1 %v4630_v19  ;;  %v4682_v19 = vld [vmem:[%s5428_s27 + $0x3c0] sm:$0xff]  }
 0x1e0   : > { %4161 = vmatpush3.bf16.msra.mxu0 %v4631_v20  ;;  %v1187_v20 = vrot.slane %v1159_v13, %v5479_v61  ;;  %v4735_v13 = vld [vmem:[%s5428_s27 + $0x4e8] sm:$0xff]  }
 0x1e1   : > { %4162 = vmatprep.subr.bf16.mxu0 %v4633_v22  ;;  %4183 = vmatpush3.bf16.msra.mxu1 %v4632_v21  ;;  %v4683_v21 = vld [vmem:[%s5428_s27 + $0x300] sm:$0xff]  }
 0x1e2   : > { %4184 = vmatprep.subr.bf16.mxu1 %v4634_v23  ;;  %v4684_v22 = vld [vmem:[%s5428_s27 + $0x380] sm:$0xff]   ;;  %v1188_v23 = vcombine.high %v1166_v17, %v1166_v17 }
 0x1e4   : > { %4163 = vmatpush3.bf16.msra.mxu0 %v4635_v24  ;;  %v4685_v24 = vld [vmem:[%s5428_s27 + $0x348] sm:$0xff]  }
 0x1e5   : > { %4164 = vmatprep.subr.bf16.mxu0 %v4637_v26  ;;  %4185 = vmatpush3.bf16.msra.mxu1 %v4636_v25  ;;  %v4686_v25 = vld [vmem:[%s5428_s27 + $0x3c8] sm:$0xff]   ;;  %v1191_v26 = vcombine.high %v1187_v20, %v1187_v20 }
 0x1e6   : > { %4186 = vmatprep.subr.bf16.mxu1 %v4638_v27  ;;  %v4687_v27 = vld [vmem:[%s5428_s27 + $0x308] sm:$0xff]  }
 0x1e8   : > { %4165 = vmatpush3.bf16.msra.mxu0 %v4639_v28  ;;  %v4688_v28 = vld [vmem:[%s5428_s27 + $0x388] sm:$0xff]  }
 0x1e9   : > { %4166 = vmatprep.subr.bf16.mxu0 %v4641_v30  ;;  %4187 = vmatpush3.bf16.msra.mxu1 %v4640_v29  ;;  %v4689_v29 = vld [vmem:[%s5428_s27 + $0x350] sm:$0xff]  }
 0x1ea   : > { %4188 = vmatprep.subr.bf16.mxu1 %v4642_v31  ;;  %v4690_v30 = vld [vmem:[%s5428_s27 + $0x3d0] sm:$0xff]  }
 0x1eb   : > { %v4691_v31 = vld [vmem:[%s5428_s27 + $0x310] sm:$0xff]  }
 0x1ec   : > { %4167 = vmatpush3.bf16.msra.mxu0 %v4643_v32  ;;  %v4692_v32 = vld [vmem:[%s5428_s27 + $0x390] sm:$0xff]  }
 0x1ed   : > { %4168 = vmatprep.subr.bf16.mxu0 %v4645_v34  ;;  %4189 = vmatpush3.bf16.msra.mxu1 %v4644_v33  ;;  %v4693_v33 = vld [vmem:[%s5428_s27 + $0x358] sm:$0xff]  }
 0x1ee   : > { %4190 = vmatprep.subr.bf16.mxu1 %v4646_v35  ;;  %v4694_v34 = vld [vmem:[%s5428_s27 + $0x3d8] sm:$0xff]  }
 0x1ef   : > { %v4695_v35 = vld [vmem:[%s5428_s27 + $0x318] sm:$0xff]  }
 0x1f0   : > { %4169 = vmatpush3.bf16.msra.mxu0 %v4647_v36  ;;  %v4696_v36 = vld [vmem:[%s5428_s27 + $0x398] sm:$0xff]  }
 0x1f1   : > { %4198 = vmatprep.subr.bf16.mxu0 %v4649_v39  ;;  %4191 = vmatpush3.bf16.msra.mxu1 %v4648_v37  ;;  %v4697_v37 = vld [vmem:[%s5428_s27 + $0x360] sm:$0xff]  }
 0x1f2   : > { %4220 = vmatprep.subr.bf16.mxu1 %v4650_v40  ;;  %v4699_v39 = vld [vmem:[%s5428_s27 + $0x320] sm:$0xff]  }
 0x1f3   : > { %2971 = vmatmul.mubr.bf16.vlgmr.msra.gmra.mrb[4].mxu0 %v1124_v38  ;;  %v4698_v38 = vld [vmem:[%s5428_s27 + $0x3e0] sm:$0xff]  }
 0x1f4   : > { %4199 = vmatpush3.bf16.msra.mxu0 %v4651_v41  ;;  %3011 = vmatmul.mubr.bf16.vlgmr.msra.gmra.mrb[4].mxu1 %v1140_v43  ;;  %v4700_v40 = vld [vmem:[%s5428_s27 + $0x3a0] sm:$0xff]   ;;  %v4701_v41 = vld [vmem:[%s5428_s27 + $0x368] sm:$0xff]  }
 0x1f5   : > { %4200 = vmatprep.subr.bf16.mxu0 %v4653_v44  ;;  %4221 = vmatpush3.bf16.msra.mxu1 %v4652_v42  ;;  %v4702_v42 = vld [vmem:[%s5428_s27 + $0x3e8] sm:$0xff]  }
 0x1f6   : > { %4222 = vmatprep.subr.bf16.mxu1 %v4654_v45  ;;  %3050 = vmatprep.mubr.bf16.mxu0 %v1180_v12  ;;  %v4703_v43 = vld [vmem:[%s5428_s27 + $0x328] sm:$0xff]   ;;  %v4705_v45 = vld [vmem:[%s5428_s27 + $0x370] sm:$0xff]  }
 0x1f7   : > { %3090 = vmatprep.mubr.bf16.mxu1 %v1190_v16  ;;  %v4704_v44 = vld [vmem:[%s5428_s27 + $0x3a8] sm:$0xff]   ;;  %v4738_v16 = vld [vmem:[%s5428_s27 + $0x470] sm:$0xff]  }
 0x1f8   : > { %4201 = vmatpush3.bf16.msra.mxu0 %v4655_v46  ;;  %v4706_v46 = vld [vmem:[%s5428_s27 + $0x3f0] sm:$0xff]   ;;  %v4734_v12 = vld [vmem:[%s5428_s27 + $0x468] sm:$0xff]  }
 0x1f9   : > { %4202 = vmatprep.subr.bf16.mxu0 %v4657_v48  ;;  %4223 = vmatpush3.bf16.msra.mxu1 %v4656_v47  ;;  %v4707_v47 = vld [vmem:[%s5428_s27 + $0x330] sm:$0xff]  }
 0x1fa   : > { %4224 = vmatprep.subr.bf16.mxu1 %v4658_v49  ;;  %v4708_v48 = vld [vmem:[%s5428_s27 + $0x3b0] sm:$0xff]   ;;  %v4709_v49 = vld [vmem:[%s5428_s27 + $0x378] sm:$0xff]  }
 0x1fc   : > { %4203 = vmatpush3.bf16.msra.mxu0 %v4659_v50  ;;  %v4710_v50 = vld [vmem:[%s5428_s27 + $0x3f8] sm:$0xff]  }
 0x1fd   : > { %4204 = vmatprep.subr.bf16.mxu0 %v4661_v52  ;;  %4225 = vmatpush3.bf16.msra.mxu1 %v4660_v51  ;;  %v4711_v51 = vld [vmem:[%s5428_s27 + $0x338] sm:$0xff]  }
 0x1fe   : > { %4226 = vmatprep.subr.bf16.mxu1 %v4662_v53  ;;  %v4712_v52 = vld [vmem:[%s5428_s27 + $0x3b8] sm:$0xff]   ;;  %v1173_v53 = vrot.slane %v5553_v9, %v5479_v61  ;;  %v4731_v9 = vld [vmem:[%s5428_s27 + $0x4e0] sm:$0xff]  }
 0x200   : > { %4205 = vmatpush3.bf16.msra.mxu0 %v4663_v54  ;;  %v4714_v54 = vld [vmem:[%s5428_s27 + $0x440] sm:$0xff]  }
 0x201   : > { %4206 = vmatprep.subr.bf16.mxu0 %v4665_v56  ;;  %4227 = vmatpush3.bf16.msra.mxu1 %v4664_v55  ;;  %v4715_v55 = vld [vmem:[%s5428_s27 + $0x4c0] sm:$0xff]  }
 0x202   : > { %4228 = vmatprep.subr.bf16.mxu1 %v4666_v57  ;;  %v4716_v56 = vld [vmem:[%s5428_s27 + $0x400] sm:$0xff]  }
 0x203   : > { %v4717_v57 = vld [vmem:[%s5428_s27 + $0x480] sm:$0xff]  }
 0x204   : > { %4207 = vmatpush3.bf16.msra.mxu0 %v4667_v58  ;;  %v1189_v58 = vcombine.high %v1173_v53, %v1173_v53 }
 0x205   : > { %4208 = vmatprep.subr.bf16.mxu0 %v4669_v60  ;;  %4229 = vmatpush3.bf16.msra.mxu1 %v4668_v59  ;;  %v4718_v59 = vld [vmem:[%s5428_s27 + $0x448] sm:$0xff]  }
 0x206   : > { %4230 = vmatprep.subr.bf16.mxu1 %v4670_v62  ;;  %v4719_v60 = vld [vmem:[%s5428_s27 + $0x4c8] sm:$0xff]  }
 0x207   : > { %v4720_v62 = vld [vmem:[%s5428_s27 + $0x408] sm:$0xff]  }
 0x208   : > { %4209 = vmatpush3.bf16.msra.mxu0 %v4671_v63  ;;  %v4721_v63 = vld [vmem:[%s5428_s27 + $0x488] sm:$0xff]  }
 0x209   : > { %4210 = vmatprep.subr.bf16.mxu0 %v4673_v1  ;;  %4231 = vmatpush3.bf16.msra.mxu1 %v4672_v0  ;;  %v4722_v0 = vld [vmem:[%s5428_s27 + $0x450] sm:$0xff]  }
 0x20a   : > { %4232 = vmatprep.subr.bf16.mxu1 %v4674_v3  ;;  %v4723_v1 = vld [vmem:[%s5428_s27 + $0x4d0] sm:$0xff]  }
 0x20b   : > { %v4725_v3 = vld [vmem:[%s5428_s27 + $0x490] sm:$0xff]  }
 0x20c   : > { %4211 = vmatpush3.bf16.msra.mxu0 %v4675_v6  ;;  %v4728_v6 = vld [vmem:[%s5428_s27 + $0x418] sm:$0xff]  }
 0x20d   : > { %4212 = vmatprep.subr.bf16.mxu0 %v4677_v10  ;;  %4233 = vmatpush3.bf16.msra.mxu1 %v4676_v7  ;;  %v4729_v7 = vld [vmem:[%s5428_s27 + $0x498] sm:$0xff]   ;;  %v4732_v10 = vld [vmem:[%s5428_s27 + $0x420] sm:$0xff]  }
 0x20e   : > { %4234 = vmatprep.subr.bf16.mxu1 %v4678_v11  ;;  %v4733_v11 = vld [vmem:[%s5428_s27 + $0x4a0] sm:$0xff]  }
 0x210   : > { %4213 = vmatpush3.bf16.msra.mxu0 %v4679_v14  ;;  %v4736_v14 = vld [vmem:[%s5428_s27 + $0x428] sm:$0xff]  }
 0x211   : > { %4242 = vmatprep.subr.bf16.mxu0 %v4681_v18  ;;  %4235 = vmatpush3.bf16.msra.mxu1 %v4680_v15  ;;  %v4737_v15 = vld [vmem:[%s5428_s27 + $0x4a8] sm:$0xff]   ;;  %v4739_v18 = vld [vmem:[%s5428_s27 + $0x4f0] sm:$0xff]  }
 0x212   : > { %4264 = vmatprep.subr.bf16.mxu1 %v4682_v19 }
 0x213   : > { %3051 = vmatmul.mubr.bf16.vlgmr.msra.gmra.mrb[8].mxu0 %v1166_v17  ;;  %v576_v17 = vld [vmem:[%s5421_s20 + $0x10] sm:$0xff] }
 0x214   : > { %4243 = vmatpush3.bf16.msra.mxu0 %v4683_v21  ;;  %3130 = vmatprep.mubr.bf16.mxu0 %v1187_v20  ;;  %v1199_v19 = vrot.slane %v576_v17, %v5479_v61  ;;  %v1192_v20 = vcombine.high %v576_v17, %v576_v17  ;;  %v4740_v21 = vld [vmem:[%s5428_s27 + $0x430] sm:$0xff]  }
 0x215   : > { %3091 = vmatmul.mubr.bf16.vlgmr.msra.gmra.mrb[8].mxu1 %v1188_v23  ;;  %4244 = vmatprep.subr.bf16.mxu0 %v4685_v24  ;;  %v4789_v17 = vld [vmem:[%s5428_s27 + $0x610] sm:$0xff]  }
 0x216   : > { %4265 = vmatpush3.bf16.msra.mxu1 %v4684_v22  ;;  %3170 = vmatprep.mubr.bf16.mxu1 %v1191_v26  ;;  %v4741_v22 = vld [vmem:[%s5428_s27 + $0x4b0] sm:$0xff]   ;;  %v1207_v23 = vcombine.high %v1199_v19, %v1199_v19  ;;  %v5629_v24 = vrot.slane %v1192_v20, %v5479_v61  ;;  %v4743_v26 = vld [vmem:[%s5428_s27 + $0x4f8] sm:$0xff]  }
 0x217   : > { %4266 = vmatprep.subr.bf16.mxu1 %v4686_v25  ;;  %v4742_v25 = vld [vmem:[%s5428_s27 + $0x478] sm:$0xff]  }
 0x218   : > { %4245 = vmatpush3.bf16.msra.mxu0 %v4687_v27  ;;  %v1229_v27 = vrot.slane %v1207_v23, %v5479_v61  ;;  %v4792_v20 = vld [vmem:[%s5428_s27 + $0x6d8] sm:$0xff]   ;;  %v4795_v23 = vld [vmem:[%s5428_s27 + $0x660] sm:$0xff]  }
 0x219   : > { %4246 = vmatprep.subr.bf16.mxu0 %v4689_v29  ;;  %v4744_v29 = vld [vmem:[%s5428_s27 + $0x438] sm:$0xff]  }
 0x21a   : > { %4267 = vmatpush3.bf16.msra.mxu1 %v4688_v28  ;;  %v1208_v28 = vcombine.high %v5629_v24, %v5629_v24 }
 0x21b   : > { %4268 = vmatprep.subr.bf16.mxu1 %v4690_v30  ;;  %v4745_v30 = vld [vmem:[%s5428_s27 + $0x4b8] sm:$0xff]  }
 0x21c   : > { %4247 = vmatpush3.bf16.msra.mxu0 %v4691_v31  ;;  %v1239_v31 = vcombine.high %v1229_v27, %v1229_v27 }
 0x21d   : > { %4248 = vmatprep.subr.bf16.mxu0 %v4693_v33  ;;  %v4746_v33 = vld [vmem:[%s5428_s27 + $0x540] sm:$0xff]  }
 0x21e   : > { %4269 = vmatpush3.bf16.msra.mxu1 %v4692_v32  ;;  %v1215_v32 = vrot.slane %v1199_v19, %v5479_v61  ;;  %v4791_v19 = vld [vmem:[%s5428_s27 + $0x658] sm:$0xff]  }
 0x21f   : > { %4270 = vmatprep.subr.bf16.mxu1 %v4694_v34  ;;  %v4747_v34 = vld [vmem:[%s5428_s27 + $0x5c0] sm:$0xff]  }
 0x220   : > { %4249 = vmatpush3.bf16.msra.mxu0 %v4695_v35  ;;  %v1236_v35 = vrot.slane %v1208_v28, %v5479_v61  ;;  %v4800_v28 = vld [vmem:[%s5428_s27 + $0x6e8] sm:$0xff]  }
 0x221   : > { %4250 = vmatprep.subr.bf16.mxu0 %v4697_v37  ;;  %v4749_v37 = vld [vmem:[%s5428_s27 + $0x580] sm:$0xff]  }
 0x222   : > { %4271 = vmatpush3.bf16.msra.mxu1 %v4696_v36  ;;  %v4748_v36 = vld [vmem:[%s5428_s27 + $0x500] sm:$0xff]  }
 0x223   : > { %4272 = vmatprep.subr.bf16.mxu1 %v4698_v38  ;;  %v1237_v38 = vcombine.high %v1215_v32, %v1215_v32 }
 0x224   : > { %4251 = vmatpush3.bf16.msra.mxu0 %v4699_v39  ;;  %v4750_v39 = vld [vmem:[%s5428_s27 + $0x548] sm:$0xff]  }
 0x225   : > { %4252 = vmatprep.subr.bf16.mxu0 %v4701_v41  ;;  %v1240_v41 = vcombine.high %v1236_v35, %v1236_v35 }
 0x226   : > { %4273 = vmatpush3.bf16.msra.mxu1 %v4700_v40  ;;  %v4751_v40 = vld [vmem:[%s5428_s27 + $0x5c8] sm:$0xff]  }
 0x227   : > { %4274 = vmatprep.subr.bf16.mxu1 %v4702_v42  ;;  %v4752_v42 = vld [vmem:[%s5428_s27 + $0x508] sm:$0xff]  }
 0x228   : > { %4253 = vmatpush3.bf16.msra.mxu0 %v4703_v43  ;;  %v4753_v43 = vld [vmem:[%s5428_s27 + $0x588] sm:$0xff]  }
 0x229   : > { %4254 = vmatprep.subr.bf16.mxu0 %v4705_v45  ;;  %v4755_v45 = vld [vmem:[%s5428_s27 + $0x5d0] sm:$0xff]  }
 0x22a   : > { %4275 = vmatpush3.bf16.msra.mxu1 %v4704_v44  ;;  %v4754_v44 = vld [vmem:[%s5428_s27 + $0x550] sm:$0xff]  }
 0x22b   : > { %4276 = vmatprep.subr.bf16.mxu1 %v4706_v46  ;;  %v4756_v46 = vld [vmem:[%s5428_s27 + $0x510] sm:$0xff]  }
 0x22c   : > { %4255 = vmatpush3.bf16.msra.mxu0 %v4707_v47  ;;  %v4757_v47 = vld [vmem:[%s5428_s27 + $0x590] sm:$0xff]  }
 0x22d   : > { %4256 = vmatprep.subr.bf16.mxu0 %v4709_v49  ;;  %v4759_v49 = vld [vmem:[%s5428_s27 + $0x5d8] sm:$0xff]  }
 0x22e   : > { %4277 = vmatpush3.bf16.msra.mxu1 %v4708_v48  ;;  %v4758_v48 = vld [vmem:[%s5428_s27 + $0x558] sm:$0xff]  }
 0x22f   : > { %4278 = vmatprep.subr.bf16.mxu1 %v4710_v50  ;;  %v4760_v50 = vld [vmem:[%s5428_s27 + $0x518] sm:$0xff]  }
 0x230   : > { %4257 = vmatpush3.bf16.msra.mxu0 %v4711_v51  ;;  %v4761_v51 = vld [vmem:[%s5428_s27 + $0x598] sm:$0xff]  }
 0x231   : > { %4286 = vmatprep.subr.bf16.mxu0 %v4714_v54  ;;  %v4764_v54 = vld [vmem:[%s5428_s27 + $0x520] sm:$0xff]  }
 0x232   : > { %4279 = vmatpush3.bf16.msra.mxu1 %v4712_v52  ;;  %v4762_v52 = vld [vmem:[%s5428_s27 + $0x560] sm:$0xff]  }
 0x233   : > { %3131 = vmatmul.mubr.bf16.vlgmr.msra.gmra.mrb[12].mxu0 %v1173_v53  ;;  %4308 = vmatprep.subr.bf16.mxu1 %v4715_v55  ;;  %v4763_v53 = vld [vmem:[%s5428_s27 + $0x5e0] sm:$0xff]  }
 0x234   : > { %4287 = vmatpush3.bf16.msra.mxu0 %v4716_v56  ;;  %3210 = vmatprep.mubr.bf16.mxu0 %v1229_v27  ;;  %v4765_v55 = vld [vmem:[%s5428_s27 + $0x5a0] sm:$0xff]   ;;  %v4766_v56 = vld [vmem:[%s5428_s27 + $0x568] sm:$0xff]  }
 0x235   : > { %3171 = vmatmul.mubr.bf16.vlgmr.msra.gmra.mrb[12].mxu1 %v1189_v58  ;;  %4288 = vmatprep.subr.bf16.mxu0 %v4718_v59  ;;  %v4768_v58 = vld [vmem:[%s5428_s27 + $0x528] sm:$0xff]  }
 0x236   : > { %4309 = vmatpush3.bf16.msra.mxu1 %v4717_v57  ;;  %3250 = vmatprep.mubr.bf16.mxu1 %v1239_v31  ;;  %v4767_v57 = vld [vmem:[%s5428_s27 + $0x5e8] sm:$0xff]   ;;  %v4803_v31 = vld [vmem:[%s5428_s27 + $0x670] sm:$0xff]  }
 0x237   : > { %4310 = vmatprep.subr.bf16.mxu1 %v4719_v60  ;;  %v4769_v59 = vld [vmem:[%s5428_s27 + $0x5a8] sm:$0xff]   ;;  %v4770_v60 = vld [vmem:[%s5428_s27 + $0x570] sm:$0xff]  }
 0x238   : > { %4289 = vmatpush3.bf16.msra.mxu0 %v4720_v62  ;;  %v4771_v62 = vld [vmem:[%s5428_s27 + $0x5f0] sm:$0xff]   ;;  %v4799_v27 = vld [vmem:[%s5428_s27 + $0x668] sm:$0xff]  }
 0x239   : > { %4290 = vmatprep.subr.bf16.mxu0 %v4722_v0  ;;  %v4773_v0 = vld [vmem:[%s5428_s27 + $0x5b0] sm:$0xff]  }
 0x23a   : > { %4311 = vmatpush3.bf16.msra.mxu1 %v4721_v63  ;;  %v4772_v63 = vld [vmem:[%s5428_s27 + $0x530] sm:$0xff]  }
 0x23b   : > { %4312 = vmatprep.subr.bf16.mxu1 %v4723_v1  ;;  %v4774_v1 = vld [vmem:[%s5428_s27 + $0x578] sm:$0xff]  }
 0x23c   : > { %4291 = vmatpush3.bf16.msra.mxu0 %v4724_v2  ;;  %v4775_v2 = vld [vmem:[%s5428_s27 + $0x5f8] sm:$0xff]  }
 0x23d   : > { %4292 = vmatprep.subr.bf16.mxu0 %v4726_v4  ;;  %v4777_v4 = vld [vmem:[%s5428_s27 + $0x5b8] sm:$0xff]  }
 0x23e   : > { %4313 = vmatpush3.bf16.msra.mxu1 %v4725_v3  ;;  %v4776_v3 = vld [vmem:[%s5428_s27 + $0x538] sm:$0xff]  }
 0x23f   : > { %4314 = vmatprep.subr.bf16.mxu1 %v4727_v5  ;;  %v1222_v5 = vrot.slane %v5629_v24, %v5479_v61  ;;  %v4796_v24 = vld [vmem:[%s5428_s27 + $0x6e0] sm:$0xff]  }
 0x240   : > { %4293 = vmatpush3.bf16.msra.mxu0 %v4728_v6  ;;  %v4779_v6 = vld [vmem:[%s5428_s27 + $0x640] sm:$0xff]  }
 0x241   : > { %4294 = vmatprep.subr.bf16.mxu0 %v4730_v8  ;;  %v4781_v8 = vld [vmem:[%s5428_s27 + $0x600] sm:$0xff]  }
 0x242   : > { %4315 = vmatpush3.bf16.msra.mxu1 %v4729_v7  ;;  %v4780_v7 = vld [vmem:[%s5428_s27 + $0x6c0] sm:$0xff]  }
 0x243   : > { %4316 = vmatprep.subr.bf16.mxu1 %v4731_v9  ;;  %v4782_v9 = vld [vmem:[%s5428_s27 + $0x680] sm:$0xff]  }
 0x244   : > { %4295 = vmatpush3.bf16.msra.mxu0 %v4732_v10  ;;  %v1238_v10 = vcombine.high %v1222_v5, %v1222_v5 }
 0x245   : > { %4296 = vmatprep.subr.bf16.mxu0 %v4734_v12  ;;  %v4784_v12 = vld [vmem:[%s5428_s27 + $0x6c8] sm:$0xff]  }
 0x246   : > { %4317 = vmatpush3.bf16.msra.mxu1 %v4733_v11  ;;  %v4783_v11 = vld [vmem:[%s5428_s27 + $0x648] sm:$0xff]  }
 0x247   : > { %4318 = vmatprep.subr.bf16.mxu1 %v4735_v13  ;;  %v4785_v13 = vld [vmem:[%s5428_s27 + $0x608] sm:$0xff]  }
 0x248   : > { %4297 = vmatpush3.bf16.msra.mxu0 %v4736_v14  ;;  %v4786_v14 = vld [vmem:[%s5428_s27 + $0x688] sm:$0xff]  }
 0x249   : > { %4298 = vmatprep.subr.bf16.mxu0 %v4738_v16  ;;  %v4788_v16 = vld [vmem:[%s5428_s27 + $0x6d0] sm:$0xff]  }
 0x24a   : > { %4319 = vmatpush3.bf16.msra.mxu1 %v4737_v15  ;;  %v4787_v15 = vld [vmem:[%s5428_s27 + $0x650] sm:$0xff]  }
 0x24b   : > { %4320 = vmatprep.subr.bf16.mxu1 %v4739_v18  ;;  %v4790_v18 = vld [vmem:[%s5428_s27 + $0x690] sm:$0xff]  }
 0x24c   : > { %4299 = vmatpush3.bf16.msra.mxu0 %v4740_v21  ;;  %v4793_v21 = vld [vmem:[%s5428_s27 + $0x618] sm:$0xff]  }
 0x24d   : > { %4300 = vmatprep.subr.bf16.mxu0 %v4742_v25  ;;  %v4797_v25 = vld [vmem:[%s5428_s27 + $0x620] sm:$0xff]  }
 0x24e   : > { %4321 = vmatpush3.bf16.msra.mxu1 %v4741_v22  ;;  %v4794_v22 = vld [vmem:[%s5428_s27 + $0x698] sm:$0xff]  }
 0x24f   : > { %4322 = vmatprep.subr.bf16.mxu1 %v4743_v26  ;;  %v4798_v26 = vld [vmem:[%s5428_s27 + $0x6a0] sm:$0xff]  }
 0x250   : > { %4301 = vmatpush3.bf16.msra.mxu0 %v4744_v29  ;;  %v4801_v29 = vld [vmem:[%s5428_s27 + $0x628] sm:$0xff]  }
 0x251   : > { %4330 = vmatprep.subr.bf16.mxu0 %v4746_v33  ;;  %v4804_v33 = vld [vmem:[%s5428_s27 + $0x6f0] sm:$0xff]  }
 0x252   : > { %4323 = vmatpush3.bf16.msra.mxu1 %v4745_v30  ;;  %v4802_v30 = vld [vmem:[%s5428_s27 + $0x6a8] sm:$0xff]  }
 0x253   : > { %3211 = vmatmul.mubr.bf16.vlgmr.msra.gmra.mrb[16].mxu0 %v1215_v32  ;;  %4352 = vmatprep.subr.bf16.mxu1 %v4747_v34  ;;  %v577_v32 = vld [vmem:[%s5421_s20 + $0x18] sm:$0xff] }
 0x254   : > { %4331 = vmatpush3.bf16.msra.mxu0 %v4748_v36  ;;  %3290 = vmatprep.mubr.bf16.mxu0 %v1236_v35  ;;  %v1248_v34 = vrot.slane %v577_v32, %v5479_v61  ;;  %v1241_v35 = vcombine.high %v577_v32, %v577_v32  ;;  %v4805_v36 = vld [vmem:[%s5428_s27 + $0x630] sm:$0xff]  }
 0x255   : > { %3251 = vmatmul.mubr.bf16.vlgmr.msra.gmra.mrb[16].mxu1 %v1237_v38  ;;  %4332 = vmatprep.subr.bf16.mxu0 %v4750_v39 }
 0x256   : > { %4353 = vmatpush3.bf16.msra.mxu1 %v4749_v37  ;;  %3330 = vmatprep.mubr.bf16.mxu1 %v1240_v41  ;;  %v4807_v37 = vld [vmem:[%s5428_s27 + $0x678] sm:$0xff]   ;;  %v1256_v38 = vcombine.high %v1248_v34, %v1248_v34  ;;  %v5705_v39 = vrot.slane %v1241_v35, %v5479_v61 }
 0x257   : > { %4354 = vmatprep.subr.bf16.mxu1 %v4751_v40  ;;  %v4806_v40 = vld [vmem:[%s5428_s27 + $0x6b0] sm:$0xff]   ;;  %v4808_v41 = vld [vmem:[%s5428_s27 + $0x6f8] sm:$0xff]  }
 0x258   : > { %4333 = vmatpush3.bf16.msra.mxu0 %v4752_v42  ;;  %v1278_v42 = vrot.slane %v1256_v38, %v5479_v61 }
 0x259   : > { %4334 = vmatprep.subr.bf16.mxu0 %v4754_v44  ;;  %v4809_v44 = vld [vmem:[%s5428_s27 + $0x638] sm:$0xff]  }
 0x25a   : > { %4355 = vmatpush3.bf16.msra.mxu1 %v4753_v43  ;;  %v1257_v43 = vcombine.high %v5705_v39, %v5705_v39 }
 0x25b   : > { %4356 = vmatprep.subr.bf16.mxu1 %v4755_v45  ;;  %v1288_v45 = vcombine.high %v1278_v42, %v1278_v42 }
 0x25c   : > { %4335 = vmatpush3.bf16.msra.mxu0 %v4756_v46  ;;  %v1264_v46 = vrot.slane %v1248_v34, %v5479_v61 }
 0x25d   : > { %4336 = vmatprep.subr.bf16.mxu0 %v4758_v48  ;;  %v4810_v48 = vld [vmem:[%s5428_s27 + $0x6b8] sm:$0xff]  }
 0x25e   : > { %4357 = vmatpush3.bf16.msra.mxu1 %v4757_v47  ;;  %v4811_v47 = vld [vmem:[%s5428_s27 + $0x740] sm:$0xff]  }
 0x25f   : > { %4358 = vmatprep.subr.bf16.mxu1 %v4759_v49  ;;  %v1285_v49 = vrot.slane %v1257_v43, %v5479_v61 }
 0x260   : > { %4337 = vmatpush3.bf16.msra.mxu0 %v4760_v50  ;;  %v4812_v50 = vld [vmem:[%s5428_s27 + $0x7c0] sm:$0xff]  }
 0x261   : > { %4338 = vmatprep.subr.bf16.mxu0 %v4762_v52  ;;  %v1286_v52 = vcombine.high %v1264_v46, %v1264_v46 }
 0x262   : > { %4359 = vmatpush3.bf16.msra.mxu1 %v4761_v51  ;;  %v4813_v51 = vld [vmem:[%s5428_s27 + $0x700] sm:$0xff]  }
 0x263   : > { %4360 = vmatprep.subr.bf16.mxu1 %v4763_v53  ;;  %v4815_v53 = vld [vmem:[%s5428_s27 + $0x748] sm:$0xff]  }
 0x264   : > { %4339 = vmatpush3.bf16.msra.mxu0 %v4764_v54  ;;  %v4814_v54 = vld [vmem:[%s5428_s27 + $0x780] sm:$0xff]  }
 0x265   : > { %4340 = vmatprep.subr.bf16.mxu0 %v4766_v56  ;;  %v4816_v56 = vld [vmem:[%s5428_s27 + $0x7c8] sm:$0xff]  }
 0x266   : > { %4361 = vmatpush3.bf16.msra.mxu1 %v4765_v55  ;;  %v1289_v55 = vcombine.high %v1285_v49, %v1285_v49 }
 0x267   : > { %4362 = vmatprep.subr.bf16.mxu1 %v4767_v57  ;;  %v4817_v57 = vld [vmem:[%s5428_s27 + $0x708] sm:$0xff]  }
 0x268   : > { %4341 = vmatpush3.bf16.msra.mxu0 %v4768_v58  ;;  %v4819_v58 = vld [vmem:[%s5428_s27 + $0x750] sm:$0xff]  }
 0x269   : > { %4342 = vmatprep.subr.bf16.mxu0 %v4770_v60  ;;  %v4820_v60 = vld [vmem:[%s5428_s27 + $0x7d0] sm:$0xff]  }
 0x26a   : > { %4363 = vmatpush3.bf16.msra.mxu1 %v4769_v59  ;;  %v4818_v59 = vld [vmem:[%s5428_s27 + $0x788] sm:$0xff]  }
 0x26b   : > { %4364 = vmatprep.subr.bf16.mxu1 %v4771_v62  ;;  %v4821_v62 = vld [vmem:[%s5428_s27 + $0x710] sm:$0xff]  }
 0x26c   : > { %4343 = vmatpush3.bf16.msra.mxu0 %v4772_v63  ;;  %v4823_v63 = vld [vmem:[%s5428_s27 + $0x758] sm:$0xff]  }
 0x26d   : > { %4344 = vmatprep.subr.bf16.mxu0 %v4774_v1  ;;  %v4824_v1 = vld [vmem:[%s5428_s27 + $0x7d8] sm:$0xff]  }
 0x26e   : > { %4365 = vmatpush3.bf16.msra.mxu1 %v4773_v0  ;;  %v4822_v0 = vld [vmem:[%s5428_s27 + $0x790] sm:$0xff]  }
 0x26f   : > { %4366 = vmatprep.subr.bf16.mxu1 %v4775_v2  ;;  %v4825_v2 = vld [vmem:[%s5428_s27 + $0x718] sm:$0xff]  }
 0x270   : > { %4345 = vmatpush3.bf16.msra.mxu0 %v4776_v3  ;;  %v4827_v3 = vld [vmem:[%s5428_s27 + $0x760] sm:$0xff]  }
 0x271   : > { %4374 = vmatprep.subr.bf16.mxu0 %v4779_v6  ;;  %v4829_v6 = vld [vmem:[%s5428_s27 + $0x720] sm:$0xff]  }
 0x272   : > { %4367 = vmatpush3.bf16.msra.mxu1 %v4777_v4  ;;  %v4826_v4 = vld [vmem:[%s5428_s27 + $0x798] sm:$0xff]  }
 0x273   : > { %3291 = vmatmul.mubr.bf16.vlgmr.msra.gmra.mrb[20].mxu0 %v1222_v5  ;;  %4396 = vmatprep.subr.bf16.mxu1 %v4780_v7  ;;  %v4828_v5 = vld [vmem:[%s5428_s27 + $0x7e0] sm:$0xff]   ;;  %v4831_v7 = vld [vmem:[%s5428_s27 + $0x768] sm:$0xff]  }
 0x274   : > { %4375 = vmatpush3.bf16.msra.mxu0 %v4781_v8  ;;  %3370 = vmatprep.mubr.bf16.mxu0 %v1278_v42  ;;  %v4830_v8 = vld [vmem:[%s5428_s27 + $0x7a0] sm:$0xff]  }
 0x275   : > { %3331 = vmatmul.mubr.bf16.vlgmr.msra.gmra.mrb[20].mxu1 %v1238_v10  ;;  %4376 = vmatprep.subr.bf16.mxu0 %v4783_v11  ;;  %v4833_v10 = vld [vmem:[%s5428_s27 + $0x728] sm:$0xff]   ;;  %v4835_v11 = vld [vmem:[%s5428_s27 + $0x770] sm:$0xff]  }
 0x276   : > { %4397 = vmatpush3.bf16.msra.mxu1 %v4782_v9  ;;  %3410 = vmatprep.mubr.bf16.mxu1 %v1288_v45  ;;  %v4832_v9 = vld [vmem:[%s5428_s27 + $0x7e8] sm:$0xff]  }
 0x277   : > { %4398 = vmatprep.subr.bf16.mxu1 %v4784_v12 }
 0x278   : > { %4377 = vmatpush3.bf16.msra.mxu0 %v4785_v13  ;;  %v4834_v13 = vld [vmem:[%s5428_s27 + $0x7a8] sm:$0xff]  }
 0x279   : > { %4378 = vmatprep.subr.bf16.mxu0 %v4787_v15  ;;  %v4836_v15 = vld [vmem:[%s5428_s27 + $0x7f0] sm:$0xff]  }
 0x27a   : > { %4399 = vmatpush3.bf16.msra.mxu1 %v4786_v14 }
 0x27b   : > { %4400 = vmatprep.subr.bf16.mxu1 %v4788_v16 }
 0x27c   : > { %4379 = vmatpush3.bf16.msra.mxu0 %v4789_v17 }
 0x27d   : > { %4380 = vmatprep.subr.bf16.mxu0 %v4791_v19  ;;  %v4837_v19 = vld [vmem:[%s5428_s27 + $0x730] sm:$0xff]  }
 0x27e   : > { %4401 = vmatpush3.bf16.msra.mxu1 %v4790_v18 }
 0x27f   : > { %4402 = vmatprep.subr.bf16.mxu1 %v4792_v20 }
 0x280   : > { %4381 = vmatpush3.bf16.msra.mxu0 %v4793_v21 }
 0x281   : > { %4382 = vmatprep.subr.bf16.mxu0 %v4795_v23 }
 0x282   : > { %4403 = vmatpush3.bf16.msra.mxu1 %v4794_v22  ;;  %v4839_v22 = vld [vmem:[%s5428_s27 + $0x778] sm:$0xff]  }
 0x283   : > { %4404 = vmatprep.subr.bf16.mxu1 %v4796_v24 }
 0x284   : > { %4383 = vmatpush3.bf16.msra.mxu0 %v4797_v25  ;;  %v4838_v25 = vld [vmem:[%s5428_s27 + $0x7b0] sm:$0xff]  }
 0x285   : > { %4384 = vmatprep.subr.bf16.mxu0 %v4799_v27  ;;  %v4840_v27 = vld [vmem:[%s5428_s27 + $0x7f8] sm:$0xff]  }
 0x286   : > { %4405 = vmatpush3.bf16.msra.mxu1 %v4798_v26 }
 0x287   : > { %4406 = vmatprep.subr.bf16.mxu1 %v4800_v28 }
 0x288   : > { %4385 = vmatpush3.bf16.msra.mxu0 %v4801_v29  ;;  %v4841_v29 = vld [vmem:[%s5428_s27 + $0x738] sm:$0xff]  }
 0x289   : > { %4386 = vmatprep.subr.bf16.mxu0 %v4803_v31  ;;  %v4842_v31 = vld [vmem:[%s5428_s27 + $0x7b8] sm:$0xff]  }
 0x28a   : > { %4407 = vmatpush3.bf16.msra.mxu1 %v4802_v30  ;;  %v1271_v30 = vrot.slane %v5705_v39, %v5479_v61 }
 0x28b   : > { %4408 = vmatprep.subr.bf16.mxu1 %v4804_v33 }
 0x28c   : > { %4387 = vmatpush3.bf16.msra.mxu0 %v4805_v36  ;;  %v1287_v32 = vcombine.high %v1271_v30, %v1271_v30 }
 0x28d   : > { %4388 = vmatprep.subr.bf16.mxu0 %v4807_v37 }
 0x28e   : > { %4409 = vmatpush3.bf16.msra.mxu1 %v4806_v40 }
 0x28f   : > { %4410 = vmatprep.subr.bf16.mxu1 %v4808_v41 }
 0x290   : > { %4389 = vmatpush3.bf16.msra.mxu0 %v4809_v44 }
 0x291   : > { %4418 = vmatprep.subr.bf16.mxu0 %v4811_v47 }
 0x292   : > { %4411 = vmatpush3.bf16.msra.mxu1 %v4810_v48 }
 0x293   : > { %3371 = vmatmul.mubr.bf16.vlgmr.msra.gmra.mrb[24].mxu0 %v1264_v46  ;;  %4440 = vmatprep.subr.bf16.mxu1 %v4812_v50 }
 0x294   : > { %4419 = vmatpush3.bf16.msra.mxu0 %v4813_v51  ;;  %3450 = vmatprep.mubr.bf16.mxu0 %v1285_v49 }
 0x295   : > { %3411 = vmatmul.mubr.bf16.vlgmr.msra.gmra.mrb[24].mxu1 %v1286_v52  ;;  %4420 = vmatprep.subr.bf16.mxu0 %v4815_v53 }
 0x296   : > { %4441 = vmatpush3.bf16.msra.mxu1 %v4814_v54  ;;  %3490 = vmatprep.mubr.bf16.mxu1 %v1289_v55 }
 0x297   : > { %4442 = vmatprep.subr.bf16.mxu1 %v4816_v56 }
 0x298   : > { %4421 = vmatpush3.bf16.msra.mxu0 %v4817_v57 }
 0x299   : > { %4422 = vmatprep.subr.bf16.mxu0 %v4819_v58 }
 0x29a   : > { %4443 = vmatpush3.bf16.msra.mxu1 %v4818_v59 }
 0x29b   : > { %4444 = vmatprep.subr.bf16.mxu1 %v4820_v60 }
 0x29c   : > { %4423 = vmatpush3.bf16.msra.mxu0 %v4821_v62 }
 0x29d   : > { %4424 = vmatprep.subr.bf16.mxu0 %v4823_v63 }
 0x29e   : > { %4445 = vmatpush3.bf16.msra.mxu1 %v4822_v0 }
 0x29f   : > { %4446 = vmatprep.subr.bf16.mxu1 %v4824_v1 }
 0x2a0   : > { %4425 = vmatpush3.bf16.msra.mxu0 %v4825_v2 }
 0x2a1   : > { %4426 = vmatprep.subr.bf16.mxu0 %v4827_v3 }
 0x2a2   : > { %4447 = vmatpush3.bf16.msra.mxu1 %v4826_v4 }
 0x2a3   : > { %4448 = vmatprep.subr.bf16.mxu1 %v4828_v5 }
 0x2a4   : > { %4427 = vmatpush3.bf16.msra.mxu0 %v4829_v6 }
 0x2a5   : > { %4428 = vmatprep.subr.bf16.mxu0 %v4831_v7 }
 0x2a6   : > { %4449 = vmatpush3.bf16.msra.mxu1 %v4830_v8  ;;  %v4126_v12 = vpop.f32.mrb[0].mxu0 }
 0x2a7   : > { %v4127_v14 = vpop.f32.mrb[1].mxu0  ;;  %4450 = vmatprep.subr.bf16.mxu1 %v4832_v9  ;;  %v4148_v16 = vpop.f32.mrb[0].mxu1 }
 0x2a8   : > { %v4128_v17 = vadd.f32 %v4127_v14, %v4126_v12  ;;  %v4129_v18 = vpop.f32.mrb[2].mxu0  ;;  %4429 = vmatpush3.bf16.msra.mxu0 %v4833_v10  ;;  %v4149_v20 = vpop.f32.mrb[1].mxu1 }
 0x2a9   : > { %v4130_v21 = vpop.f32.mrb[3].mxu0  ;;  %4430 = vmatprep.subr.bf16.mxu0 %v4835_v11  ;;  %v4150_v23 = vadd.f32 %v4149_v20, %v4148_v16  ;;  %v4151_v24 = vpop.f32.mrb[2].mxu1 }
 0x2aa   : > { %4451 = vmatpush3.bf16.msra.mxu1 %v4834_v13  ;;  %v4152_v26 = vpop.f32.mrb[3].mxu1 }
 0x2ab   : > { %4452 = vmatprep.subr.bf16.mxu1 %v4836_v15  ;;  %v2933_v28 = vadd.f32 %v4150_v23, %v4128_v17 }
 0x2ac   : > { %4431 = vmatpush3.bf16.msra.mxu0 %v4837_v19 }
 0x2ad   : > { %4432 = vmatprep.subr.bf16.mxu0 %v4839_v22 }
 0x2ae   : > { %4453 = vmatpush3.bf16.msra.mxu1 %v4838_v25 }
 0x2af   : > { %4454 = vmatprep.subr.bf16.mxu1 %v4840_v27 }
 0x2b0   : > { %4433 = vmatpush3.bf16.msra.mxu0 %v4841_v29 }
 0x2b2   : > { %4455 = vmatpush3.bf16.msra.mxu1 %v4842_v31 }
 0x2b3   : > { %3451 = vmatmul.mubr.bf16.vlgmr.msra.gmra.mrb[28].mxu0 %v1271_v30 }
 0x2b5   : > { %3491 = vmatmul.mubr.bf16.vlgmr.msra.gmra.mrb[28].mxu1 %v1287_v32 }
 0x2c6   : > { %v4170_v33 = vpop.f32.mrb[4].mxu0 }
 0x2c7   : > { %v4171_v34 = vpop.f32.mrb[5].mxu0  ;;  %v4192_v35 = vpop.f32.mrb[4].mxu1 }
 0x2c8   : > { %v4172_v36 = vadd.f32 %v4171_v34, %v4170_v33  ;;  %v4173_v37 = vpop.f32.mrb[6].mxu0  ;;  %v4193_v38 = vpop.f32.mrb[5].mxu1 }
 0x2c9   : > { %v4174_v40 = vpop.f32.mrb[7].mxu0  ;;  %v4194_v42 = vadd.f32 %v4193_v38, %v4192_v35  ;;  %v4195_v43 = vpop.f32.mrb[6].mxu1 }
 0x2ca   : > { %v2973_v41 = vadd.f32 %v4172_v36, %v2933_v28  ;;  %v4196_v44 = vpop.f32.mrb[7].mxu1 }
 0x2cc   : > { %v3013_v61 = vadd.f32 %v4194_v42, %v2973_v41 }
 0x2e6   : > { %v4214_v39 = vpop.f32.mrb[8].mxu0 }
 0x2e7   : > { %v4215_v45 = vpop.f32.mrb[9].mxu0 }
 0x2e8   : > { %v4236_v46 = vpop.f32.mrb[8].mxu1  ;;  %v4216_v47 = vadd.f32 %v4215_v45, %v4214_v39  ;;  %v4217_v48 = vpop.f32.mrb[10].mxu0 }
 0x2e9   : > { %v4237_v49 = vpop.f32.mrb[9].mxu1  ;;  %v4218_v50 = vpop.f32.mrb[11].mxu0 }
 0x2ea   : > { %v3053_v51 = vadd.f32 %v4216_v47, %v3013_v61  ;;  %v4238_v52 = vadd.f32 %v4237_v49, %v4236_v46  ;;  %v4239_v53 = vpop.f32.mrb[10].mxu1  ;;  %v573_v50 = vld [vmem:[#allocation2] sm:$0x3] }
 0x2eb   : > { %v4240_v54 = vpop.f32.mrb[11].mxu1 }
 0x2ec   : > { %v3093_v55 = vadd.f32 %v4238_v52, %v3053_v51 }
 0x306   : > { %v4258_v56 = vpop.f32.mrb[12].mxu0 }
 0x307   : > { %v4259_v57 = vpop.f32.mrb[13].mxu0 }
 0x308   : > { %v4280_v58 = vpop.f32.mrb[12].mxu1  ;;  %v4260_v59 = vadd.f32 %v4259_v57, %v4258_v56  ;;  %v4261_v60 = vpop.f32.mrb[14].mxu0  ;;  %v5751_v57 = vld [vmem:[#allocation3] sm:$0xff] (!%p4098_p12) }
 0x309   : > { %v4281_v62 = vpop.f32.mrb[13].mxu1  ;;  %v4262_v63 = vpop.f32.mrb[15].mxu0 }
 0x30a   : > { %v3133_v0 = vadd.f32 %v4260_v59, %v3093_v55  ;;  %v4282_v1 = vadd.f32 %v4281_v62, %v4280_v58  ;;  %v4283_v2 = vpop.f32.mrb[14].mxu1  ;;  %v5754_v59 = vld [vmem:[#allocation3 + $0x8] sm:$0xff] (!%p4098_p12) }
 0x30b   : > { %v4284_v3 = vpop.f32.mrb[15].mxu1 }
 0x30c   : > { %v3173_v4 = vadd.f32 %v4282_v1, %v3133_v0 }
 0x326   : > { %v4302_v5 = vpop.f32.mrb[16].mxu0 }
 0x327   : > { %v4303_v6 = vpop.f32.mrb[17].mxu0 }
 0x328   : > { %v4324_v7 = vpop.f32.mrb[16].mxu1  ;;  %v4304_v8 = vadd.f32 %v4303_v6, %v4302_v5  ;;  %v4305_v9 = vpop.f32.mrb[18].mxu0 }
 0x329   : > { %v4325_v10 = vpop.f32.mrb[17].mxu1  ;;  %v4306_v11 = vpop.f32.mrb[19].mxu0 }
 0x32a   : > { %v3213_v12 = vadd.f32 %v4304_v8, %v3173_v4  ;;  %v4326_v13 = vadd.f32 %v4325_v10, %v4324_v7  ;;  %v4327_v14 = vpop.f32.mrb[18].mxu1 }
 0x32b   : > { %v4328_v15 = vpop.f32.mrb[19].mxu1 }
 0x32c   : > { %v3253_v16 = vadd.f32 %v4326_v13, %v3213_v12 }
 0x346   : > { %v4346_v17 = vpop.f32.mrb[20].mxu0 }
 0x347   : > { %v4347_v18 = vpop.f32.mrb[21].mxu0 }
 0x348   : > { %v4368_v19 = vpop.f32.mrb[20].mxu1  ;;  %v4348_v20 = vadd.f32 %v4347_v18, %v4346_v17  ;;  %v4349_v21 = vpop.f32.mrb[22].mxu0 }
 0x349   : > { %v4369_v22 = vpop.f32.mrb[21].mxu1  ;;  %v4350_v23 = vpop.f32.mrb[23].mxu0  ;;  %v5149_v21 = vmov (!%p4098_p12), 1  }
 0x34a   : > { %v3293_v24 = vadd.f32 %v4348_v20, %v3253_v16  ;;  %v4370_v25 = vadd.f32 %v4369_v22, %v4368_v19  ;;  %v4371_v26 = vpop.f32.mrb[22].mxu1  ;;  %4845 = vset.pattern.permute.xlu1 (!%p4098_p12), %v5149_v21  ;;  %v5150_v22 = vmov (!%p4098_p12), 0  }
 0x34b   : > { %v4372_v27 = vpop.f32.mrb[23].mxu1  ;;  %4844 = vset.pattern.permute.xlu0 (!%p4098_p12), %v5150_v22  ;;  %v5151_v26 = vmov (!%p4098_p12), 2  }
 0x34c   : > { %v3333_v28 = vadd.f32 %v4370_v25, %v3293_v24  ;;  %v5152_v27 = vmov (!%p4098_p12), 3  }
 0x366   : > { %v4390_v29 = vpop.f32.mrb[24].mxu0 }
 0x367   : > { %v4391_v30 = vpop.f32.mrb[25].mxu0 }
 0x368   : > { %v4412_v31 = vpop.f32.mrb[24].mxu1  ;;  %v4392_v32 = vadd.f32 %v4391_v30, %v4390_v29  ;;  %v4393_v33 = vpop.f32.mrb[26].mxu0  ;;  %v3574_v30 = vrot.slane (!%p4098_p12), %v5751_v57, 4 }
 0x369   : > { %v4413_v34 = vpop.f32.mrb[25].mxu1  ;;  %v4394_v35 = vpop.f32.mrb[27].mxu0 }
 0x36a   : > { %v3373_v36 = vadd.f32 %v4392_v32, %v3333_v28  ;;  %v4414_v37 = vadd.f32 %v4413_v34, %v4412_v31  ;;  %v4415_v38 = vpop.f32.mrb[26].mxu1 }
 0x36b   : > { %v4416_v40 = vpop.f32.mrb[27].mxu1 }
 0x36c   : > { %v3413_v41 = vadd.f32 %v4414_v37, %v3373_v36  ;;  %v3589_v36 = vrot.slane (!%p4098_p12), %v5754_v59, 4 }
 0x386   : > { %v4434_v42 = vpop.f32.mrb[28].mxu0 }
 0x387   : > { %v4435_v43 = vpop.f32.mrb[29].mxu0 }
 0x388   : > { %v4456_v44 = vpop.f32.mrb[28].mxu1  ;;  %v4436_v61 = vadd.f32 %v4435_v43, %v4434_v42  ;;  %v4437_v39 = vpop.f32.mrb[30].mxu0 }
 0x389   : > { %v4457_v45 = vpop.f32.mrb[29].mxu1  ;;  %v4438_v46 = vpop.f32.mrb[31].mxu0 }
 0x38a   : > { %v3453_v47 = vadd.f32 %v4436_v61, %v3413_v41  ;;  %v4458_v48 = vadd.f32 %v4457_v45, %v4456_v44  ;;  %v4459_v49 = vpop.f32.mrb[30].mxu1  ;;  %3503 = sbr.rel (%p4098_p12) target bundleno = 1763 (0x6e3), region = 72  ;;  %v4099_v44 = vld [vmem:[#allocation12] ss:$0 sm:$0xff] (!%p4098_p12) }
 0x38b   : > { %v4460_v51 = vpop.f32.mrb[31].mxu1 }
 0x38c   : > { %v3493_v52 = vadd.f32 %v4458_v48, %v3453_v47 }
 0x38e   : > { %v3498_v53 = vadd.f32 %v3493_v52, %v573_v50 }
 0x390   : > { %3499 = vst [vmem:[#allocation2] sm:$0x3] %v3498_v53 }
 0x397   : > { %v3504_v54 = vld [vmem:[#allocation2] sm:$0x3] }
 0x398   : > { %v3505_v55 = vmax.f32 %v3504_v54, 0.0 }
 0x39a   : > { %v3509_v56 = vrot.slane %v3505_v55, 6 }
 0x39c   : > { %v3512_v58 = vsel %vm3511_vm1, %v3505_v55, %v3509_v56 }
 0x39d   : > { %v3519_v60 = vrot.slane %v3512_v58, 4  ;;  %v3513_v0 = vmul.f32 %v3512_v58, %v5751_v57  ;;  %v3526_v1 = vmul.f32 %v3512_v58, %v5754_v59 }
 0x39f   : > { %v3521_v62 = vmul.f32 %v3519_v60, %v5751_v57  ;;  %v3530_v63 = vmul.f32 %v3519_v60, %v5754_v59  ;;  %v3515_v4 = vsel %vm3514_vm3, %v3513_v0, 0.0  ;;  %v3527_v5 = vsel %vm3514_vm3, %v3526_v1, 0.0  ;;  %v3611_v60 = vld [vmem:[%s5863_s5] sm:$0x3] }
 0x3a1   : > { %v3523_v2 = vsel %vm3522_vm2, %v3521_v62, 0.0  ;;  %v3531_v3 = vsel %vm3522_vm2, %v3530_v63, 0.0 }
 0x3a2   : > { %3524 = vadd.xlane.f32.xlu0 %v3523_v2  ;;  %3532 = vadd.xlane.f32.xlu1 %v3531_v3 }
 0x3a6   : > { %3516 = vadd.xlane.f32.xlu0 %v3515_v4  ;;  %3528 = vadd.xlane.f32.xlu1 %v3527_v5 }
 0x42f   : > { %v3525_v6 = vpop.xlane.xlu0 %3524  ;;  %v3533_v7 = vpop.xlane.xlu1 %3532 }
 0x430   : > { %v3535_v8 = vrot.slane %v3525_v6, 4  ;;  %v3538_v11 = vrot.slane %v3533_v7, 4 }
 0x433   : > { %v3517_v9 = vpop.xlane.xlu0 %3516  ;;  %v3529_v10 = vpop.xlane.xlu1 %3528 }
 0x434   : > { %v3541_v12 = vsel %vm3540_vm4, %v3517_v9, %v3535_v8 }
 0x435   : > { %v3543_v13 = vsel %vm3542_vm5, %v3541_v12, %v3529_v10 }
 0x436   : > { %v3545_v14 = vsel %vm3544_vm6, %v3543_v13, %v3538_v11 }
 0x437   : > { %v3547_v15 = vsel %vm3546_vm7, %v3545_v14, -inf }
 0x438   : > { %3548 = vmax.xlane.f32.xlu0 %v3547_v15 }
 0x4c5   : > { %v3549_v16 = vpop.xlane.xlu0 %3548 }
 0x4c6   : > { %v3550_v17 = vsub.f32 %v3545_v14, %v3549_v16 }
 0x4c8   : > { %v3551_v18 = vmul.f32 1.442695, %v3550_v17 }
 0x4ca   : > { %4849 = vpow2.f32 %v3551_v18 }
 0x4d4   : > { %v4850_v19 = vpop.eup %4849 }
 0x4d5   : > { %v3553_v20 = vsel %vm3546_vm7, %v4850_v19, 0.0 }
 0x4d6   : > { %3554 = vadd.xlane.f32.xlu1 %v3553_v20 }
 0x563   : > { %v3555_v23 = vpop.xlane.xlu1 %3554 }
 0x564   : > { %4851 = vrcp.f32 %v3555_v23 }
 0x56e   : > { %v4852_v24 = vpop.eup %4851 }
 0x56f   : > { %v3557_v25 = vmul.f32 %v4852_v24, %v4850_v19 }
 0x571   : > { %3561 = vst.msk [vmem:[#allocation14] sm:$0xf] %vm3546_vm7, %v3557_v25  ;;  %3570 = vperm.xlu1 %4845, %v3557_v25   ;;  %3565 = vperm.xlu0 %4844, %v3557_v25   ;;  %v3558_v28 = vsel %vm3546_vm7, %v3557_v25, -inf }
 0x575   : > { %4846 = vset.pattern.permute.xlu1 %v5151_v26  ;;  %4848 = vset.pattern.permute.xlu0 %v5152_v27 }
 0x576   : > { %3579 = vperm.xlu1 %4846, %v3557_v25  }
 0x57a   : > { %4847 = vset.pattern.permute.xlu1 %v5152_v27 }
 0x57b   : > { %3585 = vperm.xlu1 %4847, %v3557_v25  }
 0x59f   : > { %3559 = vmax.xlane.f32.xlu1 %v3558_v28 }
 0x5f0   : > { %v3571_v29 = vpop.permute.xlu1 %3570  ;;  %v3566_v31 = vpop.permute.xlu0 %3565 }
 0x5f1   : > { %v3576_v32 = vmul.f32 %v3574_v30, %v3571_v29  ;;  %v3568_v33 = vmul.f32 %v3566_v31, %v5751_v57 }
 0x5f3   : > { %v3577_v37 = vadd.f32 %v3576_v32, %v3568_v33 }
 0x5f5   : > { %v3580_v34 = vpop.permute.xlu1 %3579 }
 0x5f6   : > { %v3582_v35 = vmul.f32 %v3580_v34, %v5754_v59 }
 0x5f8   : > { %v3583_v40 = vadd.f32 %v3582_v35, %v3577_v37 }
 0x5fa   : > { %v3586_v38 = vpop.permute.xlu1 %3585 }
 0x5fb   : > { %v3591_v41 = vmul.f32 %v3589_v36, %v3586_v38 }
 0x5fd   : > { %v3592_v42 = vadd.f32 %v3591_v41, %v3583_v40 }
 0x5ff   : > { %v3594_v43 = vrot.slane %v3592_v42, 2 }
 0x601   : > { %v3596_v61 = vadd.f32 %v3594_v43, %v3592_v42 }
 0x603   : > { %v3604_v39 = vmul.f32 %v4099_v44, %v3596_v61 }
 0x605   : > { %v3605_v45 = vsel %vm3511_vm1, %v3604_v39, 0.0 }
 0x606   : > { %3606 = vadd.xlane.f32.xlu0 %v3605_v45 }
 0x62c   : > { %v3560_v46 = vpop.xlane.xlu1 %3559 }
 0x62d   : > { %3562 = vst.msk [vmem:[#allocation16] sm:$0xf] %vm3546_vm7, %v3560_v46  ;;  %v3631_v47 = vsub.f32 %v3560_v46, %v3557_v25 }
 0x62f   : > { %v3632_v48 = vand.u32 2147483647, %v3631_v47 }
 0x631   : > { %v3633_v49 = vadd.f32 0.2, %v3632_v48 }
 0x633   : > { %4853 = vrcp.f32 %v3633_v49 }
 0x63d   : > { %v4854_v50 = vpop.eup %4853 }
 0x63e   : > { %v3635_v51 = vmul.f32 0.2, %v4854_v50 }
 0x640   : > { %v3636_v52 = vsel %vm3546_vm7, %v3635_v51, 0.0 }
 0x641   : > { %3637 = vadd.xlane.f32.xlu1 %v3636_v52 }
 0x693   : > { %v3607_v53 = vpop.xlane.xlu0 %3606 }
 0x694   : > { %v3608_v54 = vmul.f32 0.5, %v3607_v53 }
 0x696   : > { %3610 = vst.msk [vmem:[%s5865_s7] sm:$0x3] %vm3609_vm8, %v3608_v54  ;;  %v3615_v55 = vand.u32 2147483647, %v3608_v54  ;;  %v3612_v63 = vmax.f32 %v3608_v54, 0.0  ;;  %v3613_v0 = vmul.f32 %v3611_v60, %v3608_v54 }
 0x698   : > { %v3616_v56 = vsub.f32 0.0, %v3615_v55  ;;  %v3614_v2 = vsub.f32 %v3612_v63, %v3613_v0 }
 0x69a   : > { %v3617_v57 = vmul.f32 1.442695, %v3616_v56 }
 0x69c   : > { %4855 = vpow2.f32 %v3617_v57 }
 0x6a6   : > { %v4856_v58 = vpop.eup %4855 }
 0x6a7   : > { %v3619_v59 = vadd.f32 1.0, %v4856_v58 }
 0x6a9   : > { %4857 = vlog2.f32 %v3619_v59 }
 0x6b3   : > { %v4858_v62 = vpop.eup %4857 }
 0x6b4   : > { %v3621_v1 = vmul.f32 0.6931472, %v4858_v62 }
 0x6b6   : > { %v3622_v3 = vadd.f32 %v3621_v1, %v3614_v2 }
 0x6b8   : > { %v3623_v4 = vsel %vm3609_vm8, %v3622_v3, 0.0 }
 0x6b9   : > { %v3624_v5 = vrot.slane %v3623_v4, 4 }
 0x6bb   : > { %v3625_v6 = vadd.f32 %v3624_v5, %v3623_v4 }
 0x6bd   : > { %v3626_v7 = vrot.slane %v3625_v6, 2 }
 0x6bf   : > { %v3627_v11 = vadd.f32 %v3626_v7, %v3625_v6 }
 0x6c1   : > { %v3628_v14 = vrot.slane %v3627_v11, 1 }
 0x6c3   : > { %v3629_v17 = vadd.f32 %v3628_v14, %v3627_v11 }
 0x6c5   : > { %v3630_v20 = vmul.f32 0.5, %v3629_v17 }
 0x6ce   : > { %v3638_v8 = vpop.xlane.xlu1 %3637 }
 0x6cf   : > { %v3639_v9 = vsel %vm3514_vm3, %v3638_v8, 0.0 }
 0x6d0   : > { %v3640_v10 = vrot.slane %v3639_v9, 4 }
 0x6d2   : > { %v3641_v12 = vadd.f32 %v3640_v10, %v3639_v9 }
 0x6d4   : > { %v3642_v13 = vrot.slane %v3641_v12, 2 }
 0x6d6   : > { %v3643_v15 = vadd.f32 %v3642_v13, %v3641_v12 }
 0x6d8   : > { %v3644_v16 = vrot.slane %v3643_v15, 1 }
 0x6da   : > { %v3645_v18 = vadd.f32 %v3644_v16, %v3643_v15 }
 0x6dc   : > { %v3646_v19 = vmul.f32 0.0625, %v3645_v18 }
 0x6de   : > { %v3647_v21 = vmul.f32 0.5, %v3646_v19 }
 0x6e0   : > { %v3648_v22 = vadd.f32 %v3647_v21, %v3630_v20 }
 0x6e2   : > { %3650 = vst.msk [vmem:[#allocation13] sm:$0x1] %vm3649_vm9, %v3648_v22 }
 0x6e3 PF: > { %p4514_p0 = scmp.eq.s32.totalorder %s5225_s13, 2  ;;  %s5153_s12 = smov [#allocation14]  }
 0x6e4   : > { %s3672_s22 = sshll.u32 %s5153_s12, 4  ;;  %s5154_s9 = smov [#allocation13]   ;;  %s3673_s22 = int_to_ptr.vmem [resolvable:$true] %s3672_s22 }
 0x6e5   : > { %s3658_s17 = sshll.u32 %s5154_s9, 4  ;;  %s5003_s16 = scalar_lea.vmem %s3673_s22, 64  ;;  %s3659_s17 = int_to_ptr.vmem [resolvable:$true] %s3658_s17 }
 0x6e6   : > { %p5004_p2 = scmp.ne.s32.totalorder %s3673_s22, %s5003_s16  ;;  %p5010_p10 = scmp.lt.s32.totalorder %s3673_s22, %s3673_s22 }
 0x6e7   : > { %p5011_p9 = scmp.lt.s32.totalorder %s5003_s16, %s5003_s16 }
 0x6e8   : > { %p5005_p13 = pnand %p5004_p2, %p4514_p0 }
 0x6e9   : > { %p5012_p11 = por %p5011_p9, %p5010_p10 }
 0x6ea   : > { %p5006_p3 = pneg %p5005_p13 }
 0x6ec   : > { %p5013_p7 = pnand %p5012_p11, %p5006_p3 }
 0x6ee   : > { %5016 = shalt.err (!%p5013_p7)
}
 0x6ef   : > { %s5017_s26 = scalar_lea.hbm %s5866_s8, 64 }
 0x6f0   : > { %p5018_p8 = scmp.ne.s32.totalorder %s5866_s8, %s5017_s26  ;;  %p5023_p5 = scmp.lt.u32.totalorder %s5017_s26, %s5866_s8 }
 0x6f2   : > { %p5019_p1 = pnand %p5018_p8, %p4514_p0 }
 0x6f4   : > { %p5020_p4 = pneg %p5019_p1 }
 0x6f6   : > { %p5025_p6 = pnand %p5023_p5, %p5020_p4 }
 0x6f8   : > { %5028 = shalt.err (!%p5025_p6)
}
 0x6f9   : > { %4481 = dma.vmem_to_hbm [thread:$0]  (%p4514_p0), %s3673_s22, 64, %s5866_s8, [#allocation15]  }
 0x6fa   : > { %s5029_s14 = scalar_lea.vmem %s3659_s17, 16  ;;  %s5035_s15 = scalar_lea.vmem %s3659_s17, 32 }
 0x6fb   : > { %p5030_p12 = scmp.ne.s32.totalorder %s3659_s17, %s5029_s14  ;;  %p5036_p3 = scmp.lt.s32.totalorder %s3659_s17, %s3659_s17 }
 0x6fc   : > { %p5037_p10 = scmp.lt.s32.totalorder %s5035_s15, %s5029_s14 }
 0x6fd   : > { %p5031_p2 = pnand %p5030_p12, %p4514_p0 }
 0x6fe   : > { %p5038_p9 = por %p5037_p10, %p5036_p3 }
 0x6ff   : > { %p5032_p13 = pneg %p5031_p2 }
 0x701   : > { %p5039_p11 = pnand %p5038_p9, %p5032_p13 }
 0x703   : > { %5042 = shalt.err (!%p5039_p11)
}
 0x704   : > { %s5043_s12 = scalar_lea.hbm %s5864_s6, 16 }
 0x705   : > { %p5044_p7 = scmp.ne.s32.totalorder %s5864_s6, %s5043_s12  ;;  %p5049_p4 = scmp.lt.u32.totalorder %s5043_s12, %s5864_s6 }
 0x707   : > { %p5045_p8 = pnand %p5044_p7, %p4514_p0 }
 0x709   : > { %p5046_p1 = pneg %p5045_p8 }
 0x70b   : > { %p5051_p5 = pnand %p5049_p4, %p5046_p1 }
 0x70d   : > { %5054 = shalt.err (!%p5051_p5)
}
 0x70e   : > { %4479 = dma.vmem_to_hbm [thread:$0]  (%p4514_p0), %s3659_s17, 16, %s5864_s6, [#allocation6]  }
 0x70f   : > { %s5155_s23 = smov [#allocation16]  }
 0x710   : > { %s3683_s20 = sshll.u32 %s5155_s23, 4  ;;  %s3684_s20 = int_to_ptr.vmem [resolvable:$true] %s3683_s20 }
 0x711   : > { %s5055_s19 = scalar_lea.vmem %s3684_s20, 64  ;;  %p5062_p13 = scmp.lt.s32.totalorder %s3684_s20, %s3684_s20 }
 0x712   : > { %p5056_p6 = scmp.ne.s32.totalorder %s3684_s20, %s5055_s19  ;;  %p5063_p3 = scmp.lt.s32.totalorder %s5055_s19, %s5055_s19 }
 0x714   : > { %p5057_p12 = pnand %p5056_p6, %p4514_p0  ;;  %p5064_p10 = por %p5063_p3, %p5062_p13 }
 0x716   : > { %p5058_p2 = pneg %p5057_p12 }
 0x718   : > { %p5065_p9 = pnand %p5064_p10, %p5058_p2 }
 0x71a   : > { %5068 = shalt.err (!%p5065_p9)
}
 0x71b   : > { %s5891_s27 = sld [smem:[#allocation24_spill]] }
 0x721   : > { %s5069_s14 = scalar_lea.hbm %s5891_s27, 64 }
 0x722   : > { %p5070_p11 = scmp.ne.s32.totalorder %s5891_s27, %s5069_s14  ;;  %p5075_p1 = scmp.lt.u32.totalorder %s5069_s14, %s5891_s27 }
 0x724   : > { %p5071_p7 = pnand %p5070_p11, %p4514_p0 }
 0x726   : > { %p5072_p8 = pneg %p5071_p7 }
 0x728   : > { %p5077_p4 = pnand %p5075_p1, %p5072_p8 }
 0x72a   : > { %5080 = shalt.err (!%p5077_p4)
}
 0x72b   : > { %4483 = dma.vmem_to_hbm [thread:$0]  (%p4514_p0), %s3684_s20, 64, %s5891_s27, [#allocation15]  }
 0x72c   : > { %5114 = dma.done.wait (%p4514_p0), [#allocation6], 16  }
 0x72d   : > { %5116 = vsyncadd (%p4514_p0), [#allocation6], 4294967280 }
 0x72e   : > { %5118 = dma.done.wait (%p4514_p0), [#allocation15], 128  }
 0x72f   : > { %5120 = vsyncadd (%p4514_p0), [#allocation15], 4294967168 }
 0x730 PF: > { %p26_p5 = scmp.ge.s32.totalorder %s5303_s24, 5   ;;  %s5892_s30 = smov %s5127_s10 }
 0x731   : > { %s5893_s10 = smov %s5131_s11  ;;  %s5894_s11 = smov %s5331_s18 }
 0x732   : > { %s5895_s12 = smov %s5303_s24  ;;  %28 = sbr.rel (!%p26_p5) target bundleno = 11 (0xb), region = 138 }
 0x739   :  { %3707 = vsyncpa [#allocation5], 1 }
 0x73a   :  { %3709 = vsyncpa [#allocation5 + $0x1], 1 }
 0x73b   :  { %3710 = vsyncpa [#allocation8], 1 }
 0x73c   :  { %3712 = vsyncpa [#allocation8 + $0x1], 1 }
 0x73d   :  { %3713 = vsyncpa [#allocation11], 1 }
 0x73e   :  { %3714 = vsyncpa [#allocation6], 1 }
 0x73f   :  { %3716 = vsyncpa [#allocation6 + $0x1], 1 }
 0x740   :  { %3717 = vsyncpa [#allocation15], 1 }

// kernel: tpu_custom_call.1
= control target key start
LH: loop header
LB: loop body
LE: loop exit
PB: predicated region body
PF: predicated region fallthrough
CT: control target
= control target key end

     0   :  { %s5858_s0 = inlined_call_operand.hbm [shape: bf16[2,12288], index: 0, kind: input, shape index: {}]   ;;  %s5859_s1 = inlined_call_operand.hbm [shape: bf16[12288,128], index: 1, kind: input, shape index: {}]   ;;  %s5860_s2 = inlined_call_operand.hbm [shape: bf16[16,192], index: 2, kind: input, shape index: {}]   ;;  %s5861_s3 = inlined_call_operand.hbm [shape: bf16[192,128], index: 3, kind: input, shape index: {}]   ;;  %s5862_s4 = inlined_call_operand.hbm [shape: f32[1,128], index: 4, kind: input, shape index: {}]   ;;  %s5863_s5 = inlined_call_operand.vmem [shape: f32[2,1], index: 5, kind: input, shape index: {}]   ;;  %s5864_s6 = inlined_call_operand.hbm [shape: f32[1,1], index: 6, kind: output, shape index: {0}]   ;;  %s5865_s7 = inlined_call_operand.vmem [shape: f32[2,1], index: 7, kind: output, shape index: {1}]   ;;  %s5866_s8 = inlined_call_operand.hbm [shape: f32[4,4], index: 8, kind: output, shape index: {2}]   ;;  %s5867_s9 = inlined_call_operand.hbm [shape: f32[4,4], index: 9, kind: output, shape index: {3}]  }
   0x1   :  { %5874 = sst [smem:[#allocation23_spill]] %s5860_s2 }
   0x2   :  { %5875 = sst [smem:[#allocation24_spill]] %s5867_s9 }
   0x3   :  { %15 = vsyncpa [#allocation5], 0 }
   0x4   :  { %17 = vsyncpa [#allocation5 + $0x1], 0 }
   0x5   :  { %18 = vsyncpa [#allocation8], 0 }
   0x6   :  { %20 = vsyncpa [#allocation8 + $0x1], 0 }
   0x7   :  { %21 = vsyncpa [#allocation11], 0 }
   0x8   :  { %22 = vsyncpa [#allocation6], 0 }
   0x9   :  { %23 = vsyncpa [#allocation15], 0  ;;  %s5206_s30 = smov 0   ;;  %s5208_s10 = smov 0  }
   0xa   :  { %s5210_s11 = smov 0   ;;  %s5212_s12 = smov 0  }
   0xb LB: > { %s5225_s13 = sadd.s32 4294967295, %s5135_s12   ;;  %p49_p0 = scmp.ne.s32.totalorder %s5127_s10, %s5123_s30  ;;  %s5135_s12 = sphi %s5212_s12, %s5895_s12   ;;  %s5131_s11 = sphi %s5210_s11, %s5894_s11   ;;  %s5127_s10 = sphi %s5208_s10, %s5893_s10   ;;  %s5123_s30 = sphi %s5206_s30, %s5892_s30  }
   0xc   : > { %p5868_p1 = scmp.eq.s32.totalorder %s5225_s13, 0  ;;  %p3809_p2 = scmp.ge.s32.totalorder %s5135_s12, 1 }
   0xd   : > { %p254_p3 = scmp.lt.s32.totalorder %s5135_s12, 4  ;;  %s5137_s16 = smov [#allocation9]  }
   0xe   : > { %p5234_p5 = por %p5868_p1, %p49_p0  ;;  %s266_s17 = sshll.u32 %s5137_s16, 4  ;;  %s267_s17 = int_to_ptr.vmem [resolvable:$true] %s266_s17 }
   0xf   : > { %p5238_p6 = pnand %p3809_p2, %p254_p3  ;;  %s5138_s19 = smov [#allocation10]  }
  0x10   : > { %s5876_s14 = scalar_select %p5234_p5, 1, 0 }
  0x11   : > { %s5877_s15 = scalar_select %p5238_p6, 1, 0 }
  0x12   : > { %p4490_p7 = pneg %p5238_p6  ;;  %s279_s20 = sshll.u32 %s5138_s19, 4  ;;  %s5250_s20 = int_to_ptr.vmem [resolvable:$true] %s279_s20 }
  0x13   : > { %s5879_s2 = sld [smem:[#allocation23_spill]] }
  0x14   : > { %p5246_p8 = pnand %p4490_p7, %p5868_p1 }
  0x16   : > { %p5260_p10 = pneg %p5246_p8 }
  0x19   : > { %s4859_s23 = scalar_lea.hbm %s5879_s2, 256 }
  0x1a   : > { %p4860_p9 = scmp.ne.s32.totalorder %s5879_s2, %s4859_s23  ;;  %p4866_p13 = scmp.lt.u32.totalorder %s4859_s23, %s5879_s2 }
  0x1c   : > { %p4862_p11 = pnand %p5260_p10, %p4860_p9 }
  0x1e   : > { %p4863_p12 = pneg %p4862_p11 }
  0x20   : > { %p4868_p0 = pnand %p4866_p13, %p4863_p12 }
  0x22   : > { %4871 = shalt.err (!%p4868_p0)
}
  0x23   : > { %s4872_s29 = scalar_lea.vmem %s267_s17, 256  ;;  %p4880_p4 = scmp.lt.s32.totalorder %s267_s17, %s267_s17 }
  0x24   : > { %p4873_p2 = scmp.ne.s32.totalorder %s267_s17, %s4872_s29  ;;  %p4881_p1 = scmp.lt.s32.totalorder %s4872_s29, %s4872_s29 }
  0x26   : > { %p4875_p3 = pnand %p4873_p2, %p5260_p10  ;;  %p4882_p5 = por %p4881_p1, %p4880_p4 }
  0x28   : > { %p4876_p7 = pneg %p4875_p3 }
  0x2a   : > { %p4883_p6 = pnand %p4882_p5, %p4876_p7 }
  0x2c   : > { %4886 = shalt.err (!%p4883_p6)
}
  0x2d   : > { %s5139_s30 = smov 128   ;;  %s5140_s16 = smov 8  }
  0x2e   : > { %4493 = dma.hbm_to_vmem [thread:$0]  (!%p5246_p8), %s5879_s2, 256, %s267_s17, [#allocation8], %s5139_s30, %s5139_s30, %s5140_s16  }
  0x2f   : > { %s4887_s24 = scalar_lea.hbm %s5861_s3, 1536 }
  0x30   : > { %p4888_p9 = scmp.ne.s32.totalorder %s5861_s3, %s4887_s24  ;;  %p4894_p5 = scmp.lt.u32.totalorder %s4887_s24, %s5861_s3 }
  0x32   : > { %p4890_p1 = pnand %p4888_p9, %p5260_p10 }
  0x34   : > { %p4891_p4 = pneg %p4890_p1 }
  0x36   : > { %p4896_p6 = pnand %p4894_p5, %p4891_p4 }
  0x38   : > { %4899 = shalt.err (!%p4896_p6)
}
  0x39   : > { %s4900_s17 = scalar_lea.vmem %s5250_s20, 1536  ;;  %p4908_p0 = scmp.lt.s32.totalorder %s5250_s20, %s5250_s20 }
  0x3a   : > { %p4901_p11 = scmp.ne.s32.totalorder %s5250_s20, %s4900_s17  ;;  %p4909_p2 = scmp.lt.s32.totalorder %s4900_s17, %s4900_s17 }
  0x3c   : > { %p4903_p12 = pnand %p4901_p11, %p5260_p10  ;;  %p4910_p3 = por %p4909_p2, %p4908_p0 }
  0x3e   : > { %p4904_p13 = pneg %p4903_p12 }
  0x40   : > { %p4911_p7 = pnand %p4910_p3, %p4904_p13 }
  0x42   : > { %4914 = shalt.err (!%p4911_p7)
}
  0x43   : > { %s5872_s30 = smov 64   ;;  %s5873_s16 = smov 4  }
  0x44   : > { %4496 = dma.hbm_to_vmem [thread:$0]  (!%p5246_p8), %s5861_s3, 1536, %s5250_s20, [#allocation11], %s5872_s30, %s5872_s30, %s5873_s16  }
  0x45   : > { %s5143_s22 = smov [#allocation12]   ;;  %s5303_s24 = sadd.s32 1, %s5135_s12  }
  0x46   : > { %s293_s23 = sshll.u32 %s5143_s22, 4  ;;  %s4915_s28 = scalar_lea.hbm %s5862_s4, 16  ;;  %s294_s23 = int_to_ptr.vmem [resolvable:$true] %s293_s23 }
  0x47   : > { %p4916_p9 = scmp.ne.s32.totalorder %s5862_s4, %s4915_s28  ;;  %p4922_p5 = scmp.lt.u32.totalorder %s4915_s28, %s5862_s4 }
  0x49   : > { %p4918_p1 = pnand %p4916_p9, %p5260_p10 }
  0x4b   : > { %p4919_p4 = pneg %p4918_p1 }
  0x4d   : > { %p4924_p6 = pnand %p4922_p5, %p4919_p4 }
  0x4f   : > { %4927 = shalt.err (!%p4924_p6)
}
  0x50   : > { %s4928_s20 = scalar_lea.vmem %s294_s23, 16  ;;  %s4935_s19 = scalar_lea.vmem %s294_s23, 32 }
  0x51   : > { %p4929_p11 = scmp.ne.s32.totalorder %s294_s23, %s4928_s20  ;;  %p4936_p0 = scmp.lt.s32.totalorder %s294_s23, %s294_s23 }
  0x52   : > { %p4937_p2 = scmp.lt.s32.totalorder %s4935_s19, %s4928_s20 }
  0x53   : > { %p4931_p12 = pnand %p4929_p11, %p5260_p10 }
  0x54   : > { %p4938_p3 = por %p4937_p2, %p4936_p0 }
  0x55   : > { %p4932_p13 = pneg %p4931_p12 }
  0x57   : > { %p4939_p7 = pnand %p4938_p3, %p4932_p13 }
  0x59   : > { %4942 = shalt.err (!%p4939_p7)
}
  0x5a   : > { %4499 = dma.hbm_to_vmem [thread:$0]  (!%p5246_p8), %s5862_s4, 16, %s294_s23, [#allocation11]  }
  0x5b   : > { %s33_s2 = ssub.s32 %s5135_s12, %s5303_s24  ;;  %s36_s9 = sadd.s32 1, %s5131_s11 }
  0x5c   : > { %p34_p10 = scmp.eq.s32.totalorder %s33_s2, 0  ;;  %p43_p9 = scmp.ne.s32.totalorder %s5131_s11, %s5127_s10 }
  0x5d   : > { %p44_p1 = scmp.eq.s32.totalorder %s5135_s12, 0  ;;  %p4510_p4 = scmp.lt.s32.totalorder %s5135_s12, 3 }
  0x5e   : > { %s5331_s18 = scalar_select %p34_p10, %s5131_s11, %s36_s9  }
  0x5f   : > { %p45_p5 = por %p44_p1, %p43_p9  ;;  %s5334_s26 = sand.u32 1, %s5131_s11  }
  0x60   : > { %s3814_s25 = sshll.u32 %s5334_s26, 5  ;;  %s4108_s27 = sshll.u32 %s5135_s12, 9 }
  0x61   : > { %s5341_s23 = scalar_lea.hbm %s5858_s0, %s4108_s27  ;;  %s311_s17 = scalar_lea.vmem [#allocation4], %s3814_s25 }
  0x62   : > { %s319_s20 = sshll.u32 %s311_s17, 4  ;;  %p5345_p8 = pnand %p4510_p4, %p45_p5  ;;  %s5343_s20 = int_to_ptr.vmem [resolvable:$true] %s319_s20 }
  0x63   : > { %s3817_s21 = sshll.u32 %s5334_s26, 11  ;;  %s326_s22 = sand.u32 1, %s5135_s12  }
  0x64   : > { %s308_s2 = scalar_lea.sflag [#allocation5], %s5334_s26  ;;  %s4943_s9 = scalar_lea.hbm %s5341_s23, 512 }
  0x65   : > { %p4944_p6 = scmp.ne.s32.totalorder %s5341_s23, %s4943_s9  ;;  %p4945_p11 = pneg %p5345_p8 }
  0x66   : > { %s4948_s28 = scalar_lea.hbm %s5858_s0, 1536  ;;  %p4949_p0 = scmp.lt.u32.totalorder %s5341_s23, %s5858_s0 }
  0x67   : > { %p4946_p12 = pnand %p4945_p11, %p4944_p6  ;;  %p4950_p2 = scmp.lt.u32.totalorder %s4948_s28, %s4943_s9 }
  0x68   : > { %p4952_p7 = scmp.lt.u32.totalorder %s4943_s9, %s5341_s23 }
  0x69   : > { %p4947_p13 = pneg %p4946_p12  ;;  %p4951_p3 = por %p4950_p2, %p4949_p0 }
  0x6b   : > { %p4953_p10 = por %p4952_p7, %p4951_p3 }
  0x6d   : > { %p4954_p9 = pnand %p4953_p10, %p4947_p13 }
  0x6f   : > { %4957 = shalt.err (!%p4954_p9)
}
  0x70   : > { %s4958_s30 = scalar_lea.vmem %s5343_s20, 512  ;;  %s5144_s25 = smov [#allocation4]  }
  0x71   : > { %p4959_p1 = scmp.ne.s32.totalorder %s5343_s20, %s4958_s30  ;;  %s4963_s27 = sshll.u32 %s5144_s25, 4  ;;  %s4964_s27 = int_to_ptr.vmem [resolvable:$false] %s4963_s27 }
  0x72   : > { %s4965_s29 = scalar_lea.vmem %s4964_s27, 1024  ;;  %p4966_p6 = scmp.lt.s32.totalorder %s5343_s20, %s4964_s27 }
  0x73   : > { %p4961_p4 = pnand %p4959_p1, %p4945_p11  ;;  %p4967_p12 = scmp.lt.s32.totalorder %s4965_s29, %s4958_s30 }
  0x75   : > { %p4962_p5 = pneg %p4961_p4  ;;  %p4968_p0 = por %p4967_p12, %p4966_p6 }
  0x77   : > { %p4969_p2 = pnand %p4968_p0, %p4962_p5 }
  0x79   : > { %4972 = shalt.err (!%p4969_p2)
}
  0x7a   : > { %4503 = dma.hbm_to_vmem [thread:$0]  (!%p5345_p8), %s5341_s23, 512, %s5343_s20, %s308_s2  }
  0x7b   : > { %s330_s9 = scalar_lea.vmem [#allocation7], %s3817_s21  ;;  %s4109_s17 = sshll.u32 %s5135_s12, 15 }
  0x7c   : > { %s337_s28 = sshll.u32 %s330_s9, 4  ;;  %s5385_s27 = scalar_lea.hbm %s5859_s1, %s4109_s17  ;;  %s5379_s28 = int_to_ptr.vmem [resolvable:$true] %s337_s28 }
  0x7d   : > { %s5389_s29 = scalar_lea.sflag [#allocation8], %s326_s22  ;;  %s4973_s16 = scalar_lea.hbm %s5385_s27, 32768 }
  0x7e   : > { %p4974_p13 = scmp.ne.s32.totalorder %s5385_s27, %s4973_s16  ;;  %s4978_s20 = scalar_lea.hbm %s5859_s1, 98304 }
  0x7f   : > { %p4979_p10 = scmp.lt.u32.totalorder %s5385_s27, %s5859_s1  ;;  %p4980_p9 = scmp.lt.u32.totalorder %s4978_s20, %s4973_s16 }
  0x80   : > { %p4976_p3 = pnand %p4974_p13, %p4945_p11  ;;  %p4982_p4 = scmp.lt.u32.totalorder %s4973_s16, %s5385_s27 }
  0x81   : > { %p4981_p1 = por %p4980_p9, %p4979_p10 }
  0x82   : > { %p4977_p7 = pneg %p4976_p3 }
  0x83   : > { %p4983_p5 = por %p4982_p4, %p4981_p1 }
  0x85   : > { %p4984_p6 = pnand %p4983_p5, %p4977_p7 }
  0x87   : > { %4987 = shalt.err (!%p4984_p6)
}
  0x88   : > { %s4988_s12 = scalar_lea.vmem %s5379_s28, 32768  ;;  %s5145_s22 = smov [#allocation7]  }
  0x89   : > { %p4989_p12 = scmp.ne.s32.totalorder %s5379_s28, %s4988_s12  ;;  %s4993_s9 = sshll.u32 %s5145_s22, 4  ;;  %s4994_s9 = int_to_ptr.vmem [resolvable:$false] %s4993_s9 }
  0x8a   : > { %s4995_s17 = scalar_lea.vmem %s4994_s9, 65536  ;;  %p4996_p13 = scmp.lt.s32.totalorder %s5379_s28, %s4994_s9 }
  0x8b   : > { %p4991_p0 = pnand %p4989_p12, %p4945_p11  ;;  %p4997_p3 = scmp.lt.s32.totalorder %s4995_s17, %s4988_s12 }
  0x8d   : > { %p4992_p2 = pneg %p4991_p0  ;;  %p4998_p10 = por %p4997_p3, %p4996_p13 }
  0x8f   : > { %p4999_p9 = pnand %p4998_p10, %p4992_p2 }
  0x91   : > { %5002 = shalt.err (!%p4999_p9)
}
  0x92   : > { %s5882_s16 = smov 4   ;;  %s5883_s25 = smov 64  }
  0x93   : > { %4506 = dma.hbm_to_vmem [thread:$0]  (!%p5345_p8), %s5385_s27, 32768, %s5379_s28, %s5389_s29, %s5883_s25, %s5883_s25, %s5882_s16  }
  0x94   : > { %p5884_p11 = scmp.ne.s32.totalorder %s5877_s15, 0 }
  0x95   : > { %s351_s30 = sand.u32 (!%p5884_p11), 1, %s5127_s10   ;;  %p5885_p7 = scmp.ne.s32.totalorder (!%p5884_p11), %s5876_s14, 0 }
  0x96   : > { %349 = sbr.rel (%p5884_p11) target bundleno = 1840 (0x730), region = 44  ;;  %s3821_s26 = sshll.u32 (!%p5884_p11), %s351_s30, 5 }
  0x97   : > { %s352_s23 = scalar_lea.sflag (!%p5884_p11), [#allocation5], %s351_s30  ;;  %s5421_s20 = scalar_lea.vmem (!%p5884_p11), [#allocation4], %s3821_s26 }
  0x9d   : > { %5098 = dma.done.wait (%p5885_p7), %s352_s23, 512  }
  0x9e   : > { %5100 = vsyncadd (%p5885_p7), %s352_s23, 4294966784  ;;  %s360_s19 = sand.u32 1, %s5225_s13   ;;  %s3822_s21 = sshll.u32 %s351_s30, 11 }
  0x9f   : > { %s361_s28 = scalar_lea.sflag [#allocation8], %s360_s19  ;;  %s5428_s27 = scalar_lea.vmem [#allocation7], %s3822_s21 }
  0xa0   : > { %5102 = dma.done.wait (%p5885_p7), %s361_s28, 32768  }
  0xa1   : > { %5104 = vsyncadd (%p5885_p7), %s361_s28, 4294934528  ;;  %p5886_p8 = scmp.eq.s32.totalorder %s5225_s13, 0 }
  0xa3   : > { %5106 = dma.done.wait (%p5886_p8), [#allocation8], 256   ;;  %p5887_p1 = pmov %p5886_p8 }
  0xa5   : > { %5108 = vsyncadd (%p5887_p1), [#allocation8], 4294967040  ;;  %p5888_p4 = pmov %p5887_p1 }
  0xa6   : > { %p5889_p5 = pmov %p5887_p1 }
  0xa7   : > { %5110 = dma.done.wait (%p5888_p4), [#allocation11], 1552  }
  0xa8   : > { %5112 = vsyncadd (%p5889_p5), [#allocation11], 4294965744  ;;  %p5890_p6 = scmp.ne.s32.totalorder %s5225_s13, 0 }
  0xa9   : > { %v5146_v0 = vmov (!%p5890_p6), 0.0   ;;  %v5147_v1 = vmov (!%p5890_p6), 0   ;;  %v4569_v2 = vld [vmem:[#allocation10] sm:$0xff] (!%p5890_p6)   ;;  %v4570_v3 = vld [vmem:[#allocation10 + $0x8] sm:$0xff] (!%p5890_p6)   ;;  %v4571_v4 = vld [vmem:[#allocation10 + $0x10] sm:$0xff] (!%p5890_p6)   ;;  %vm526_vm0 = vcmask (!%p5890_p6), 523264  }
  0xaa   : > { %417 = sbr.rel (%p5890_p6) target bundleno = 433 (0x1b1), region = 68  ;;  %418 = vst [vmem:[#allocation2] sm:$0x3] (!%p5890_p6), %v5146_v0  ;;  %530 = vmatprep.subr.bf16.mxu0 (!%p5890_p6), %v5147_v1  ;;  %v4572_v5 = vld [vmem:[#allocation10 + $0x18] sm:$0xff] (!%p5890_p6)   ;;  %v4573_v7 = vld [vmem:[#allocation10 + $0x20] sm:$0xff] (!%p5890_p6)   ;;  %v4574_v8 = vld [vmem:[#allocation10 + $0x28] sm:$0xff] (!%p5890_p6)  }
  0xab   : > { %531 = vmatpush1.bf16.msra.mxu0 (!%p5890_p6), %v4569_v2  ;;  %v4583_v6 = vld [vmem:[#allocation9 + $0x4] ss:$8 sps:$4 sm:$0xff] (!%p5890_p6)   ;;  %v4577_v11 = vld [vmem:[#allocation10 + $0x40] sm:$0xff] (!%p5890_p6)   ;;  %v4578_v12 = vld [vmem:[#allocation10 + $0x48] sm:$0xff] (!%p5890_p6)  }
  0xac   : > { %532 = vmatprep.subr.bf16.mxu0 (!%p5890_p6), %v5147_v1  ;;  %3841 = vmatprep.mubr.msk.bf16.mxu0 (!%p5890_p6), %vm526_vm0, %v4583_v6  ;;  %v4575_v9 = vld [vmem:[#allocation10 + $0x30] sm:$0xff] (!%p5890_p6)   ;;  %v4576_v10 = vld [vmem:[#allocation10 + $0x38] sm:$0xff] (!%p5890_p6)  }
  0xad   : > { %v4579_v13 = vld [vmem:[#allocation10 + $0x50] sm:$0xff] (!%p5890_p6)   ;;  %v4580_v14 = vld [vmem:[#allocation10 + $0x58] sm:$0xff] (!%p5890_p6)  }
  0xae   : > { %v4581_v15 = vld [vmem:[#allocation9] ss:$8 sps:$4 sm:$0xff] (!%p5890_p6)  }
  0xaf   : > { %533 = vmatpush1.bf16.msra.mxu0 (!%p5890_p6), %v4570_v3 }
  0xb0   : > { %534 = vmatprep.subr.bf16.mxu0 (!%p5890_p6), %v5147_v1 }
  0xb3   : > { %535 = vmatpush1.bf16.msra.mxu0 %v4571_v4 }
  0xb4   : > { %536 = vmatprep.subr.bf16.mxu0 %v5147_v1 }
  0xb7   : > { %537 = vmatpush1.bf16.msra.mxu0 %v4572_v5 }
  0xb8   : > { %538 = vmatprep.subr.bf16.mxu0 %v5147_v1 }
  0xbb   : > { %539 = vmatpush1.bf16.msra.mxu0 %v4573_v7 }
  0xbc   : > { %540 = vmatprep.subr.bf16.mxu0 %v5147_v1 }
  0xbf   : > { %541 = vmatpush1.bf16.msra.mxu0 %v4574_v8 }
  0xc0   : > { %542 = vmatprep.subr.bf16.mxu0 %v5147_v1 }
  0xc3   : > { %543 = vmatpush1.bf16.msra.mxu0 %v4575_v9 }
  0xc4   : > { %544 = vmatprep.subr.bf16.mxu0 %v5147_v1 }
  0xc7   : > { %545 = vmatpush1.bf16.msra.mxu0 %v4576_v10 }
  0xc8   : > { %546 = vmatprep.subr.bf16.mxu0 %v5147_v1 }
  0xcb   : > { %547 = vmatpush1.bf16.msra.mxu0 %v4577_v11 }
  0xcc   : > { %548 = vmatprep.subr.bf16.mxu0 %v5147_v1 }
  0xcf   : > { %549 = vmatpush1.bf16.msra.mxu0 %v4578_v12 }
  0xd0   : > { %550 = vmatprep.subr.bf16.mxu0 %v5147_v1 }
  0xd3   : > { %551 = vmatpush1.bf16.msra.mxu0 %v4579_v13 }
  0xd4   : > { %552 = vmatprep.subr.bf16.mxu0 %v5147_v1 }
  0xd7   : > { %553 = vmatpush1.bf16.msra.mxu0 %v4580_v14 }
  0xda   : > { %563 = vmatmul.mubr.bf16.vlgmr.msra.gmra.mrb[0].mxu0 %v4581_v15 }
 0x1ad   : > { %v564_v16 = vpop.f32.mrb[0].mxu0 }
 0x1ae   : > { %571 = vst [vmem:[#allocation3] sm:$0xff] %v564_v16  ;;  %v566_v17 = vpop.f32.mrb[1].mxu0 }
 0x1af   : > { %v567_v18 = vpop.f32.mrb[2].mxu0 }
 0x1b0   : > { %572 = vst [vmem:[#allocation3 + $0x8] sm:$0xff] %v567_v18  ;;  %v569_v19 = vpop.f32.mrb[3].mxu0 }
 0x1b1 PF: > { %v4584_v20 = vld [vmem:[%s5428_s27 + $0x40] sm:$0xff]   ;;  %v4588_v24 = vld [vmem:[%s5428_s27 + $0x48] sm:$0xff]   ;;  %v4592_v28 = vld [vmem:[%s5428_s27 + $0x50] sm:$0xff]   ;;  %v1098_v48 = vlaneseq  ;;  %v5148_v56 = vmov 1966171168   ;;  %p4098_p12 = scmp.ne.s32.totalorder %s5225_s13, 2 }
 0x1b2   : > { %v4585_v21 = vld [vmem:[%s5428_s27 + $0xc0] sm:$0xff]   ;;  %4110 = vmatprep.subr.bf16.mxu0 %v4584_v20  ;;  %v4589_v25 = vld [vmem:[%s5428_s27 + $0xc8] sm:$0xff]   ;;  %v4593_v29 = vld [vmem:[%s5428_s27 + $0xd0] sm:$0xff]   ;;  %v1096_v57 = vunpack.c.l.s4 %v5148_v56  ;;  %vm3511_vm1 = vcmask (!%p4098_p12), 1041408   ;;  %vm3522_vm2 = vcmask (!%p4098_p12), 1047556   ;;  %vm3514_vm3 = vcmask (!%p4098_p12), 1043456  }
 0x1b3   : > { %v4586_v22 = vld [vmem:[%s5428_s27] sm:$0xff]   ;;  %4132 = vmatprep.subr.bf16.mxu1 %v4585_v21  ;;  %v4590_v26 = vld [vmem:[%s5428_s27 + $0x8] sm:$0xff]   ;;  %v4594_v30 = vld [vmem:[%s5428_s27 + $0x10] sm:$0xff]   ;;  %v1099_v53 = vshrl.u32 %v1098_v48, 7  ;;  %vm3540_vm4 = vcmask (!%p4098_p12), 7168   ;;  %vm3542_vm5 = vcmask (!%p4098_p12), 15360  }
 0x1b4   : > { %v4587_v23 = vld [vmem:[%s5428_s27 + $0x80] sm:$0xff]   ;;  %4111 = vmatpush3.bf16.msra.mxu0 %v4586_v22  ;;  %v4591_v27 = vld [vmem:[%s5428_s27 + $0x88] sm:$0xff]   ;;  %v4595_v31 = vld [vmem:[%s5428_s27 + $0x90] sm:$0xff]   ;;  %v1097_v60 = vunpack.c.0.s8 %v1096_v57  ;;  %vm3544_vm6 = vcmask (!%p4098_p12), 23552   ;;  %vm3546_vm7 = vcmask (!%p4098_p12), 27648   ;;  %vm3609_vm8 = vcmask (!%p4098_p12), 1024  }
 0x1b5   : > { %4133 = vmatpush3.bf16.msra.mxu1 %v4587_v23  ;;  %4112 = vmatprep.subr.bf16.mxu0 %v4588_v24  ;;  %v4596_v32 = vld [vmem:[%s5428_s27 + $0x58] sm:$0xff]   ;;  %v4600_v36 = vld [vmem:[%s5428_s27 + $0x60] sm:$0xff]   ;;  %v4604_v40 = vld [vmem:[%s5428_s27 + $0x68] sm:$0xff]   ;;  %vm3649_vm9 = vcmask (!%p4098_p12), 0  }
 0x1b6   : > { %4134 = vmatprep.subr.bf16.mxu1 %v4589_v25  ;;  %v4597_v33 = vld [vmem:[%s5428_s27 + $0xd8] sm:$0xff]   ;;  %v4601_v37 = vld [vmem:[%s5428_s27 + $0xe0] sm:$0xff]   ;;  %v4605_v41 = vld [vmem:[%s5428_s27 + $0xe8] sm:$0xff]   ;;  %v5479_v61 = vsub.s32 %v1097_v60, %v1099_v53 }
 0x1b7   : > { %v4598_v34 = vld [vmem:[%s5428_s27 + $0x18] sm:$0xff]   ;;  %v4602_v38 = vld [vmem:[%s5428_s27 + $0x20] sm:$0xff]   ;;  %v4606_v42 = vld [vmem:[%s5428_s27 + $0x28] sm:$0xff]  }
 0x1b8   : > { %4113 = vmatpush3.bf16.msra.mxu0 %v4590_v26  ;;  %v4599_v35 = vld [vmem:[%s5428_s27 + $0x98] sm:$0xff]   ;;  %v4603_v39 = vld [vmem:[%s5428_s27 + $0xa0] sm:$0xff]   ;;  %v4607_v43 = vld [vmem:[%s5428_s27 + $0xa8] sm:$0xff]  }
 0x1b9   : > { %4135 = vmatpush3.bf16.msra.mxu1 %v4591_v27  ;;  %4114 = vmatprep.subr.bf16.mxu0 %v4592_v28  ;;  %v4608_v44 = vld [vmem:[%s5428_s27 + $0x70] sm:$0xff]   ;;  %v4612_v49 = vld [vmem:[%s5428_s27 + $0x78] sm:$0xff]   ;;  %v574_v54 = vld [vmem:[%s5421_s20] sm:$0xff] }
 0x1ba   : > { %4136 = vmatprep.subr.bf16.mxu1 %v4593_v29  ;;  %v4609_v45 = vld [vmem:[%s5428_s27 + $0xf0] sm:$0xff]   ;;  %v4613_v50 = vld [vmem:[%s5428_s27 + $0xf8] sm:$0xff]   ;;  %v4617_v55 = vld [vmem:[%s5428_s27 + $0x140] sm:$0xff]   ;;  %v1094_v59 = vcombine.high %v574_v54, %v574_v54  ;;  %v1101_v62 = vrot.slane %v574_v54, %v5479_v61 }
 0x1bb   : > { %v4610_v46 = vld [vmem:[%s5428_s27 + $0x30] sm:$0xff]   ;;  %v4614_v51 = vld [vmem:[%s5428_s27 + $0x38] sm:$0xff]   ;;  %v4618_v58 = vld [vmem:[%s5428_s27 + $0x1c0] sm:$0xff]  }
 0x1bc   : > { %4115 = vmatpush3.bf16.msra.mxu0 %v4594_v30  ;;  %v4611_v47 = vld [vmem:[%s5428_s27 + $0xb0] sm:$0xff]   ;;  %v4615_v52 = vld [vmem:[%s5428_s27 + $0xb8] sm:$0xff]   ;;  %v5483_v63 = vrot.slane %v1094_v59, %v5479_v61  ;;  %v1109_v0 = vcombine.high %v1101_v62, %v1101_v62  ;;  %v1117_v1 = vrot.slane %v1101_v62, %v5479_v61  ;;  %v4619_v3 = vld [vmem:[%s5428_s27 + $0x100] sm:$0xff]  }
 0x1bd   : > { %4137 = vmatpush3.bf16.msra.mxu1 %v4595_v31  ;;  %4116 = vmatprep.subr.bf16.mxu0 %v4596_v32  ;;  %v4620_v5 = vld [vmem:[%s5428_s27 + $0x180] sm:$0xff]   ;;  %v4621_v8 = vld [vmem:[%s5428_s27 + $0x148] sm:$0xff]   ;;  %v4625_v14 = vld [vmem:[%s5428_s27 + $0x150] sm:$0xff]  }
 0x1be   : > { %4138 = vmatprep.subr.bf16.mxu1 %v4597_v33  ;;  %v1110_v2 = vcombine.high %v5483_v63, %v5483_v63  ;;  %v1131_v4 = vrot.slane %v1109_v0, %v5479_v61  ;;  %v1139_v7 = vcombine.high %v1117_v1, %v1117_v1  ;;  %v4622_v10 = vld [vmem:[%s5428_s27 + $0x1c8] sm:$0xff]   ;;  %v4626_v15 = vld [vmem:[%s5428_s27 + $0x1d0] sm:$0xff]   ;;  %v4629_v18 = vld [vmem:[%s5428_s27 + $0x158] sm:$0xff]  }
 0x1bf   : > { %v4623_v11 = vld [vmem:[%s5428_s27 + $0x108] sm:$0xff]   ;;  %v4627_v16 = vld [vmem:[%s5428_s27 + $0x110] sm:$0xff]   ;;  %v4630_v19 = vld [vmem:[%s5428_s27 + $0x1d8] sm:$0xff]  }
 0x1c0   : > { %4117 = vmatpush3.bf16.msra.mxu0 %v4598_v34  ;;  %v1138_v6 = vrot.slane %v1110_v2, %v5479_v61  ;;  %2890 = vmatprep.mubr.bf16.mxu0 %v1131_v4  ;;  %v1141_v9 = vcombine.high %v1131_v4, %v1131_v4  ;;  %v4624_v13 = vld [vmem:[%s5428_s27 + $0x188] sm:$0xff]   ;;  %v4628_v17 = vld [vmem:[%s5428_s27 + $0x190] sm:$0xff]   ;;  %v4631_v20 = vld [vmem:[%s5428_s27 + $0x118] sm:$0xff]  }
 0x1c1   : > { %4139 = vmatpush3.bf16.msra.mxu1 %v4599_v35  ;;  %4118 = vmatprep.subr.bf16.mxu0 %v4600_v36  ;;  %v4632_v21 = vld [vmem:[%s5428_s27 + $0x198] sm:$0xff]   ;;  %v4633_v22 = vld [vmem:[%s5428_s27 + $0x160] sm:$0xff]   ;;  %v4637_v26 = vld [vmem:[%s5428_s27 + $0x168] sm:$0xff]  }
 0x1c2   : > { %4140 = vmatprep.subr.bf16.mxu1 %v4601_v37  ;;  %v1142_v12 = vcombine.high %v1138_v6, %v1138_v6  ;;  %2930 = vmatprep.mubr.bf16.mxu1 %v1141_v9  ;;  %v4634_v23 = vld [vmem:[%s5428_s27 + $0x1e0] sm:$0xff]   ;;  %v4638_v27 = vld [vmem:[%s5428_s27 + $0x1e8] sm:$0xff]   ;;  %v4641_v30 = vld [vmem:[%s5428_s27 + $0x170] sm:$0xff]  }
 0x1c3   : > { %v4635_v24 = vld [vmem:[%s5428_s27 + $0x120] sm:$0xff]   ;;  %v4639_v28 = vld [vmem:[%s5428_s27 + $0x128] sm:$0xff]   ;;  %v4642_v31 = vld [vmem:[%s5428_s27 + $0x1f0] sm:$0xff]  }
 0x1c4   : > { %4119 = vmatpush3.bf16.msra.mxu0 %v4602_v38  ;;  %v4636_v25 = vld [vmem:[%s5428_s27 + $0x1a0] sm:$0xff]   ;;  %v4640_v29 = vld [vmem:[%s5428_s27 + $0x1a8] sm:$0xff]   ;;  %v4643_v32 = vld [vmem:[%s5428_s27 + $0x130] sm:$0xff]   ;;  %v1124_v38 = vrot.slane %v5483_v63, %v5479_v61 }
 0x1c5   : > { %4141 = vmatpush3.bf16.msra.mxu1 %v4603_v39  ;;  %4120 = vmatprep.subr.bf16.mxu0 %v4604_v40  ;;  %v4644_v33 = vld [vmem:[%s5428_s27 + $0x1b0] sm:$0xff]   ;;  %v4645_v34 = vld [vmem:[%s5428_s27 + $0x178] sm:$0xff]   ;;  %v4649_v39 = vld [vmem:[%s5428_s27 + $0x240] sm:$0xff]  }
 0x1c6   : > { %4142 = vmatprep.subr.bf16.mxu1 %v4605_v41  ;;  %v4646_v35 = vld [vmem:[%s5428_s27 + $0x1f8] sm:$0xff]   ;;  %v4650_v40 = vld [vmem:[%s5428_s27 + $0x2c0] sm:$0xff]   ;;  %v4657_v48 = vld [vmem:[%s5428_s27 + $0x250] sm:$0xff]  }
 0x1c7   : > { %v4647_v36 = vld [vmem:[%s5428_s27 + $0x138] sm:$0xff]   ;;  %v4651_v41 = vld [vmem:[%s5428_s27 + $0x200] sm:$0xff]   ;;  %v4669_v60 = vld [vmem:[%s5428_s27 + $0x268] sm:$0xff]  }
 0x1c8   : > { %4121 = vmatpush3.bf16.msra.mxu0 %v4606_v42  ;;  %v4648_v37 = vld [vmem:[%s5428_s27 + $0x1b8] sm:$0xff]   ;;  %v4652_v42 = vld [vmem:[%s5428_s27 + $0x280] sm:$0xff]   ;;  %v4670_v62 = vld [vmem:[%s5428_s27 + $0x2e8] sm:$0xff]  }
 0x1c9   : > { %4143 = vmatpush3.bf16.msra.mxu1 %v4607_v43  ;;  %4122 = vmatprep.subr.bf16.mxu0 %v4608_v44  ;;  %v1140_v43 = vcombine.high %v1124_v38, %v1124_v38  ;;  %v4653_v44 = vld [vmem:[%s5428_s27 + $0x248] sm:$0xff]   ;;  %v4662_v53 = vld [vmem:[%s5428_s27 + $0x2d8] sm:$0xff]   ;;  %v4665_v56 = vld [vmem:[%s5428_s27 + $0x260] sm:$0xff]  }
 0x1ca   : > { %4144 = vmatprep.subr.bf16.mxu1 %v4609_v45  ;;  %v4654_v45 = vld [vmem:[%s5428_s27 + $0x2c8] sm:$0xff]   ;;  %v4663_v54 = vld [vmem:[%s5428_s27 + $0x218] sm:$0xff]   ;;  %v4666_v57 = vld [vmem:[%s5428_s27 + $0x2e0] sm:$0xff]  }
 0x1cb   : > { %v4668_v59 = vld [vmem:[%s5428_s27 + $0x2a0] sm:$0xff]   ;;  %v4671_v63 = vld [vmem:[%s5428_s27 + $0x228] sm:$0xff]  }
 0x1cc   : > { %4123 = vmatpush3.bf16.msra.mxu0 %v4610_v46  ;;  %v4655_v46 = vld [vmem:[%s5428_s27 + $0x208] sm:$0xff]  }
 0x1cd   : > { %4145 = vmatpush3.bf16.msra.mxu1 %v4611_v47  ;;  %4124 = vmatprep.subr.bf16.mxu0 %v4612_v49  ;;  %v4656_v47 = vld [vmem:[%s5428_s27 + $0x288] sm:$0xff]   ;;  %v4658_v49 = vld [vmem:[%s5428_s27 + $0x2d0] sm:$0xff]  }
 0x1ce   : > { %4146 = vmatprep.subr.bf16.mxu1 %v4613_v50  ;;  %v4659_v50 = vld [vmem:[%s5428_s27 + $0x210] sm:$0xff]   ;;  %v4672_v0 = vld [vmem:[%s5428_s27 + $0x2a8] sm:$0xff]  }
 0x1cf   : > { %v575_v2 = vld [vmem:[%s5421_s20 + $0x8] sm:$0xff] }
 0x1d0   : > { %4125 = vmatpush3.bf16.msra.mxu0 %v4614_v51  ;;  %v4660_v51 = vld [vmem:[%s5428_s27 + $0x290] sm:$0xff]   ;;  %v1150_v4 = vrot.slane %v575_v2, %v5479_v61 }
 0x1d1   : > { %4147 = vmatpush3.bf16.msra.mxu1 %v4615_v52  ;;  %4154 = vmatprep.subr.bf16.mxu0 %v4617_v55  ;;  %v4661_v52 = vld [vmem:[%s5428_s27 + $0x258] sm:$0xff]  }
 0x1d2   : > { %4176 = vmatprep.subr.bf16.mxu1 %v4618_v58  ;;  %v4664_v55 = vld [vmem:[%s5428_s27 + $0x298] sm:$0xff]   ;;  %v4667_v58 = vld [vmem:[%s5428_s27 + $0x220] sm:$0xff]  }
 0x1d3   : > { %2891 = vmatmul.mubr.bf16.vlgmr.msra.gmra.mrb[0].mxu0 %v1117_v1  ;;  %v4673_v1 = vld [vmem:[%s5428_s27 + $0x270] sm:$0xff]  }
 0x1d4   : > { %4155 = vmatpush3.bf16.msra.mxu0 %v4619_v3  ;;  %2931 = vmatmul.mubr.bf16.vlgmr.msra.gmra.mrb[0].mxu1 %v1139_v7  ;;  %v4674_v3 = vld [vmem:[%s5428_s27 + $0x2f0] sm:$0xff]  }
 0x1d5   : > { %4156 = vmatprep.subr.bf16.mxu0 %v4621_v8  ;;  %4177 = vmatpush3.bf16.msra.mxu1 %v4620_v5  ;;  %v1143_v5 = vcombine.high %v575_v2, %v575_v2  ;;  %v4676_v7 = vld [vmem:[%s5428_s27 + $0x2b0] sm:$0xff]   ;;  %v1158_v8 = vcombine.high %v1150_v4, %v1150_v4 }
 0x1d6   : > { %2970 = vmatprep.mubr.bf16.mxu0 %v1138_v6  ;;  %4178 = vmatprep.subr.bf16.mxu1 %v4622_v10  ;;  %v4675_v6 = vld [vmem:[%s5428_s27 + $0x230] sm:$0xff]   ;;  %v4677_v10 = vld [vmem:[%s5428_s27 + $0x278] sm:$0xff]  }
 0x1d7   : > { %3010 = vmatprep.mubr.bf16.mxu1 %v1142_v12  ;;  %v5553_v9 = vrot.slane %v1143_v5, %v5479_v61  ;;  %v1180_v12 = vrot.slane %v1158_v8, %v5479_v61  ;;  %v4724_v2 = vld [vmem:[%s5428_s27 + $0x410] sm:$0xff]   ;;  %v4727_v5 = vld [vmem:[%s5428_s27 + $0x4d8] sm:$0xff]   ;;  %v4730_v8 = vld [vmem:[%s5428_s27 + $0x460] sm:$0xff]  }
 0x1d8   : > { %4157 = vmatpush3.bf16.msra.mxu0 %v4623_v11  ;;  %v4678_v11 = vld [vmem:[%s5428_s27 + $0x2f8] sm:$0xff]  }
 0x1d9   : > { %4158 = vmatprep.subr.bf16.mxu0 %v4625_v14  ;;  %4179 = vmatpush3.bf16.msra.mxu1 %v4624_v13  ;;  %v1159_v13 = vcombine.high %v5553_v9, %v5553_v9  ;;  %v4679_v14 = vld [vmem:[%s5428_s27 + $0x238] sm:$0xff]  }
 0x1da   : > { %4180 = vmatprep.subr.bf16.mxu1 %v4626_v15  ;;  %v4680_v15 = vld [vmem:[%s5428_s27 + $0x2b8] sm:$0xff]  }
 0x1dc   : > { %4159 = vmatpush3.bf16.msra.mxu0 %v4627_v16  ;;  %v1190_v16 = vcombine.high %v1180_v12, %v1180_v12 }
 0x1dd   : > { %4160 = vmatprep.subr.bf16.mxu0 %v4629_v18  ;;  %4181 = vmatpush3.bf16.msra.mxu1 %v4628_v17  ;;  %v1166_v17 = vrot.slane %v1150_v4, %v5479_v61  ;;  %v4681_v18 = vld [vmem:[%s5428_s27 + $0x340] sm:$0xff]   ;;  %v4726_v4 = vld [vmem:[%s5428_s27 + $0x458] sm:$0xff]  }
 0x1de   : > { %4182 = vmatprep.subr.bf16.mxu1 %v4630_v19  ;;  %v4682_v19 = vld [vmem:[%s5428_s27 + $0x3c0] sm:$0xff]  }
 0x1e0   : > { %4161 = vmatpush3.bf16.msra.mxu0 %v4631_v20  ;;  %v1187_v20 = vrot.slane %v1159_v13, %v5479_v61  ;;  %v4735_v13 = vld [vmem:[%s5428_s27 + $0x4e8] sm:$0xff]  }
 0x1e1   : > { %4162 = vmatprep.subr.bf16.mxu0 %v4633_v22  ;;  %4183 = vmatpush3.bf16.msra.mxu1 %v4632_v21  ;;  %v4683_v21 = vld [vmem:[%s5428_s27 + $0x300] sm:$0xff]  }
 0x1e2   : > { %4184 = vmatprep.subr.bf16.mxu1 %v4634_v23  ;;  %v4684_v22 = vld [vmem:[%s5428_s27 + $0x380] sm:$0xff]   ;;  %v1188_v23 = vcombine.high %v1166_v17, %v1166_v17 }
 0x1e4   : > { %4163 = vmatpush3.bf16.msra.mxu0 %v4635_v24  ;;  %v4685_v24 = vld [vmem:[%s5428_s27 + $0x348] sm:$0xff]  }
 0x1e5   : > { %4164 = vmatprep.subr.bf16.mxu0 %v4637_v26  ;;  %4185 = vmatpush3.bf16.msra.mxu1 %v4636_v25  ;;  %v4686_v25 = vld [vmem:[%s5428_s27 + $0x3c8] sm:$0xff]   ;;  %v1191_v26 = vcombine.high %v1187_v20, %v1187_v20 }
 0x1e6   : > { %4186 = vmatprep.subr.bf16.mxu1 %v4638_v27  ;;  %v4687_v27 = vld [vmem:[%s5428_s27 + $0x308] sm:$0xff]  }
 0x1e8   : > { %4165 = vmatpush3.bf16.msra.mxu0 %v4639_v28  ;;  %v4688_v28 = vld [vmem:[%s5428_s27 + $0x388] sm:$0xff]  }
 0x1e9   : > { %4166 = vmatprep.subr.bf16.mxu0 %v4641_v30  ;;  %4187 = vmatpush3.bf16.msra.mxu1 %v4640_v29  ;;  %v4689_v29 = vld [vmem:[%s5428_s27 + $0x350] sm:$0xff]  }
 0x1ea   : > { %4188 = vmatprep.subr.bf16.mxu1 %v4642_v31  ;;  %v4690_v30 = vld [vmem:[%s5428_s27 + $0x3d0] sm:$0xff]  }
 0x1eb   : > { %v4691_v31 = vld [vmem:[%s5428_s27 + $0x310] sm:$0xff]  }
 0x1ec   : > { %4167 = vmatpush3.bf16.msra.mxu0 %v4643_v32  ;;  %v4692_v32 = vld [vmem:[%s5428_s27 + $0x390] sm:$0xff]  }
 0x1ed   : > { %4168 = vmatprep.subr.bf16.mxu0 %v4645_v34  ;;  %4189 = vmatpush3.bf16.msra.mxu1 %v4644_v33  ;;  %v4693_v33 = vld [vmem:[%s5428_s27 + $0x358] sm:$0xff]  }
 0x1ee   : > { %4190 = vmatprep.subr.bf16.mxu1 %v4646_v35  ;;  %v4694_v34 = vld [vmem:[%s5428_s27 + $0x3d8] sm:$0xff]  }
 0x1ef   : > { %v4695_v35 = vld [vmem:[%s5428_s27 + $0x318] sm:$0xff]  }
 0x1f0   : > { %4169 = vmatpush3.bf16.msra.mxu0 %v4647_v36  ;;  %v4696_v36 = vld [vmem:[%s5428_s27 + $0x398] sm:$0xff]  }
 0x1f1   : > { %4198 = vmatprep.subr.bf16.mxu0 %v4649_v39  ;;  %4191 = vmatpush3.bf16.msra.mxu1 %v4648_v37  ;;  %v4697_v37 = vld [vmem:[%s5428_s27 + $0x360] sm:$0xff]  }
 0x1f2   : > { %4220 = vmatprep.subr.bf16.mxu1 %v4650_v40  ;;  %v4699_v39 = vld [vmem:[%s5428_s27 + $0x320] sm:$0xff]  }
 0x1f3   : > { %2971 = vmatmul.mubr.bf16.vlgmr.msra.gmra.mrb[4].mxu0 %v1124_v38  ;;  %v4698_v38 = vld [vmem:[%s5428_s27 + $0x3e0] sm:$0xff]  }
 0x1f4   : > { %4199 = vmatpush3.bf16.msra.mxu0 %v4651_v41  ;;  %3011 = vmatmul.mubr.bf16.vlgmr.msra.gmra.mrb[4].mxu1 %v1140_v43  ;;  %v4700_v40 = vld [vmem:[%s5428_s27 + $0x3a0] sm:$0xff]   ;;  %v4701_v41 = vld [vmem:[%s5428_s27 + $0x368] sm:$0xff]  }
 0x1f5   : > { %4200 = vmatprep.subr.bf16.mxu0 %v4653_v44  ;;  %4221 = vmatpush3.bf16.msra.mxu1 %v4652_v42  ;;  %v4702_v42 = vld [vmem:[%s5428_s27 + $0x3e8] sm:$0xff]  }
 0x1f6   : > { %4222 = vmatprep.subr.bf16.mxu1 %v4654_v45  ;;  %3050 = vmatprep.mubr.bf16.mxu0 %v1180_v12  ;;  %v4703_v43 = vld [vmem:[%s5428_s27 + $0x328] sm:$0xff]   ;;  %v4705_v45 = vld [vmem:[%s5428_s27 + $0x370] sm:$0xff]  }
 0x1f7   : > { %3090 = vmatprep.mubr.bf16.mxu1 %v1190_v16  ;;  %v4704_v44 = vld [vmem:[%s5428_s27 + $0x3a8] sm:$0xff]   ;;  %v4738_v16 = vld [vmem:[%s5428_s27 + $0x470] sm:$0xff]  }
 0x1f8   : > { %4201 = vmatpush3.bf16.msra.mxu0 %v4655_v46  ;;  %v4706_v46 = vld [vmem:[%s5428_s27 + $0x3f0] sm:$0xff]   ;;  %v4734_v12 = vld [vmem:[%s5428_s27 + $0x468] sm:$0xff]  }
 0x1f9   : > { %4202 = vmatprep.subr.bf16.mxu0 %v4657_v48  ;;  %4223 = vmatpush3.bf16.msra.mxu1 %v4656_v47  ;;  %v4707_v47 = vld [vmem:[%s5428_s27 + $0x330] sm:$0xff]  }
 0x1fa   : > { %4224 = vmatprep.subr.bf16.mxu1 %v4658_v49  ;;  %v4708_v48 = vld [vmem:[%s5428_s27 + $0x3b0] sm:$0xff]   ;;  %v4709_v49 = vld [vmem:[%s5428_s27 + $0x378] sm:$0xff]  }
 0x1fc   : > { %4203 = vmatpush3.bf16.msra.mxu0 %v4659_v50  ;;  %v4710_v50 = vld [vmem:[%s5428_s27 + $0x3f8] sm:$0xff]  }
 0x1fd   : > { %4204 = vmatprep.subr.bf16.mxu0 %v4661_v52  ;;  %4225 = vmatpush3.bf16.msra.mxu1 %v4660_v51  ;;  %v4711_v51 = vld [vmem:[%s5428_s27 + $0x338] sm:$0xff]  }
 0x1fe   : > { %4226 = vmatprep.subr.bf16.mxu1 %v4662_v53  ;;  %v4712_v52 = vld [vmem:[%s5428_s27 + $0x3b8] sm:$0xff]   ;;  %v1173_v53 = vrot.slane %v5553_v9, %v5479_v61  ;;  %v4731_v9 = vld [vmem:[%s5428_s27 + $0x4e0] sm:$0xff]  }
 0x200   : > { %4205 = vmatpush3.bf16.msra.mxu0 %v4663_v54  ;;  %v4714_v54 = vld [vmem:[%s5428_s27 + $0x440] sm:$0xff]  }
 0x201   : > { %4206 = vmatprep.subr.bf16.mxu0 %v4665_v56  ;;  %4227 = vmatpush3.bf16.msra.mxu1 %v4664_v55  ;;  %v4715_v55 = vld [vmem:[%s5428_s27 + $0x4c0] sm:$0xff]  }
 0x202   : > { %4228 = vmatprep.subr.bf16.mxu1 %v4666_v57  ;;  %v4716_v56 = vld [vmem:[%s5428_s27 + $0x400] sm:$0xff]  }
 0x203   : > { %v4717_v57 = vld [vmem:[%s5428_s27 + $0x480] sm:$0xff]  }
 0x204   : > { %4207 = vmatpush3.bf16.msra.mxu0 %v4667_v58  ;;  %v1189_v58 = vcombine.high %v1173_v53, %v1173_v53 }
 0x205   : > { %4208 = vmatprep.subr.bf16.mxu0 %v4669_v60  ;;  %4229 = vmatpush3.bf16.msra.mxu1 %v4668_v59  ;;  %v4718_v59 = vld [vmem:[%s5428_s27 + $0x448] sm:$0xff]  }
 0x206   : > { %4230 = vmatprep.subr.bf16.mxu1 %v4670_v62  ;;  %v4719_v60 = vld [vmem:[%s5428_s27 + $0x4c8] sm:$0xff]  }
 0x207   : > { %v4720_v62 = vld [vmem:[%s5428_s27 + $0x408] sm:$0xff]  }
 0x208   : > { %4209 = vmatpush3.bf16.msra.mxu0 %v4671_v63  ;;  %v4721_v63 = vld [vmem:[%s5428_s27 + $0x488] sm:$0xff]  }
 0x209   : > { %4210 = vmatprep.subr.bf16.mxu0 %v4673_v1  ;;  %4231 = vmatpush3.bf16.msra.mxu1 %v4672_v0  ;;  %v4722_v0 = vld [vmem:[%s5428_s27 + $0x450] sm:$0xff]  }
 0x20a   : > { %4232 = vmatprep.subr.bf16.mxu1 %v4674_v3  ;;  %v4723_v1 = vld [vmem:[%s5428_s27 + $0x4d0] sm:$0xff]  }
 0x20b   : > { %v4725_v3 = vld [vmem:[%s5428_s27 + $0x490] sm:$0xff]  }
 0x20c   : > { %4211 = vmatpush3.bf16.msra.mxu0 %v4675_v6  ;;  %v4728_v6 = vld [vmem:[%s5428_s27 + $0x418] sm:$0xff]  }
 0x20d   : > { %4212 = vmatprep.subr.bf16.mxu0 %v4677_v10  ;;  %4233 = vmatpush3.bf16.msra.mxu1 %v4676_v7  ;;  %v4729_v7 = vld [vmem:[%s5428_s27 + $0x498] sm:$0xff]   ;;  %v4732_v10 = vld [vmem:[%s5428_s27 + $0x420] sm:$0xff]  }
 0x20e   : > { %4234 = vmatprep.subr.bf16.mxu1 %v4678_v11  ;;  %v4733_v11 = vld [vmem:[%s5428_s27 + $0x4a0] sm:$0xff]  }
 0x210   : > { %4213 = vmatpush3.bf16.msra.mxu0 %v4679_v14  ;;  %v4736_v14 = vld [vmem:[%s5428_s27 + $0x428] sm:$0xff]  }
 0x211   : > { %4242 = vmatprep.subr.bf16.mxu0 %v4681_v18  ;;  %4235 = vmatpush3.bf16.msra.mxu1 %v4680_v15  ;;  %v4737_v15 = vld [vmem:[%s5428_s27 + $0x4a8] sm:$0xff]   ;;  %v4739_v18 = vld [vmem:[%s5428_s27 + $0x4f0] sm:$0xff]  }
 0x212   : > { %4264 = vmatprep.subr.bf16.mxu1 %v4682_v19 }
 0x213   : > { %3051 = vmatmul.mubr.bf16.vlgmr.msra.gmra.mrb[8].mxu0 %v1166_v17  ;;  %v576_v17 = vld [vmem:[%s5421_s20 + $0x10] sm:$0xff] }
 0x214   : > { %4243 = vmatpush3.bf16.msra.mxu0 %v4683_v21  ;;  %3130 = vmatprep.mubr.bf16.mxu0 %v1187_v20  ;;  %v1199_v19 = vrot.slane %v576_v17, %v5479_v61  ;;  %v1192_v20 = vcombine.high %v576_v17, %v576_v17  ;;  %v4740_v21 = vld [vmem:[%s5428_s27 + $0x430] sm:$0xff]  }
 0x215   : > { %3091 = vmatmul.mubr.bf16.vlgmr.msra.gmra.mrb[8].mxu1 %v1188_v23  ;;  %4244 = vmatprep.subr.bf16.mxu0 %v4685_v24  ;;  %v4789_v17 = vld [vmem:[%s5428_s27 + $0x610] sm:$0xff]  }
 0x216   : > { %4265 = vmatpush3.bf16.msra.mxu1 %v4684_v22  ;;  %3170 = vmatprep.mubr.bf16.mxu1 %v1191_v26  ;;  %v4741_v22 = vld [vmem:[%s5428_s27 + $0x4b0] sm:$0xff]   ;;  %v1207_v23 = vcombine.high %v1199_v19, %v1199_v19  ;;  %v5629_v24 = vrot.slane %v1192_v20, %v5479_v61  ;;  %v4743_v26 = vld [vmem:[%s5428_s27 + $0x4f8] sm:$0xff]  }
 0x217   : > { %4266 = vmatprep.subr.bf16.mxu1 %v4686_v25  ;;  %v4742_v25 = vld [vmem:[%s5428_s27 + $0x478] sm:$0xff]  }
 0x218   : > { %4245 = vmatpush3.bf16.msra.mxu0 %v4687_v27  ;;  %v1229_v27 = vrot.slane %v1207_v23, %v5479_v61  ;;  %v4792_v20 = vld [vmem:[%s5428_s27 + $0x6d8] sm:$0xff]   ;;  %v4795_v23 = vld [vmem:[%s5428_s27 + $0x660] sm:$0xff]  }
 0x219   : > { %4246 = vmatprep.subr.bf16.mxu0 %v4689_v29  ;;  %v4744_v29 = vld [vmem:[%s5428_s27 + $0x438] sm:$0xff]  }
 0x21a   : > { %4267 = vmatpush3.bf16.msra.mxu1 %v4688_v28  ;;  %v1208_v28 = vcombine.high %v5629_v24, %v5629_v24 }
 0x21b   : > { %4268 = vmatprep.subr.bf16.mxu1 %v4690_v30  ;;  %v4745_v30 = vld [vmem:[%s5428_s27 + $0x4b8] sm:$0xff]  }
 0x21c   : > { %4247 = vmatpush3.bf16.msra.mxu0 %v4691_v31  ;;  %v1239_v31 = vcombine.high %v1229_v27, %v1229_v27 }
 0x21d   : > { %4248 = vmatprep.subr.bf16.mxu0 %v4693_v33  ;;  %v4746_v33 = vld [vmem:[%s5428_s27 + $0x540] sm:$0xff]  }
 0x21e   : > { %4269 = vmatpush3.bf16.msra.mxu1 %v4692_v32  ;;  %v1215_v32 = vrot.slane %v1199_v19, %v5479_v61  ;;  %v4791_v19 = vld [vmem:[%s5428_s27 + $0x658] sm:$0xff]  }
 0x21f   : > { %4270 = vmatprep.subr.bf16.mxu1 %v4694_v34  ;;  %v4747_v34 = vld [vmem:[%s5428_s27 + $0x5c0] sm:$0xff]  }
 0x220   : > { %4249 = vmatpush3.bf16.msra.mxu0 %v4695_v35  ;;  %v1236_v35 = vrot.slane %v1208_v28, %v5479_v61  ;;  %v4800_v28 = vld [vmem:[%s5428_s27 + $0x6e8] sm:$0xff]  }
 0x221   : > { %4250 = vmatprep.subr.bf16.mxu0 %v4697_v37  ;;  %v4749_v37 = vld [vmem:[%s5428_s27 + $0x580] sm:$0xff]  }
 0x222   : > { %4271 = vmatpush3.bf16.msra.mxu1 %v4696_v36  ;;  %v4748_v36 = vld [vmem:[%s5428_s27 + $0x500] sm:$0xff]  }
 0x223   : > { %4272 = vmatprep.subr.bf16.mxu1 %v4698_v38  ;;  %v1237_v38 = vcombine.high %v1215_v32, %v1215_v32 }
 0x224   : > { %4251 = vmatpush3.bf16.msra.mxu0 %v4699_v39  ;;  %v4750_v39 = vld [vmem:[%s5428_s27 + $0x548] sm:$0xff]  }
 0x225   : > { %4252 = vmatprep.subr.bf16.mxu0 %v4701_v41  ;;  %v1240_v41 = vcombine.high %v1236_v35, %v1236_v35 }
 0x226   : > { %4273 = vmatpush3.bf16.msra.mxu1 %v4700_v40  ;;  %v4751_v40 = vld [vmem:[%s5428_s27 + $0x5c8] sm:$0xff]  }
 0x227   : > { %4274 = vmatprep.subr.bf16.mxu1 %v4702_v42  ;;  %v4752_v42 = vld [vmem:[%s5428_s27 + $0x508] sm:$0xff]  }
 0x228   : > { %4253 = vmatpush3.bf16.msra.mxu0 %v4703_v43  ;;  %v4753_v43 = vld [vmem:[%s5428_s27 + $0x588] sm:$0xff]  }
 0x229   : > { %4254 = vmatprep.subr.bf16.mxu0 %v4705_v45  ;;  %v4755_v45 = vld [vmem:[%s5428_s27 + $0x5d0] sm:$0xff]  }
 0x22a   : > { %4275 = vmatpush3.bf16.msra.mxu1 %v4704_v44  ;;  %v4754_v44 = vld [vmem:[%s5428_s27 + $0x550] sm:$0xff]  }
 0x22b   : > { %4276 = vmatprep.subr.bf16.mxu1 %v4706_v46  ;;  %v4756_v46 = vld [vmem:[%s5428_s27 + $0x510] sm:$0xff]  }
 0x22c   : > { %4255 = vmatpush3.bf16.msra.mxu0 %v4707_v47  ;;  %v4757_v47 = vld [vmem:[%s5428_s27 + $0x590] sm:$0xff]  }
 0x22d   : > { %4256 = vmatprep.subr.bf16.mxu0 %v4709_v49  ;;  %v4759_v49 = vld [vmem:[%s5428_s27 + $0x5d8] sm:$0xff]  }
 0x22e   : > { %4277 = vmatpush3.bf16.msra.mxu1 %v4708_v48  ;;  %v4758_v48 = vld [vmem:[%s5428_s27 + $0x558] sm:$0xff]  }
 0x22f   : > { %4278 = vmatprep.subr.bf16.mxu1 %v4710_v50  ;;  %v4760_v50 = vld [vmem:[%s5428_s27 + $0x518] sm:$0xff]  }
 0x230   : > { %4257 = vmatpush3.bf16.msra.mxu0 %v4711_v51  ;;  %v4761_v51 = vld [vmem:[%s5428_s27 + $0x598] sm:$0xff]  }
 0x231   : > { %4286 = vmatprep.subr.bf16.mxu0 %v4714_v54  ;;  %v4764_v54 = vld [vmem:[%s5428_s27 + $0x520] sm:$0xff]  }
 0x232   : > { %4279 = vmatpush3.bf16.msra.mxu1 %v4712_v52  ;;  %v4762_v52 = vld [vmem:[%s5428_s27 + $0x560] sm:$0xff]  }
 0x233   : > { %3131 = vmatmul.mubr.bf16.vlgmr.msra.gmra.mrb[12].mxu0 %v1173_v53  ;;  %4308 = vmatprep.subr.bf16.mxu1 %v4715_v55  ;;  %v4763_v53 = vld [vmem:[%s5428_s27 + $0x5e0] sm:$0xff]  }
 0x234   : > { %4287 = vmatpush3.bf16.msra.mxu0 %v4716_v56  ;;  %3210 = vmatprep.mubr.bf16.mxu0 %v1229_v27  ;;  %v4765_v55 = vld [vmem:[%s5428_s27 + $0x5a0] sm:$0xff]   ;;  %v4766_v56 = vld [vmem:[%s5428_s27 + $0x568] sm:$0xff]  }
 0x235   : > { %3171 = vmatmul.mubr.bf16.vlgmr.msra.gmra.mrb[12].mxu1 %v1189_v58  ;;  %4288 = vmatprep.subr.bf16.mxu0 %v4718_v59  ;;  %v4768_v58 = vld [vmem:[%s5428_s27 + $0x528] sm:$0xff]  }
 0x236   : > { %4309 = vmatpush3.bf16.msra.mxu1 %v4717_v57  ;;  %3250 = vmatprep.mubr.bf16.mxu1 %v1239_v31  ;;  %v4767_v57 = vld [vmem:[%s5428_s27 + $0x5e8] sm:$0xff]   ;;  %v4803_v31 = vld [vmem:[%s5428_s27 + $0x670] sm:$0xff]  }
 0x237   : > { %4310 = vmatprep.subr.bf16.mxu1 %v4719_v60  ;;  %v4769_v59 = vld [vmem:[%s5428_s27 + $0x5a8] sm:$0xff]   ;;  %v4770_v60 = vld [vmem:[%s5428_s27 + $0x570] sm:$0xff]  }
 0x238   : > { %4289 = vmatpush3.bf16.msra.mxu0 %v4720_v62  ;;  %v4771_v62 = vld [vmem:[%s5428_s27 + $0x5f0] sm:$0xff]   ;;  %v4799_v27 = vld [vmem:[%s5428_s27 + $0x668] sm:$0xff]  }
 0x239   : > { %4290 = vmatprep.subr.bf16.mxu0 %v4722_v0  ;;  %v4773_v0 = vld [vmem:[%s5428_s27 + $0x5b0] sm:$0xff]  }
 0x23a   : > { %4311 = vmatpush3.bf16.msra.mxu1 %v4721_v63  ;;  %v4772_v63 = vld [vmem:[%s5428_s27 + $0x530] sm:$0xff]  }
 0x23b   : > { %4312 = vmatprep.subr.bf16.mxu1 %v4723_v1  ;;  %v4774_v1 = vld [vmem:[%s5428_s27 + $0x578] sm:$0xff]  }
 0x23c   : > { %4291 = vmatpush3.bf16.msra.mxu0 %v4724_v2  ;;  %v4775_v2 = vld [vmem:[%s5428_s27 + $0x5f8] sm:$0xff]  }
 0x23d   : > { %4292 = vmatprep.subr.bf16.mxu0 %v4726_v4  ;;  %v4777_v4 = vld [vmem:[%s5428_s27 + $0x5b8] sm:$0xff]  }
 0x23e   : > { %4313 = vmatpush3.bf16.msra.mxu1 %v4725_v3  ;;  %v4776_v3 = vld [vmem:[%s5428_s27 + $0x538] sm:$0xff]  }
 0x23f   : > { %4314 = vmatprep.subr.bf16.mxu1 %v4727_v5  ;;  %v1222_v5 = vrot.slane %v5629_v24, %v5479_v61  ;;  %v4796_v24 = vld [vmem:[%s5428_s27 + $0x6e0] sm:$0xff]  }
 0x240   : > { %4293 = vmatpush3.bf16.msra.mxu0 %v4728_v6  ;;  %v4779_v6 = vld [vmem:[%s5428_s27 + $0x640] sm:$0xff]  }
 0x241   : > { %4294 = vmatprep.subr.bf16.mxu0 %v4730_v8  ;;  %v4781_v8 = vld [vmem:[%s5428_s27 + $0x600] sm:$0xff]  }
 0x242   : > { %4315 = vmatpush3.bf16.msra.mxu1 %v4729_v7  ;;  %v4780_v7 = vld [vmem:[%s5428_s27 + $0x6c0] sm:$0xff]  }
 0x243   : > { %4316 = vmatprep.subr.bf16.mxu1 %v4731_v9  ;;  %v4782_v9 = vld [vmem:[%s5428_s27 + $0x680] sm:$0xff]  }
 0x244   : > { %4295 = vmatpush3.bf16.msra.mxu0 %v4732_v10  ;;  %v1238_v10 = vcombine.high %v1222_v5, %v1222_v5 }
 0x245   : > { %4296 = vmatprep.subr.bf16.mxu0 %v4734_v12  ;;  %v4784_v12 = vld [vmem:[%s5428_s27 + $0x6c8] sm:$0xff]  }
 0x246   : > { %4317 = vmatpush3.bf16.msra.mxu1 %v4733_v11  ;;  %v4783_v11 = vld [vmem:[%s5428_s27 + $0x648] sm:$0xff]  }
 0x247   : > { %4318 = vmatprep.subr.bf16.mxu1 %v4735_v13  ;;  %v4785_v13 = vld [vmem:[%s5428_s27 + $0x608] sm:$0xff]  }
 0x248   : > { %4297 = vmatpush3.bf16.msra.mxu0 %v4736_v14  ;;  %v4786_v14 = vld [vmem:[%s5428_s27 + $0x688] sm:$0xff]  }
 0x249   : > { %4298 = vmatprep.subr.bf16.mxu0 %v4738_v16  ;;  %v4788_v16 = vld [vmem:[%s5428_s27 + $0x6d0] sm:$0xff]  }
 0x24a   : > { %4319 = vmatpush3.bf16.msra.mxu1 %v4737_v15  ;;  %v4787_v15 = vld [vmem:[%s5428_s27 + $0x650] sm:$0xff]  }
 0x24b   : > { %4320 = vmatprep.subr.bf16.mxu1 %v4739_v18  ;;  %v4790_v18 = vld [vmem:[%s5428_s27 + $0x690] sm:$0xff]  }
 0x24c   : > { %4299 = vmatpush3.bf16.msra.mxu0 %v4740_v21  ;;  %v4793_v21 = vld [vmem:[%s5428_s27 + $0x618] sm:$0xff]  }
 0x24d   : > { %4300 = vmatprep.subr.bf16.mxu0 %v4742_v25  ;;  %v4797_v25 = vld [vmem:[%s5428_s27 + $0x620] sm:$0xff]  }
 0x24e   : > { %4321 = vmatpush3.bf16.msra.mxu1 %v4741_v22  ;;  %v4794_v22 = vld [vmem:[%s5428_s27 + $0x698] sm:$0xff]  }
 0x24f   : > { %4322 = vmatprep.subr.bf16.mxu1 %v4743_v26  ;;  %v4798_v26 = vld [vmem:[%s5428_s27 + $0x6a0] sm:$0xff]  }
 0x250   : > { %4301 = vmatpush3.bf16.msra.mxu0 %v4744_v29  ;;  %v4801_v29 = vld [vmem:[%s5428_s27 + $0x628] sm:$0xff]  }
 0x251   : > { %4330 = vmatprep.subr.bf16.mxu0 %v4746_v33  ;;  %v4804_v33 = vld [vmem:[%s5428_s27 + $0x6f0] sm:$0xff]  }
 0x252   : > { %4323 = vmatpush3.bf16.msra.mxu1 %v4745_v30  ;;  %v4802_v30 = vld [vmem:[%s5428_s27 + $0x6a8] sm:$0xff]  }
 0x253   : > { %3211 = vmatmul.mubr.bf16.vlgmr.msra.gmra.mrb[16].mxu0 %v1215_v32  ;;  %4352 = vmatprep.subr.bf16.mxu1 %v4747_v34  ;;  %v577_v32 = vld [vmem:[%s5421_s20 + $0x18] sm:$0xff] }
 0x254   : > { %4331 = vmatpush3.bf16.msra.mxu0 %v4748_v36  ;;  %3290 = vmatprep.mubr.bf16.mxu0 %v1236_v35  ;;  %v1248_v34 = vrot.slane %v577_v32, %v5479_v61  ;;  %v1241_v35 = vcombine.high %v577_v32, %v577_v32  ;;  %v4805_v36 = vld [vmem:[%s5428_s27 + $0x630] sm:$0xff]  }
 0x255   : > { %3251 = vmatmul.mubr.bf16.vlgmr.msra.gmra.mrb[16].mxu1 %v1237_v38  ;;  %4332 = vmatprep.subr.bf16.mxu0 %v4750_v39 }
 0x256   : > { %4353 = vmatpush3.bf16.msra.mxu1 %v4749_v37  ;;  %3330 = vmatprep.mubr.bf16.mxu1 %v1240_v41  ;;  %v4807_v37 = vld [vmem:[%s5428_s27 + $0x678] sm:$0xff]   ;;  %v1256_v38 = vcombine.high %v1248_v34, %v1248_v34  ;;  %v5705_v39 = vrot.slane %v1241_v35, %v5479_v61 }
 0x257   : > { %4354 = vmatprep.subr.bf16.mxu1 %v4751_v40  ;;  %v4806_v40 = vld [vmem:[%s5428_s27 + $0x6b0] sm:$0xff]   ;;  %v4808_v41 = vld [vmem:[%s5428_s27 + $0x6f8] sm:$0xff]  }
 0x258   : > { %4333 = vmatpush3.bf16.msra.mxu0 %v4752_v42  ;;  %v1278_v42 = vrot.slane %v1256_v38, %v5479_v61 }
 0x259   : > { %4334 = vmatprep.subr.bf16.mxu0 %v4754_v44  ;;  %v4809_v44 = vld [vmem:[%s5428_s27 + $0x638] sm:$0xff]  }
 0x25a   : > { %4355 = vmatpush3.bf16.msra.mxu1 %v4753_v43  ;;  %v1257_v43 = vcombine.high %v5705_v39, %v5705_v39 }
 0x25b   : > { %4356 = vmatprep.subr.bf16.mxu1 %v4755_v45  ;;  %v1288_v45 = vcombine.high %v1278_v42, %v1278_v42 }
 0x25c   : > { %4335 = vmatpush3.bf16.msra.mxu0 %v4756_v46  ;;  %v1264_v46 = vrot.slane %v1248_v34, %v5479_v61 }
 0x25d   : > { %4336 = vmatprep.subr.bf16.mxu0 %v4758_v48  ;;  %v4810_v48 = vld [vmem:[%s5428_s27 + $0x6b8] sm:$0xff]  }
 0x25e   : > { %4357 = vmatpush3.bf16.msra.mxu1 %v4757_v47  ;;  %v4811_v47 = vld [vmem:[%s5428_s27 + $0x740] sm:$0xff]  }
 0x25f   : > { %4358 = vmatprep.subr.bf16.mxu1 %v4759_v49  ;;  %v1285_v49 = vrot.slane %v1257_v43, %v5479_v61 }
 0x260   : > { %4337 = vmatpush3.bf16.msra.mxu0 %v4760_v50  ;;  %v4812_v50 = vld [vmem:[%s5428_s27 + $0x7c0] sm:$0xff]  }
 0x261   : > { %4338 = vmatprep.subr.bf16.mxu0 %v4762_v52  ;;  %v1286_v52 = vcombine.high %v1264_v46, %v1264_v46 }
 0x262   : > { %4359 = vmatpush3.bf16.msra.mxu1 %v4761_v51  ;;  %v4813_v51 = vld [vmem:[%s5428_s27 + $0x700] sm:$0xff]  }
 0x263   : > { %4360 = vmatprep.subr.bf16.mxu1 %v4763_v53  ;;  %v4815_v53 = vld [vmem:[%s5428_s27 + $0x748] sm:$0xff]  }
 0x264   : > { %4339 = vmatpush3.bf16.msra.mxu0 %v4764_v54  ;;  %v4814_v54 = vld [vmem:[%s5428_s27 + $0x780] sm:$0xff]  }
 0x265   : > { %4340 = vmatprep.subr.bf16.mxu0 %v4766_v56  ;;  %v4816_v56 = vld [vmem:[%s5428_s27 + $0x7c8] sm:$0xff]  }
 0x266   : > { %4361 = vmatpush3.bf16.msra.mxu1 %v4765_v55  ;;  %v1289_v55 = vcombine.high %v1285_v49, %v1285_v49 }
 0x267   : > { %4362 = vmatprep.subr.bf16.mxu1 %v4767_v57  ;;  %v4817_v57 = vld [vmem:[%s5428_s27 + $0x708] sm:$0xff]  }
 0x268   : > { %4341 = vmatpush3.bf16.msra.mxu0 %v4768_v58  ;;  %v4819_v58 = vld [vmem:[%s5428_s27 + $0x750] sm:$0xff]  }
 0x269   : > { %4342 = vmatprep.subr.bf16.mxu0 %v4770_v60  ;;  %v4820_v60 = vld [vmem:[%s5428_s27 + $0x7d0] sm:$0xff]  }
 0x26a   : > { %4363 = vmatpush3.bf16.msra.mxu1 %v4769_v59  ;;  %v4818_v59 = vld [vmem:[%s5428_s27 + $0x788] sm:$0xff]  }
 0x26b   : > { %4364 = vmatprep.subr.bf16.mxu1 %v4771_v62  ;;  %v4821_v62 = vld [vmem:[%s5428_s27 + $0x710] sm:$0xff]  }
 0x26c   : > { %4343 = vmatpush3.bf16.msra.mxu0 %v4772_v63  ;;  %v4823_v63 = vld [vmem:[%s5428_s27 + $0x758] sm:$0xff]  }
 0x26d   : > { %4344 = vmatprep.subr.bf16.mxu0 %v4774_v1  ;;  %v4824_v1 = vld [vmem:[%s5428_s27 + $0x7d8] sm:$0xff]  }
 0x26e   : > { %4365 = vmatpush3.bf16.msra.mxu1 %v4773_v0  ;;  %v4822_v0 = vld [vmem:[%s5428_s27 + $0x790] sm:$0xff]  }
 0x26f   : > { %4366 = vmatprep.subr.bf16.mxu1 %v4775_v2  ;;  %v4825_v2 = vld [vmem:[%s5428_s27 + $0x718] sm:$0xff]  }
 0x270   : > { %4345 = vmatpush3.bf16.msra.mxu0 %v4776_v3  ;;  %v4827_v3 = vld [vmem:[%s5428_s27 + $0x760] sm:$0xff]  }
 0x271   : > { %4374 = vmatprep.subr.bf16.mxu0 %v4779_v6  ;;  %v4829_v6 = vld [vmem:[%s5428_s27 + $0x720] sm:$0xff]  }
 0x272   : > { %4367 = vmatpush3.bf16.msra.mxu1 %v4777_v4  ;;  %v4826_v4 = vld [vmem:[%s5428_s27 + $0x798] sm:$0xff]  }
 0x273   : > { %3291 = vmatmul.mubr.bf16.vlgmr.msra.gmra.mrb[20].mxu0 %v1222_v5  ;;  %4396 = vmatprep.subr.bf16.mxu1 %v4780_v7  ;;  %v4828_v5 = vld [vmem:[%s5428_s27 + $0x7e0] sm:$0xff]   ;;  %v4831_v7 = vld [vmem:[%s5428_s27 + $0x768] sm:$0xff]  }
 0x274   : > { %4375 = vmatpush3.bf16.msra.mxu0 %v4781_v8  ;;  %3370 = vmatprep.mubr.bf16.mxu0 %v1278_v42  ;;  %v4830_v8 = vld [vmem:[%s5428_s27 + $0x7a0] sm:$0xff]  }
 0x275   : > { %3331 = vmatmul.mubr.bf16.vlgmr.msra.gmra.mrb[20].mxu1 %v1238_v10  ;;  %4376 = vmatprep.subr.bf16.mxu0 %v4783_v11  ;;  %v4833_v10 = vld [vmem:[%s5428_s27 + $0x728] sm:$0xff]   ;;  %v4835_v11 = vld [vmem:[%s5428_s27 + $0x770] sm:$0xff]  }
 0x276   : > { %4397 = vmatpush3.bf16.msra.mxu1 %v4782_v9  ;;  %3410 = vmatprep.mubr.bf16.mxu1 %v1288_v45  ;;  %v4832_v9 = vld [vmem:[%s5428_s27 + $0x7e8] sm:$0xff]  }
 0x277   : > { %4398 = vmatprep.subr.bf16.mxu1 %v4784_v12 }
 0x278   : > { %4377 = vmatpush3.bf16.msra.mxu0 %v4785_v13  ;;  %v4834_v13 = vld [vmem:[%s5428_s27 + $0x7a8] sm:$0xff]  }
 0x279   : > { %4378 = vmatprep.subr.bf16.mxu0 %v4787_v15  ;;  %v4836_v15 = vld [vmem:[%s5428_s27 + $0x7f0] sm:$0xff]  }
 0x27a   : > { %4399 = vmatpush3.bf16.msra.mxu1 %v4786_v14 }
 0x27b   : > { %4400 = vmatprep.subr.bf16.mxu1 %v4788_v16 }
 0x27c   : > { %4379 = vmatpush3.bf16.msra.mxu0 %v4789_v17 }
 0x27d   : > { %4380 = vmatprep.subr.bf16.mxu0 %v4791_v19  ;;  %v4837_v19 = vld [vmem:[%s5428_s27 + $0x730] sm:$0xff]  }
 0x27e   : > { %4401 = vmatpush3.bf16.msra.mxu1 %v4790_v18 }
 0x27f   : > { %4402 = vmatprep.subr.bf16.mxu1 %v4792_v20 }
 0x280   : > { %4381 = vmatpush3.bf16.msra.mxu0 %v4793_v21 }
 0x281   : > { %4382 = vmatprep.subr.bf16.mxu0 %v4795_v23 }
 0x282   : > { %4403 = vmatpush3.bf16.msra.mxu1 %v4794_v22  ;;  %v4839_v22 = vld [vmem:[%s5428_s27 + $0x778] sm:$0xff]  }
 0x283   : > { %4404 = vmatprep.subr.bf16.mxu1 %v4796_v24 }
 0x284   : > { %4383 = vmatpush3.bf16.msra.mxu0 %v4797_v25  ;;  %v4838_v25 = vld [vmem:[%s5428_s27 + $0x7b0] sm:$0xff]  }
 0x285   : > { %4384 = vmatprep.subr.bf16.mxu0 %v4799_v27  ;;  %v4840_v27 = vld [vmem:[%s5428_s27 + $0x7f8] sm:$0xff]  }
 0x286   : > { %4405 = vmatpush3.bf16.msra.mxu1 %v4798_v26 }
 0x287   : > { %4406 = vmatprep.subr.bf16.mxu1 %v4800_v28 }
 0x288   : > { %4385 = vmatpush3.bf16.msra.mxu0 %v4801_v29  ;;  %v4841_v29 = vld [vmem:[%s5428_s27 + $0x738] sm:$0xff]  }
 0x289   : > { %4386 = vmatprep.subr.bf16.mxu0 %v4803_v31  ;;  %v4842_v31 = vld [vmem:[%s5428_s27 + $0x7b8] sm:$0xff]  }
 0x28a   : > { %4407 = vmatpush3.bf16.msra.mxu1 %v4802_v30  ;;  %v1271_v30 = vrot.slane %v5705_v39, %v5479_v61 }
 0x28b   : > { %4408 = vmatprep.subr.bf16.mxu1 %v4804_v33 }
 0x28c   : > { %4387 = vmatpush3.bf16.msra.mxu0 %v4805_v36  ;;  %v1287_v32 = vcombine.high %v1271_v30, %v1271_v30 }
 0x28d   : > { %4388 = vmatprep.subr.bf16.mxu0 %v4807_v37 }
 0x28e   : > { %4409 = vmatpush3.bf16.msra.mxu1 %v4806_v40 }
 0x28f   : > { %4410 = vmatprep.subr.bf16.mxu1 %v4808_v41 }
 0x290   : > { %4389 = vmatpush3.bf16.msra.mxu0 %v4809_v44 }
 0x291   : > { %4418 = vmatprep.subr.bf16.mxu0 %v4811_v47 }
 0x292   : > { %4411 = vmatpush3.bf16.msra.mxu1 %v4810_v48 }
 0x293   : > { %3371 = vmatmul.mubr.bf16.vlgmr.msra.gmra.mrb[24].mxu0 %v1264_v46  ;;  %4440 = vmatprep.subr.bf16.mxu1 %v4812_v50 }
 0x294   : > { %4419 = vmatpush3.bf16.msra.mxu0 %v4813_v51  ;;  %3450 = vmatprep.mubr.bf16.mxu0 %v1285_v49 }
 0x295   : > { %3411 = vmatmul.mubr.bf16.vlgmr.msra.gmra.mrb[24].mxu1 %v1286_v52  ;;  %4420 = vmatprep.subr.bf16.mxu0 %v4815_v53 }
 0x296   : > { %4441 = vmatpush3.bf16.msra.mxu1 %v4814_v54  ;;  %3490 = vmatprep.mubr.bf16.mxu1 %v1289_v55 }
 0x297   : > { %4442 = vmatprep.subr.bf16.mxu1 %v4816_v56 }
 0x298   : > { %4421 = vmatpush3.bf16.msra.mxu0 %v4817_v57 }
 0x299   : > { %4422 = vmatprep.subr.bf16.mxu0 %v4819_v58 }
 0x29a   : > { %4443 = vmatpush3.bf16.msra.mxu1 %v4818_v59 }
 0x29b   : > { %4444 = vmatprep.subr.bf16.mxu1 %v4820_v60 }
 0x29c   : > { %4423 = vmatpush3.bf16.msra.mxu0 %v4821_v62 }
 0x29d   : > { %4424 = vmatprep.subr.bf16.mxu0 %v4823_v63 }
 0x29e   : > { %4445 = vmatpush3.bf16.msra.mxu1 %v4822_v0 }
 0x29f   : > { %4446 = vmatprep.subr.bf16.mxu1 %v4824_v1 }
 0x2a0   : > { %4425 = vmatpush3.bf16.msra.mxu0 %v4825_v2 }
 0x2a1   : > { %4426 = vmatprep.subr.bf16.mxu0 %v4827_v3 }
 0x2a2   : > { %4447 = vmatpush3.bf16.msra.mxu1 %v4826_v4 }
 0x2a3   : > { %4448 = vmatprep.subr.bf16.mxu1 %v4828_v5 }
 0x2a4   : > { %4427 = vmatpush3.bf16.msra.mxu0 %v4829_v6 }
 0x2a5   : > { %4428 = vmatprep.subr.bf16.mxu0 %v4831_v7 }
 0x2a6   : > { %4449 = vmatpush3.bf16.msra.mxu1 %v4830_v8  ;;  %v4126_v12 = vpop.f32.mrb[0].mxu0 }
 0x2a7   : > { %v4127_v14 = vpop.f32.mrb[1].mxu0  ;;  %4450 = vmatprep.subr.bf16.mxu1 %v4832_v9  ;;  %v4148_v16 = vpop.f32.mrb[0].mxu1 }
 0x2a8   : > { %v4128_v17 = vadd.f32 %v4127_v14, %v4126_v12  ;;  %v4129_v18 = vpop.f32.mrb[2].mxu0  ;;  %4429 = vmatpush3.bf16.msra.mxu0 %v4833_v10  ;;  %v4149_v20 = vpop.f32.mrb[1].mxu1 }
 0x2a9   : > { %v4130_v21 = vpop.f32.mrb[3].mxu0  ;;  %4430 = vmatprep.subr.bf16.mxu0 %v4835_v11  ;;  %v4150_v23 = vadd.f32 %v4149_v20, %v4148_v16  ;;  %v4151_v24 = vpop.f32.mrb[2].mxu1 }
 0x2aa   : > { %4451 = vmatpush3.bf16.msra.mxu1 %v4834_v13  ;;  %v4152_v26 = vpop.f32.mrb[3].mxu1 }
 0x2ab   : > { %4452 = vmatprep.subr.bf16.mxu1 %v4836_v15  ;;  %v2933_v28 = vadd.f32 %v4150_v23, %v4128_v17 }
 0x2ac   : > { %4431 = vmatpush3.bf16.msra.mxu0 %v4837_v19 }
 0x2ad   : > { %4432 = vmatprep.subr.bf16.mxu0 %v4839_v22 }
 0x2ae   : > { %4453 = vmatpush3.bf16.msra.mxu1 %v4838_v25 }
 0x2af   : > { %4454 = vmatprep.subr.bf16.mxu1 %v4840_v27 }
 0x2b0   : > { %4433 = vmatpush3.bf16.msra.mxu0 %v4841_v29 }
 0x2b2   : > { %4455 = vmatpush3.bf16.msra.mxu1 %v4842_v31 }
 0x2b3   : > { %3451 = vmatmul.mubr.bf16.vlgmr.msra.gmra.mrb[28].mxu0 %v1271_v30 }
 0x2b5   : > { %3491 = vmatmul.mubr.bf16.vlgmr.msra.gmra.mrb[28].mxu1 %v1287_v32 }
 0x2c6   : > { %v4170_v33 = vpop.f32.mrb[4].mxu0 }
 0x2c7   : > { %v4171_v34 = vpop.f32.mrb[5].mxu0  ;;  %v4192_v35 = vpop.f32.mrb[4].mxu1 }
 0x2c8   : > { %v4172_v36 = vadd.f32 %v4171_v34, %v4170_v33  ;;  %v4173_v37 = vpop.f32.mrb[6].mxu0  ;;  %v4193_v38 = vpop.f32.mrb[5].mxu1 }
 0x2c9   : > { %v4174_v40 = vpop.f32.mrb[7].mxu0  ;;  %v4194_v42 = vadd.f32 %v4193_v38, %v4192_v35  ;;  %v4195_v43 = vpop.f32.mrb[6].mxu1 }
 0x2ca   : > { %v2973_v41 = vadd.f32 %v4172_v36, %v2933_v28  ;;  %v4196_v44 = vpop.f32.mrb[7].mxu1 }
 0x2cc   : > { %v3013_v61 = vadd.f32 %v4194_v42, %v2973_v41 }
 0x2e6   : > { %v4214_v39 = vpop.f32.mrb[8].mxu0 }
 0x2e7   : > { %v4215_v45 = vpop.f32.mrb[9].mxu0 }
 0x2e8   : > { %v4236_v46 = vpop.f32.mrb[8].mxu1  ;;  %v4216_v47 = vadd.f32 %v4215_v45, %v4214_v39  ;;  %v4217_v48 = vpop.f32.mrb[10].mxu0 }
 0x2e9   : > { %v4237_v49 = vpop.f32.mrb[9].mxu1  ;;  %v4218_v50 = vpop.f32.mrb[11].mxu0 }
 0x2ea   : > { %v3053_v51 = vadd.f32 %v4216_v47, %v3013_v61  ;;  %v4238_v52 = vadd.f32 %v4237_v49, %v4236_v46  ;;  %v4239_v53 = vpop.f32.mrb[10].mxu1  ;;  %v573_v50 = vld [vmem:[#allocation2] sm:$0x3] }
 0x2eb   : > { %v4240_v54 = vpop.f32.mrb[11].mxu1 }
 0x2ec   : > { %v3093_v55 = vadd.f32 %v4238_v52, %v3053_v51 }
 0x306   : > { %v4258_v56 = vpop.f32.mrb[12].mxu0 }
 0x307   : > { %v4259_v57 = vpop.f32.mrb[13].mxu0 }
 0x308   : > { %v4280_v58 = vpop.f32.mrb[12].mxu1  ;;  %v4260_v59 = vadd.f32 %v4259_v57, %v4258_v56  ;;  %v4261_v60 = vpop.f32.mrb[14].mxu0  ;;  %v5751_v57 = vld [vmem:[#allocation3] sm:$0xff] (!%p4098_p12) }
 0x309   : > { %v4281_v62 = vpop.f32.mrb[13].mxu1  ;;  %v4262_v63 = vpop.f32.mrb[15].mxu0 }
 0x30a   : > { %v3133_v0 = vadd.f32 %v4260_v59, %v3093_v55  ;;  %v4282_v1 = vadd.f32 %v4281_v62, %v4280_v58  ;;  %v4283_v2 = vpop.f32.mrb[14].mxu1  ;;  %v5754_v59 = vld [vmem:[#allocation3 + $0x8] sm:$0xff] (!%p4098_p12) }
 0x30b   : > { %v4284_v3 = vpop.f32.mrb[15].mxu1 }
 0x30c   : > { %v3173_v4 = vadd.f32 %v4282_v1, %v3133_v0 }
 0x326   : > { %v4302_v5 = vpop.f32.mrb[16].mxu0 }
 0x327   : > { %v4303_v6 = vpop.f32.mrb[17].mxu0 }
 0x328   : > { %v4324_v7 = vpop.f32.mrb[16].mxu1  ;;  %v4304_v8 = vadd.f32 %v4303_v6, %v4302_v5  ;;  %v4305_v9 = vpop.f32.mrb[18].mxu0 }
 0x329   : > { %v4325_v10 = vpop.f32.mrb[17].mxu1  ;;  %v4306_v11 = vpop.f32.mrb[19].mxu0 }
 0x32a   : > { %v3213_v12 = vadd.f32 %v4304_v8, %v3173_v4  ;;  %v4326_v13 = vadd.f32 %v4325_v10, %v4324_v7  ;;  %v4327_v14 = vpop.f32.mrb[18].mxu1 }
 0x32b   : > { %v4328_v15 = vpop.f32.mrb[19].mxu1 }
 0x32c   : > { %v3253_v16 = vadd.f32 %v4326_v13, %v3213_v12 }
 0x346   : > { %v4346_v17 = vpop.f32.mrb[20].mxu0 }
 0x347   : > { %v4347_v18 = vpop.f32.mrb[21].mxu0 }
 0x348   : > { %v4368_v19 = vpop.f32.mrb[20].mxu1  ;;  %v4348_v20 = vadd.f32 %v4347_v18, %v4346_v17  ;;  %v4349_v21 = vpop.f32.mrb[22].mxu0 }
 0x349   : > { %v4369_v22 = vpop.f32.mrb[21].mxu1  ;;  %v4350_v23 = vpop.f32.mrb[23].mxu0  ;;  %v5149_v21 = vmov (!%p4098_p12), 1  }
 0x34a   : > { %v3293_v24 = vadd.f32 %v4348_v20, %v3253_v16  ;;  %v4370_v25 = vadd.f32 %v4369_v22, %v4368_v19  ;;  %v4371_v26 = vpop.f32.mrb[22].mxu1  ;;  %4845 = vset.pattern.permute.xlu1 (!%p4098_p12), %v5149_v21  ;;  %v5150_v22 = vmov (!%p4098_p12), 0  }
 0x34b   : > { %v4372_v27 = vpop.f32.mrb[23].mxu1  ;;  %4844 = vset.pattern.permute.xlu0 (!%p4098_p12), %v5150_v22  ;;  %v5151_v26 = vmov (!%p4098_p12), 2  }
 0x34c   : > { %v3333_v28 = vadd.f32 %v4370_v25, %v3293_v24  ;;  %v5152_v27 = vmov (!%p4098_p12), 3  }
 0x366   : > { %v4390_v29 = vpop.f32.mrb[24].mxu0 }
 0x367   : > { %v4391_v30 = vpop.f32.mrb[25].mxu0 }
 0x368   : > { %v4412_v31 = vpop.f32.mrb[24].mxu1  ;;  %v4392_v32 = vadd.f32 %v4391_v30, %v4390_v29  ;;  %v4393_v33 = vpop.f32.mrb[26].mxu0  ;;  %v3574_v30 = vrot.slane (!%p4098_p12), %v5751_v57, 4 }
 0x369   : > { %v4413_v34 = vpop.f32.mrb[25].mxu1  ;;  %v4394_v35 = vpop.f32.mrb[27].mxu0 }
 0x36a   : > { %v3373_v36 = vadd.f32 %v4392_v32, %v3333_v28  ;;  %v4414_v37 = vadd.f32 %v4413_v34, %v4412_v31  ;;  %v4415_v38 = vpop.f32.mrb[26].mxu1 }
 0x36b   : > { %v4416_v40 = vpop.f32.mrb[27].mxu1 }
 0x36c   : > { %v3413_v41 = vadd.f32 %v4414_v37, %v3373_v36  ;;  %v3589_v36 = vrot.slane (!%p4098_p12), %v5754_v59, 4 }
 0x386   : > { %v4434_v42 = vpop.f32.mrb[28].mxu0 }
 0x387   : > { %v4435_v43 = vpop.f32.mrb[29].mxu0 }
 0x388   : > { %v4456_v44 = vpop.f32.mrb[28].mxu1  ;;  %v4436_v61 = vadd.f32 %v4435_v43, %v4434_v42  ;;  %v4437_v39 = vpop.f32.mrb[30].mxu0 }
 0x389   : > { %v4457_v45 = vpop.f32.mrb[29].mxu1  ;;  %v4438_v46 = vpop.f32.mrb[31].mxu0 }
 0x38a   : > { %v3453_v47 = vadd.f32 %v4436_v61, %v3413_v41  ;;  %v4458_v48 = vadd.f32 %v4457_v45, %v4456_v44  ;;  %v4459_v49 = vpop.f32.mrb[30].mxu1  ;;  %3503 = sbr.rel (%p4098_p12) target bundleno = 1763 (0x6e3), region = 72  ;;  %v4099_v44 = vld [vmem:[#allocation12] ss:$0 sm:$0xff] (!%p4098_p12) }
 0x38b   : > { %v4460_v51 = vpop.f32.mrb[31].mxu1 }
 0x38c   : > { %v3493_v52 = vadd.f32 %v4458_v48, %v3453_v47 }
 0x38e   : > { %v3498_v53 = vadd.f32 %v3493_v52, %v573_v50 }
 0x390   : > { %3499 = vst [vmem:[#allocation2] sm:$0x3] %v3498_v53 }
 0x397   : > { %v3504_v54 = vld [vmem:[#allocation2] sm:$0x3] }
 0x398   : > { %v3505_v55 = vmax.f32 %v3504_v54, 0.0 }
 0x39a   : > { %v3509_v56 = vrot.slane %v3505_v55, 6 }
 0x39c   : > { %v3512_v58 = vsel %vm3511_vm1, %v3505_v55, %v3509_v56 }
 0x39d   : > { %v3519_v60 = vrot.slane %v3512_v58, 4  ;;  %v3513_v0 = vmul.f32 %v3512_v58, %v5751_v57  ;;  %v3526_v1 = vmul.f32 %v3512_v58, %v5754_v59 }
 0x39f   : > { %v3521_v62 = vmul.f32 %v3519_v60, %v5751_v57  ;;  %v3530_v63 = vmul.f32 %v3519_v60, %v5754_v59  ;;  %v3515_v4 = vsel %vm3514_vm3, %v3513_v0, 0.0  ;;  %v3527_v5 = vsel %vm3514_vm3, %v3526_v1, 0.0  ;;  %v3611_v60 = vld [vmem:[%s5863_s5] sm:$0x3] }
 0x3a1   : > { %v3523_v2 = vsel %vm3522_vm2, %v3521_v62, 0.0  ;;  %v3531_v3 = vsel %vm3522_vm2, %v3530_v63, 0.0 }
 0x3a2   : > { %3524 = vadd.xlane.f32.xlu0 %v3523_v2  ;;  %3532 = vadd.xlane.f32.xlu1 %v3531_v3 }
 0x3a6   : > { %3516 = vadd.xlane.f32.xlu0 %v3515_v4  ;;  %3528 = vadd.xlane.f32.xlu1 %v3527_v5 }
 0x42f   : > { %v3525_v6 = vpop.xlane.xlu0 %3524  ;;  %v3533_v7 = vpop.xlane.xlu1 %3532 }
 0x430   : > { %v3535_v8 = vrot.slane %v3525_v6, 4  ;;  %v3538_v11 = vrot.slane %v3533_v7, 4 }
 0x433   : > { %v3517_v9 = vpop.xlane.xlu0 %3516  ;;  %v3529_v10 = vpop.xlane.xlu1 %3528 }
 0x434   : > { %v3541_v12 = vsel %vm3540_vm4, %v3517_v9, %v3535_v8 }
 0x435   : > { %v3543_v13 = vsel %vm3542_vm5, %v3541_v12, %v3529_v10 }
 0x436   : > { %v3545_v14 = vsel %vm3544_vm6, %v3543_v13, %v3538_v11 }
 0x437   : > { %v3547_v15 = vsel %vm3546_vm7, %v3545_v14, -inf }
 0x438   : > { %3548 = vmax.xlane.f32.xlu0 %v3547_v15 }
 0x4c5   : > { %v3549_v16 = vpop.xlane.xlu0 %3548 }
 0x4c6   : > { %v3550_v17 = vsub.f32 %v3545_v14, %v3549_v16 }
 0x4c8   : > { %v3551_v18 = vmul.f32 1.442695, %v3550_v17 }
 0x4ca   : > { %4849 = vpow2.f32 %v3551_v18 }
 0x4d4   : > { %v4850_v19 = vpop.eup %4849 }
 0x4d5   : > { %v3553_v20 = vsel %vm3546_vm7, %v4850_v19, 0.0 }
 0x4d6   : > { %3554 = vadd.xlane.f32.xlu1 %v3553_v20 }
 0x563   : > { %v3555_v23 = vpop.xlane.xlu1 %3554 }
 0x564   : > { %4851 = vrcp.f32 %v3555_v23 }
 0x56e   : > { %v4852_v24 = vpop.eup %4851 }
 0x56f   : > { %v3557_v25 = vmul.f32 %v4852_v24, %v4850_v19 }
 0x571   : > { %3561 = vst.msk [vmem:[#allocation14] sm:$0xf] %vm3546_vm7, %v3557_v25  ;;  %3570 = vperm.xlu1 %4845, %v3557_v25   ;;  %3565 = vperm.xlu0 %4844, %v3557_v25   ;;  %v3558_v28 = vsel %vm3546_vm7, %v3557_v25, -inf }
 0x575   : > { %4846 = vset.pattern.permute.xlu1 %v5151_v26  ;;  %4848 = vset.pattern.permute.xlu0 %v5152_v27 }
 0x576   : > { %3579 = vperm.xlu1 %4846, %v3557_v25  }
 0x57a   : > { %4847 = vset.pattern.permute.xlu1 %v5152_v27 }
 0x57b   : > { %3585 = vperm.xlu1 %4847, %v3557_v25  }
 0x59f   : > { %3559 = vmax.xlane.f32.xlu1 %v3558_v28 }
 0x5f0   : > { %v3571_v29 = vpop.permute.xlu1 %3570  ;;  %v3566_v31 = vpop.permute.xlu0 %3565 }
 0x5f1   : > { %v3576_v32 = vmul.f32 %v3574_v30, %v3571_v29  ;;  %v3568_v33 = vmul.f32 %v3566_v31, %v5751_v57 }
 0x5f3   : > { %v3577_v37 = vadd.f32 %v3576_v32, %v3568_v33 }
 0x5f5   : > { %v3580_v34 = vpop.permute.xlu1 %3579 }
 0x5f6   : > { %v3582_v35 = vmul.f32 %v3580_v34, %v5754_v59 }
 0x5f8   : > { %v3583_v40 = vadd.f32 %v3582_v35, %v3577_v37 }
 0x5fa   : > { %v3586_v38 = vpop.permute.xlu1 %3585 }
 0x5fb   : > { %v3591_v41 = vmul.f32 %v3589_v36, %v3586_v38 }
 0x5fd   : > { %v3592_v42 = vadd.f32 %v3591_v41, %v3583_v40 }
 0x5ff   : > { %v3594_v43 = vrot.slane %v3592_v42, 2 }
 0x601   : > { %v3596_v61 = vadd.f32 %v3594_v43, %v3592_v42 }
 0x603   : > { %v3604_v39 = vmul.f32 %v4099_v44, %v3596_v61 }
 0x605   : > { %v3605_v45 = vsel %vm3511_vm1, %v3604_v39, 0.0 }
 0x606   : > { %3606 = vadd.xlane.f32.xlu0 %v3605_v45 }
 0x62c   : > { %v3560_v46 = vpop.xlane.xlu1 %3559 }
 0x62d   : > { %3562 = vst.msk [vmem:[#allocation16] sm:$0xf] %vm3546_vm7, %v3560_v46  ;;  %v3631_v47 = vsub.f32 %v3560_v46, %v3557_v25 }
 0x62f   : > { %v3632_v48 = vand.u32 2147483647, %v3631_v47 }
 0x631   : > { %v3633_v49 = vadd.f32 0.2, %v3632_v48 }
 0x633   : > { %4853 = vrcp.f32 %v3633_v49 }
 0x63d   : > { %v4854_v50 = vpop.eup %4853 }
 0x63e   : > { %v3635_v51 = vmul.f32 0.2, %v4854_v50 }
 0x640   : > { %v3636_v52 = vsel %vm3546_vm7, %v3635_v51, 0.0 }
 0x641   : > { %3637 = vadd.xlane.f32.xlu1 %v3636_v52 }
 0x693   : > { %v3607_v53 = vpop.xlane.xlu0 %3606 }
 0x694   : > { %v3608_v54 = vmul.f32 0.5, %v3607_v53 }
 0x696   : > { %3610 = vst.msk [vmem:[%s5865_s7] sm:$0x3] %vm3609_vm8, %v3608_v54  ;;  %v3615_v55 = vand.u32 2147483647, %v3608_v54  ;;  %v3612_v63 = vmax.f32 %v3608_v54, 0.0  ;;  %v3613_v0 = vmul.f32 %v3611_v60, %v3608_v54 }
 0x698   : > { %v3616_v56 = vsub.f32 0.0, %v3615_v55  ;;  %v3614_v2 = vsub.f32 %v3612_v63, %v3613_v0 }
 0x69a   : > { %v3617_v57 = vmul.f32 1.442695, %v3616_v56 }
 0x69c   : > { %4855 = vpow2.f32 %v3617_v57 }
 0x6a6   : > { %v4856_v58 = vpop.eup %4855 }
 0x6a7   : > { %v3619_v59 = vadd.f32 1.0, %v4856_v58 }
 0x6a9   : > { %4857 = vlog2.f32 %v3619_v59 }
 0x6b3   : > { %v4858_v62 = vpop.eup %4857 }
 0x6b4   : > { %v3621_v1 = vmul.f32 0.6931472, %v4858_v62 }
 0x6b6   : > { %v3622_v3 = vadd.f32 %v3621_v1, %v3614_v2 }
 0x6b8   : > { %v3623_v4 = vsel %vm3609_vm8, %v3622_v3, 0.0 }
 0x6b9   : > { %v3624_v5 = vrot.slane %v3623_v4, 4 }
 0x6bb   : > { %v3625_v6 = vadd.f32 %v3624_v5, %v3623_v4 }
 0x6bd   : > { %v3626_v7 = vrot.slane %v3625_v6, 2 }
 0x6bf   : > { %v3627_v11 = vadd.f32 %v3626_v7, %v3625_v6 }
 0x6c1   : > { %v3628_v14 = vrot.slane %v3627_v11, 1 }
 0x6c3   : > { %v3629_v17 = vadd.f32 %v3628_v14, %v3627_v11 }
 0x6c5   : > { %v3630_v20 = vmul.f32 0.5, %v3629_v17 }
 0x6ce   : > { %v3638_v8 = vpop.xlane.xlu1 %3637 }
 0x6cf   : > { %v3639_v9 = vsel %vm3514_vm3, %v3638_v8, 0.0 }
 0x6d0   : > { %v3640_v10 = vrot.slane %v3639_v9, 4 }
 0x6d2   : > { %v3641_v12 = vadd.f32 %v3640_v10, %v3639_v9 }
 0x6d4   : > { %v3642_v13 = vrot.slane %v3641_v12, 2 }
 0x6d6   : > { %v3643_v15 = vadd.f32 %v3642_v13, %v3641_v12 }
 0x6d8   : > { %v3644_v16 = vrot.slane %v3643_v15, 1 }
 0x6da   : > { %v3645_v18 = vadd.f32 %v3644_v16, %v3643_v15 }
 0x6dc   : > { %v3646_v19 = vmul.f32 0.0625, %v3645_v18 }
 0x6de   : > { %v3647_v21 = vmul.f32 0.5, %v3646_v19 }
 0x6e0   : > { %v3648_v22 = vadd.f32 %v3647_v21, %v3630_v20 }
 0x6e2   : > { %3650 = vst.msk [vmem:[#allocation13] sm:$0x1] %vm3649_vm9, %v3648_v22 }
 0x6e3 PF: > { %p4514_p0 = scmp.eq.s32.totalorder %s5225_s13, 2  ;;  %s5153_s12 = smov [#allocation14]  }
 0x6e4   : > { %s3672_s22 = sshll.u32 %s5153_s12, 4  ;;  %s5154_s9 = smov [#allocation13]   ;;  %s3673_s22 = int_to_ptr.vmem [resolvable:$true] %s3672_s22 }
 0x6e5   : > { %s3658_s17 = sshll.u32 %s5154_s9, 4  ;;  %s5003_s16 = scalar_lea.vmem %s3673_s22, 64  ;;  %s3659_s17 = int_to_ptr.vmem [resolvable:$true] %s3658_s17 }
 0x6e6   : > { %p5004_p2 = scmp.ne.s32.totalorder %s3673_s22, %s5003_s16  ;;  %p5010_p10 = scmp.lt.s32.totalorder %s3673_s22, %s3673_s22 }
 0x6e7   : > { %p5011_p9 = scmp.lt.s32.totalorder %s5003_s16, %s5003_s16 }
 0x6e8   : > { %p5005_p13 = pnand %p5004_p2, %p4514_p0 }
 0x6e9   : > { %p5012_p11 = por %p5011_p9, %p5010_p10 }
 0x6ea   : > { %p5006_p3 = pneg %p5005_p13 }
 0x6ec   : > { %p5013_p7 = pnand %p5012_p11, %p5006_p3 }
 0x6ee   : > { %5016 = shalt.err (!%p5013_p7)
}
 0x6ef   : > { %s5017_s26 = scalar_lea.hbm %s5866_s8, 64 }
 0x6f0   : > { %p5018_p8 = scmp.ne.s32.totalorder %s5866_s8, %s5017_s26  ;;  %p5023_p5 = scmp.lt.u32.totalorder %s5017_s26, %s5866_s8 }
 0x6f2   : > { %p5019_p1 = pnand %p5018_p8, %p4514_p0 }
 0x6f4   : > { %p5020_p4 = pneg %p5019_p1 }
 0x6f6   : > { %p5025_p6 = pnand %p5023_p5, %p5020_p4 }
 0x6f8   : > { %5028 = shalt.err (!%p5025_p6)
}
 0x6f9   : > { %4481 = dma.vmem_to_hbm [thread:$0]  (%p4514_p0), %s3673_s22, 64, %s5866_s8, [#allocation15]  }
 0x6fa   : > { %s5029_s14 = scalar_lea.vmem %s3659_s17, 16  ;;  %s5035_s15 = scalar_lea.vmem %s3659_s17, 32 }
 0x6fb   : > { %p5030_p12 = scmp.ne.s32.totalorder %s3659_s17, %s5029_s14  ;;  %p5036_p3 = scmp.lt.s32.totalorder %s3659_s17, %s3659_s17 }
 0x6fc   : > { %p5037_p10 = scmp.lt.s32.totalorder %s5035_s15, %s5029_s14 }
 0x6fd   : > { %p5031_p2 = pnand %p5030_p12, %p4514_p0 }
 0x6fe   : > { %p5038_p9 = por %p5037_p10, %p5036_p3 }
 0x6ff   : > { %p5032_p13 = pneg %p5031_p2 }
 0x701   : > { %p5039_p11 = pnand %p5038_p9, %p5032_p13 }
 0x703   : > { %5042 = shalt.err (!%p5039_p11)
}
 0x704   : > { %s5043_s12 = scalar_lea.hbm %s5864_s6, 16 }
 0x705   : > { %p5044_p7 = scmp.ne.s32.totalorder %s5864_s6, %s5043_s12  ;;  %p5049_p4 = scmp.lt.u32.totalorder %s5043_s12, %s5864_s6 }
 0x707   : > { %p5045_p8 = pnand %p5044_p7, %p4514_p0 }
 0x709   : > { %p5046_p1 = pneg %p5045_p8 }
 0x70b   : > { %p5051_p5 = pnand %p5049_p4, %p5046_p1 }
 0x70d   : > { %5054 = shalt.err (!%p5051_p5)
}
 0x70e   : > { %4479 = dma.vmem_to_hbm [thread:$0]  (%p4514_p0), %s3659_s17, 16, %s5864_s6, [#allocation6]  }
 0x70f   : > { %s5155_s23 = smov [#allocation16]  }
 0x710   : > { %s3683_s20 = sshll.u32 %s5155_s23, 4  ;;  %s3684_s20 = int_to_ptr.vmem [resolvable:$true] %s3683_s20 }
 0x711   : > { %s5055_s19 = scalar_lea.vmem %s3684_s20, 64  ;;  %p5062_p13 = scmp.lt.s32.totalorder %s3684_s20, %s3684_s20 }
 0x712   : > { %p5056_p6 = scmp.ne.s32.totalorder %s3684_s20, %s5055_s19  ;;  %p5063_p3 = scmp.lt.s32.totalorder %s5055_s19, %s5055_s19 }
 0x714   : > { %p5057_p12 = pnand %p5056_p6, %p4514_p0  ;;  %p5064_p10 = por %p5063_p3, %p5062_p13 }
 0x716   : > { %p5058_p2 = pneg %p5057_p12 }
 0x718   : > { %p5065_p9 = pnand %p5064_p10, %p5058_p2 }
 0x71a   : > { %5068 = shalt.err (!%p5065_p9)
}
 0x71b   : > { %s5891_s27 = sld [smem:[#allocation24_spill]] }
 0x721   : > { %s5069_s14 = scalar_lea.hbm %s5891_s27, 64 }
 0x722   : > { %p5070_p11 = scmp.ne.s32.totalorder %s5891_s27, %s5069_s14  ;;  %p5075_p1 = scmp.lt.u32.totalorder %s5069_s14, %s5891_s27 }
 0x724   : > { %p5071_p7 = pnand %p5070_p11, %p4514_p0 }
 0x726   : > { %p5072_p8 = pneg %p5071_p7 }
 0x728   : > { %p5077_p4 = pnand %p5075_p1, %p5072_p8 }
 0x72a   : > { %5080 = shalt.err (!%p5077_p4)
}
 0x72b   : > { %4483 = dma.vmem_to_hbm [thread:$0]  (%p4514_p0), %s3684_s20, 64, %s5891_s27, [#allocation15]  }
 0x72c   : > { %5114 = dma.done.wait (%p4514_p0), [#allocation6], 16  }
 0x72d   : > { %5116 = vsyncadd (%p4514_p0), [#allocation6], 4294967280 }
 0x72e   : > { %5118 = dma.done.wait (%p4514_p0), [#allocation15], 128  }
 0x72f   : > { %5120 = vsyncadd (%p4514_p0), [#allocation15], 4294967168 }
 0x730 PF: > { %p26_p5 = scmp.ge.s32.totalorder %s5303_s24, 5   ;;  %s5892_s30 = smov %s5127_s10 }
 0x731   : > { %s5893_s10 = smov %s5131_s11  ;;  %s5894_s11 = smov %s5331_s18 }
 0x732   : > { %s5895_s12 = smov %s5303_s24  ;;  %28 = sbr.rel (!%p26_p5) target bundleno = 11 (0xb), region = 138 }
 0x739   :  { %3707 = vsyncpa [#allocation5], 1 }
 0x73a   :  { %3709 = vsyncpa [#allocation5 + $0x1], 1 }
 0x73b   :  { %3710 = vsyncpa [#allocation8], 1 }
 0x73c   :  { %3712 = vsyncpa [#allocation8 + $0x1], 1 }
 0x73d   :  { %3713 = vsyncpa [#allocation11], 1 }
 0x73e   :  { %3714 = vsyncpa [#allocation6], 1 }
 0x73f   :  { %3716 = vsyncpa [#allocation6 + $0x1], 1 }
 0x740   :  { %3717 = vsyncpa [#allocation15], 1 }

</bundles_post_ra>
